<compile_context>
chip_gen: v6e
topology: v6e:2x2x1
jax: 0.10.0
libtpu: 0.0.40
codegen_flags: <defaults>
</compile_context>

<pallas_src>
import functools

import jax
import jax.numpy as jnp
from jax.experimental import pallas as pl
from jax.experimental.pallas import tpu as pltpu

CIN = 7            # raw input channels
HID = 80           # logical conv channels / LSTM hidden size
CPAD = 128         # lane-padded channel / hidden size
SEQ = 6            # sequence length after the CNN encoder
KSZ = 3            # conv kernel size
PAD = 2            # conv padding
TILE_M = 256       # rows per conv matmul tile
TB = 8             # batches per program in the fused conv3 + pool kernel
ATT = 2 * HID      # 160 — logical attention feature width
ATT_PAD = 256      # lane-padded attention width
STATIC_F = 129     # static feature width
ENC = 256          # dy_enc / st_enc output width


def _round_up(x, m):
    return (x + m - 1) // m * m


def _full_spec(shape):
    nd = len(shape)
    return pl.BlockSpec(shape, lambda *_: (0,) * nd)


# ---------------------------------------------------------------------------
# Pallas kernels
# ---------------------------------------------------------------------------
def _mm_bias_relu_kernel(x_ref, w_ref, b_ref, o_ref):
    # x: (TILE_M, K) bf16, w: (K, CPAD) bf16, b: (1, CPAD) f32 -> relu(x @ w + b)
    acc = jnp.dot(x_ref[...], w_ref[...], preferred_element_type=jnp.float32)
    o_ref[...] = jnp.maximum(acc + b_ref[...], 0.0).astype(o_ref.dtype)


def _conv_pool_kernel(x_ref, w_ref, b_ref, o_ref, act_ref, *, lp, lp_pad, tb):
    # Fused conv3 + ReLU + AdaptiveAvgPool1d(1) for `tb` batches per program.
    # x: (tb*lp_pad, K) bf16; per batch, rows [i*lp_pad, i*lp_pad+lp) are valid.
    acc = jnp.dot(x_ref[...], w_ref[...], preferred_element_type=jnp.float32)
    act_ref[...] = jnp.maximum(acc + b_ref[...], 0.0)
    inv = 1.0 / float(lp)
    rows = [jnp.sum(act_ref[pl.ds(i * lp_pad, lp), :], axis=0, keepdims=True)
            for i in range(tb)]
    o_ref[...] = jnp.concatenate(rows, axis=0) * inv


def _bilstm_kernel(x_ref, wih_ref, b_ref, whh_f_ref, whh_b_ref, of_ref, ob_ref):
    # x: (T, NT, D) f32 time-major; wih: (D, 8H) bf16 (fwd gates 0:4H, bwd 4H:8H);
    # b: (1, 8H) f32; whh_*: (H, 4H) bf16.  Outputs: (T, NT, H) f32 per direction.
    T, NT, D = x_ref.shape
    H = whh_f_ref.shape[0]
    G = whh_f_ref.shape[1]                         # 4H

    # Hoisted input projection: both directions, all timesteps, one MXU matmul.
    x2 = x_ref[...].reshape(T * NT, D).astype(jnp.bfloat16)
    gin = jnp.dot(x2, wih_ref[...], preferred_element_type=jnp.float32) + b_ref[...]

    whh_f = whh_f_ref[...]
    whh_b = whh_b_ref[...]

    def step(g_in, h, c, whh):
        g = g_in + jnp.dot(h.astype(jnp.bfloat16), whh,
                           preferred_element_type=jnp.float32)
        i_g = jax.nn.sigmoid(g[:, 0 * H:1 * H])
        f_g = jax.nn.sigmoid(g[:, 1 * H:2 * H])
        g_g = jnp.tanh(g[:, 2 * H:3 * H])
        o_g = jax.nn.sigmoid(g[:, 3 * H:4 * H])
        c = f_g * c + i_g * g_g
        h = o_g * jnp.tanh(c)
        return h, c

    h = jnp.zeros((NT, H), jnp.float32)
    c = jnp.zeros((NT, H), jnp.float32)
    for t in range(T):                             # static unroll, T == 6
        h, c = step(gin[t * NT:(t + 1) * NT, :G], h, c, whh_f)
        of_ref[t] = h

    h = jnp.zeros((NT, H), jnp.float32)
    c = jnp.zeros((NT, H), jnp.float32)
    for t in range(T - 1, -1, -1):
        h, c = step(gin[t * NT:(t + 1) * NT, G:], h, c, whh_b)
        ob_ref[t] = h


def _head_kernel(of_ref, ob_ref, st_ref, wof_ref, wob_ref, uo_ref,
                 wdf_ref, wdb_ref, bd_ref, ws_ref, bs_ref,
                 outs_ref, adj_ref, *, n_valid):
    # of/ob: (T, NP, 128) f32 per-direction LSTM outputs (time-major, lane-padded);
    # st: (NP, 129) f32.  outs: (NP, 512), adj: (NP, NP).  Only the first n_valid
    # nodes are real; the rest are masked out of the adjacency.
    T, NP, H = of_ref.shape
    of = of_ref[...]
    ob = ob_ref[...]
    off = of.reshape(T * NP, H)                     # free reshape (merge leading dims)
    obf = ob.reshape(T * NP, H)

    # Attention logits for all timesteps / both directions: two lane-dense matmuls.
    u = jnp.tanh(jnp.dot(off, wof_ref[...], preferred_element_type=jnp.float32)
                 + jnp.dot(obf, wob_ref[...], preferred_element_type=jnp.float32))
    att = jnp.dot(u, uo_ref[...], preferred_element_type=jnp.float32)   # (T*NP, 1)

    # Softmax over the sequence dim, per node (static T-step slices).
    att_t = [att[t * NP:(t + 1) * NP, :] for t in range(T)]
    m = att_t[0]
    for t in range(1, T):
        m = jnp.maximum(m, att_t[t])
    e_t = [jnp.exp(a - m) for a in att_t]
    s = e_t[0]
    for t in range(1, T):
        s = s + e_t[t]

    feat_f = off[0:NP, :] * e_t[0]
    feat_b = obf[0:NP, :] * e_t[0]
    for t in range(1, T):
        feat_f = feat_f + off[t * NP:(t + 1) * NP, :] * e_t[t]
        feat_b = feat_b + obf[t * NP:(t + 1) * NP, :] * e_t[t]
    inv_s = 1.0 / s
    feat_f = feat_f * inv_s
    feat_b = feat_b * inv_s

    dy = (jnp.dot(feat_f, wdf_ref[...], preferred_element_type=jnp.float32)
          + jnp.dot(feat_b, wdb_ref[...], preferred_element_type=jnp.float32)
          + bd_ref[...])
    st = (jnp.dot(st_ref[...], ws_ref[...], preferred_element_type=jnp.float32)
          + bs_ref[...])
    outs = jnp.concatenate([dy, st], axis=1)                             # (NP, 512)
    outs_ref[...] = outs

    # makeadj: thresholded cosine similarity + symmetric degree normalisation.
    row = jax.lax.broadcasted_iota(jnp.int32, (NP, NP), 0)
    col = jax.lax.broadcasted_iota(jnp.int32, (NP, NP), 1)
    valid = jnp.logical_and(row < n_valid, col < n_valid)
    inv_norm = jax.lax.rsqrt(jnp.sum(outs * outs, axis=1, keepdims=True))
    outs_n = outs * inv_norm
    pcos = jax.lax.dot_general(outs_n, outs_n, (((1,), (1,)), ((), ())),
                               preferred_element_type=jnp.float32)       # (NP, NP)
    th = 1.0 / (2.0 ** 0.5)
    pdo_n = jnp.where(jnp.logical_and(pcos > th, valid), pcos, jnp.zeros_like(pcos))
    rowsum = jnp.sum(pdo_n, axis=1, keepdims=True)
    srow = jnp.where(rowsum > 0.0, jax.lax.rsqrt(rowsum), jnp.zeros_like(rowsum))
    eye = (row == col).astype(jnp.float32)
    pdi = eye * srow                                                      # diag(srow)
    dad = jnp.dot(pdi, jnp.dot(pdo_n, pdi, preferred_element_type=jnp.float32),
                  preferred_element_type=jnp.float32)
    adj_ref[...] = dad


# ---------------------------------------------------------------------------
# Wrappers (layout glue in plain JAX, compute in Pallas)
# ---------------------------------------------------------------------------
def _im2col(x, pad_rows_to=None):
    # x: (B, L, C) channels-last -> (B, L_out[_pad], KSZ*C)
    B, L, C = x.shape
    l_out = L + 2 * PAD - KSZ + 1
    xp = jnp.pad(x, ((0, 0), (PAD, PAD), (0, 0)))
    cols = jnp.concatenate([xp[:, k:k + l_out, :] for k in range(KSZ)], axis=-1)
    if pad_rows_to is not None and pad_rows_to != l_out:
        cols = jnp.pad(cols, ((0, 0), (0, pad_rows_to - l_out), (0, 0)))
    return cols, l_out


def conv1d_relu(x, w, b):
    # x: (B, L, Cin) bf16; w: (KSZ*Cin, CPAD) bf16; b: (1, CPAD) f32 -> (B, L+2, CPAD)
    B = x.shape[0]
    cols, l_out = _im2col(x)
    K = cols.shape[-1]
    m = B * l_out
    cols = cols.reshape(m, K)
    mp = _round_up(m, TILE_M)
    if mp != m:
        cols = jnp.pad(cols, ((0, mp - m), (0, 0)))
    out = pl.pallas_call(
        _mm_bias_relu_kernel,
        out_shape=jax.ShapeDtypeStruct((mp, CPAD), jnp.bfloat16),
        grid=(mp // TILE_M,),
        in_specs=[pl.BlockSpec((TILE_M, K), lambda i: (i, 0)),
                  pl.BlockSpec((K, CPAD), lambda i: (0, 0)),
                  pl.BlockSpec((1, CPAD), lambda i: (0, 0))],
        out_specs=pl.BlockSpec((TILE_M, CPAD), lambda i: (i, 0)),
        compiler_params=pltpu.CompilerParams(dimension_semantics=("parallel",)),
    )(cols, w, b)
    return out[:m].reshape(B, l_out, CPAD)


def conv1d_relu_pool(x, w, b):
    # Fused conv3 + ReLU + AdaptiveAvgPool1d(1): (B, L, CPAD) bf16 -> (B, CPAD) f32
    B, L, _ = x.shape
    l_out = L + 2 * PAD - KSZ + 1
    lp_pad = _round_up(l_out, 8)
    cols, _ = _im2col(x, pad_rows_to=lp_pad)          # (B, lp_pad, K), tail rows zero
    K = cols.shape[-1]
    bp = _round_up(B, TB)
    if bp != B:
        cols = jnp.pad(cols, ((0, bp - B), (0, 0), (0, 0)))
    cols = cols.reshape(bp * lp_pad, K)
    kernel = functools.partial(_conv_pool_kernel, lp=l_out, lp_pad=lp_pad, tb=TB)
    out = pl.pallas_call(
        kernel,
        out_shape=jax.ShapeDtypeStruct((bp, CPAD), jnp.float32),
        grid=(bp // TB,),
        in_specs=[pl.BlockSpec((TB * lp_pad, K), lambda j: (j, 0)),
                  pl.BlockSpec((K, CPAD), lambda j: (0, 0)),
                  pl.BlockSpec((1, CPAD), lambda j: (0, 0))],
        out_specs=pl.BlockSpec((TB, CPAD), lambda j: (j, 0)),
        scratch_shapes=[pltpu.VMEM((TB * lp_pad, CPAD), jnp.float32)],
        compiler_params=pltpu.CompilerParams(dimension_semantics=("parallel",)),
    )(cols, w, b)
    return out[:B]


def bilstm(seq, wih_cat, b_cat, whh_f, whh_b):
    # seq: (N, SEQ, CPAD) f32 (cols >= HID are zero) -> two (SEQ, n_pad, CPAD) f32
    N = seq.shape[0]
    nt = min(_round_up(N, 8), 64)
    n_pad = _round_up(N, nt)
    if n_pad != N:
        seq = jnp.pad(seq, ((0, n_pad - N), (0, 0), (0, 0)))
    x_tm = jnp.transpose(seq, (1, 0, 2))              # (SEQ, n_pad, CPAD) time-major
    out_f, out_b = pl.pallas_call(
        _bilstm_kernel,
        out_shape=(jax.ShapeDtypeStruct((SEQ, n_pad, CPAD), jnp.float32),
                   jax.ShapeDtypeStruct((SEQ, n_pad, CPAD), jnp.float32)),
        grid=(n_pad // nt,),
        in_specs=[pl.BlockSpec((SEQ, nt, CPAD), lambda j: (0, j, 0)),
                  pl.BlockSpec((CPAD, 8 * CPAD), lambda j: (0, 0)),
                  pl.BlockSpec((1, 8 * CPAD), lambda j: (0, 0)),
                  pl.BlockSpec((CPAD, 4 * CPAD), lambda j: (0, 0)),
                  pl.BlockSpec((CPAD, 4 * CPAD), lambda j: (0, 0))],
        out_specs=(pl.BlockSpec((SEQ, nt, CPAD), lambda j: (0, j, 0)),
                   pl.BlockSpec((SEQ, nt, CPAD), lambda j: (0, j, 0))),
        compiler_params=pltpu.CompilerParams(dimension_semantics=("parallel",)),
    )(x_tm, wih_cat, b_cat, whh_f, whh_b)
    return out_f, out_b


def attention_head(out_f, out_b, st, p, n_valid):
    # out_f/out_b: (SEQ, NP, CPAD) f32; st: (NP, STATIC_F) f32.
    T, NP, _ = out_f.shape
    kernel = functools.partial(_head_kernel, n_valid=n_valid)
    outs, adj = pl.pallas_call(
        kernel,
        out_shape=(jax.ShapeDtypeStruct((NP, 2 * ENC), jnp.float32),
                   jax.ShapeDtypeStruct((NP, NP), jnp.float32)),
        in_specs=[_full_spec(out_f.shape), _full_spec(out_b.shape), _full_spec(st.shape),
                  _full_spec(p["wof"].shape), _full_spec(p["wob"].shape),
                  _full_spec(p["uo"].shape), _full_spec(p["wdf"].shape),
                  _full_spec(p["wdb"].shape), _full_spec(p["bd"].shape),
                  _full_spec(p["ws"].shape), _full_spec(p["bs"].shape)],
        out_specs=(_full_spec((NP, 2 * ENC)), _full_spec((NP, NP))),
    )(out_f, out_b, st, p["wof"], p["wob"], p["uo"], p["wdf"], p["wdb"], p["bd"],
      p["ws"], p["bs"])
    return outs[:n_valid], adj[:n_valid, :n_valid]


# ---------------------------------------------------------------------------
# Parameters (PyTorch-style init, zero-padded to lane-dense layouts)
# ---------------------------------------------------------------------------
def init_params(key):
    ks = jax.random.split(key, 20)

    def u(k, shape, fan_in):
        s = 1.0 / float(fan_in) ** 0.5
        return jax.random.uniform(k, shape, jnp.float32, -s, s)

    def pad_conv(w, b, cin_log, cin_phys):
        wp = jnp.zeros((KSZ * cin_phys, CPAD), jnp.float32)
        for k in range(KSZ):
            wp = wp.at[k * cin_phys:k * cin_phys + cin_log, :HID].set(
                w[k * cin_log:(k + 1) * cin_log, :])
        bp = jnp.zeros((1, CPAD), jnp.float32).at[0, :HID].set(b)
        return wp.astype(jnp.bfloat16), bp

    w1, b1 = pad_conv(u(ks[0], (KSZ * CIN, HID), KSZ * CIN),
                      u(ks[1], (HID,), KSZ * CIN), CIN, CIN)
    w2, b2 = pad_conv(u(ks[2], (KSZ * HID, HID), KSZ * HID),
                      u(ks[3], (HID,), KSZ * HID), HID, CPAD)
    w3, b3 = pad_conv(u(ks[4], (KSZ * HID, HID), KSZ * HID),
                      u(ks[5], (HID,), KSZ * HID), HID, CPAD)

    # BiLSTM, PyTorch gate order (i, f, g, o); hidden padded 80 -> 128 with zero weights
    # so the padded lanes stay exactly zero through the recurrence.
    def pad_lstm(wih, whh, bias):
        wih_p = jnp.zeros((CPAD, 4 * CPAD), jnp.float32)
        whh_p = jnp.zeros((CPAD, 4 * CPAD), jnp.float32)
        b_p = jnp.zeros((1, 4 * CPAD), jnp.float32)
        for g in range(4):
            wih_p = wih_p.at[:HID, g * CPAD:g * CPAD + HID].set(wih[:, g * HID:(g + 1) * HID])
            whh_p = whh_p.at[:HID, g * CPAD:g * CPAD + HID].set(whh[:, g * HID:(g + 1) * HID])
            b_p = b_p.at[0, g * CPAD:g * CPAD + HID].set(bias[g * HID:(g + 1) * HID])
        return wih_p, whh_p, b_p

    def lstm_dir(k0, k1, k2, k3):
        wih = u(k0, (HID, 4 * HID), HID)
        whh = u(k1, (HID, 4 * HID), HID)
        bias = u(k2, (4 * HID,), HID) + u(k3, (4 * HID,), HID)   # b_ih + b_hh combined
        return pad_lstm(wih, whh, bias)

    wih_f, whh_f, b_f = lstm_dir(ks[6], ks[7], ks[8], ks[9])
    wih_b, whh_b, b_b = lstm_dir(ks[10], ks[11], ks[12], ks[13])

    # Attention + encoders, split per LSTM direction and zero-padded to lane-dense
    # layouts (padded rows/cols are zero, so results match the logical 160-wide op).
    w_omega = jax.random.uniform(ks[14], (ATT, ATT), jnp.float32, -0.1, 0.1)
    u_omega = jax.random.uniform(ks[15], (ATT, 1), jnp.float32, -0.1, 0.1)
    wd = u(ks[16], (ATT, ENC), ATT)
    bd = u(ks[17], (1, ENC), ATT)
    ws = u(ks[18], (STATIC_F, ENC), STATIC_F)
    bs = u(ks[19], (1, ENC), STATIC_F)

    wof = jnp.zeros((CPAD, ATT_PAD), jnp.float32).at[:HID, :ATT].set(w_omega[:HID, :])
    wob = jnp.zeros((CPAD, ATT_PAD), jnp.float32).at[:HID, :ATT].set(w_omega[HID:, :])
    uo = jnp.zeros((ATT_PAD, 1), jnp.float32).at[:ATT, :].set(u_omega)
    wdf = jnp.zeros((CPAD, ENC), jnp.float32).at[:HID, :].set(wd[:HID, :])
    wdb = jnp.zeros((CPAD, ENC), jnp.float32).at[:HID, :].set(wd[HID:, :])

    return {
        "w1": w1, "b1": b1, "w2": w2, "b2": b2, "w3": w3, "b3": b3,
        "wih_cat": jnp.concatenate([wih_f, wih_b], axis=1).astype(jnp.bfloat16),
        "b_cat": jnp.concatenate([b_f, b_b], axis=1),
        "whh_f": whh_f.astype(jnp.bfloat16), "whh_b": whh_b.astype(jnp.bfloat16),
        "wof": wof, "wob": wob, "uo": uo,
        "wdf": wdf, "wdb": wdb, "bd": bd, "ws": ws, "bs": bs,
    }


# ---------------------------------------------------------------------------
# Full forward pass
# ---------------------------------------------------------------------------
@jax.jit
def cnn_lstm_attention_gat_forward(x, static, params):
    # x: (node*6, 7, L) NCW; static: reshapeable to (node, 129).
    node = x.shape[0] // SEQ
    h = jnp.transpose(x, (0, 2, 1)).astype(jnp.bfloat16)          # (B, L, 7) channels-last
    h = conv1d_relu(h, params["w1"], params["b1"])                # (B, L+2, 128) bf16
    h = conv1d_relu(h, params["w2"], params["b2"])                # (B, L+4, 128) bf16
    pooled = conv1d_relu_pool(h, params["w3"], params["b3"])      # (B, 128) f32
    seq = pooled.reshape(node, SEQ, CPAD)
    out_f, out_b = bilstm(seq, params["wih_cat"], params["b_cat"],
                          params["whh_f"], params["whh_b"])       # 2 x (6, n_pad, 128)
    st = static.reshape(node, STATIC_F).astype(jnp.float32)
    n_pad = out_f.shape[1]
    if n_pad != node:
        st = jnp.pad(st, ((0, n_pad - node), (0, 0)))
    outs, adj = attention_head(out_f, out_b, st, params, node)    # (node, 512), (node, node)
    # TODO(synk): GAT stage — the GAT class definition is not provided in the reference,
    # so the pre-GAT node features `outs` and the adjacency `adj` are returned instead.
    return outs, adj


if __name__ == "__main__":
    key = jax.random.PRNGKey(0)
    k_x, k_s, k_p = jax.random.split(key, 3)

    node_number = 2
    L = 16
    x = jax.random.normal(k_x, (node_number * SEQ, CIN, L), jnp.float32)
    static = jax.random.normal(k_s, (node_number, STATIC_F), jnp.float32)
    params = init_params(k_p)

    outs, adj = cnn_lstm_attention_gat_forward(x, static, params)
    outs, adj = jax.block_until_ready((outs, adj))
    assert outs.shape == (node_number, 2 * ENC), outs.shape
    assert adj.shape == (node_number, node_number), adj.shape
    assert bool(jnp.all(jnp.isfinite(outs))) and bool(jnp.all(jnp.isfinite(adj)))
    print("KERNEL_OK")
</pallas_src>

<mosaic_0001>
module attributes {stable_mosaic.version = 11 : i64} {
  func.func @_mm_bias_relu_kernel(%arg0: i32, %arg1: memref<256x21xbf16, #tpu.memory_space<vmem>>, %arg2: memref<21x128xbf16, #tpu.memory_space<vmem>>, %arg3: memref<1x128xf32, #tpu.memory_space<vmem>>, %arg4: memref<256x128xbf16, #tpu.memory_space<vmem>>) attributes {dimension_semantics = [#tpu.dimension_semantics<parallel>], iteration_bounds = array<i64: 1>, scalar_prefetch = 0 : i64, scratch_operands = 0 : i64, tpu.core_type = #tpu.core_type<tc>, window_params = [{transform_indices = @transform_0, window_bounds = array<i64: 256, 21>}, {pipeline_mode = #tpu.pipeline_mode<synchronous>, transform_indices = @transform_1, window_bounds = array<i64: 21, 128>}, {pipeline_mode = #tpu.pipeline_mode<synchronous>, transform_indices = @transform_2, window_bounds = array<i64: 1, 128>}, {transform_indices = @transform_3, window_bounds = array<i64: 256, 128>}]} {
    %c0 = arith.constant 0 : index
    %c0_0 = arith.constant 0 : index
    %0 = vector.load %arg1[%c0, %c0_0] : memref<256x21xbf16, #tpu.memory_space<vmem>>, vector<256x21xbf16>
    %c0_1 = arith.constant 0 : index
    %c0_2 = arith.constant 0 : index
    %1 = vector.load %arg2[%c0_1, %c0_2] : memref<21x128xbf16, #tpu.memory_space<vmem>>, vector<21x128xbf16>
    %cst = arith.constant dense<0.000000e+00> : vector<256x128xf32>
    %2 = tpu.matmul %0, %1, %cst {dimension_numbers = #tpu.dot_dimension_numbers<[1], [0], [0], [1], [0, 0, 1, 1], [], []>} : vector<256x21xbf16>, vector<21x128xbf16>, vector<256x128xf32> -> vector<256x128xf32>
    %c0_3 = arith.constant 0 : index
    %c0_4 = arith.constant 0 : index
    %3 = vector.load %arg3[%c0_3, %c0_4] : memref<1x128xf32, #tpu.memory_space<vmem>>, vector<1x128xf32>
    %4 = vector.broadcast %3 : vector<1x128xf32> to vector<256x128xf32>
    %5 = arith.addf %2, %4 : vector<256x128xf32>
    %cst_5 = arith.constant 0.000000e+00 : f32
    %6 = vector.broadcast %cst_5 : f32 to vector<256x128xf32>
    %7 = arith.maximumf %5, %6 : vector<256x128xf32>
    %8 = arith.truncf %7 : vector<256x128xf32> to vector<256x128xbf16>
    %c0_6 = arith.constant 0 : index
    %c0_7 = arith.constant 0 : index
    %9 = vector.load %arg4[%c0_6, %c0_7] : memref<256x128xbf16, #tpu.memory_space<vmem>>, vector<256x128xbf16>
    tpu.vector_store %arg4[%c0_6, %c0_7], %8 {strides = array<i32>} : memref<256x128xbf16, #tpu.memory_space<vmem>>, vector<256x128xbf16>,
    return
  }
  func.func @transform_0(%arg0: i32) -> (i32, i32) {
    %c0_i32 = arith.constant 0 : i32
    %c0_i32_0 = arith.constant 0 : i32
    return %arg0, %c0_i32 : i32, i32
  }
  func.func @transform_1(%arg0: i32) -> (i32, i32) {
    %c0_i32 = arith.constant 0 : i32
    %c0_i32_0 = arith.constant 0 : i32
    %c0_i32_1 = arith.constant 0 : i32
    return %c0_i32, %c0_i32_0 : i32, i32
  }
  func.func @transform_2(%arg0: i32) -> (i32, i32) {
    %c0_i32 = arith.constant 0 : i32
    %c0_i32_0 = arith.constant 0 : i32
    %c0_i32_1 = arith.constant 0 : i32
    return %c0_i32, %c0_i32_0 : i32, i32
  }
  func.func @transform_3(%arg0: i32) -> (i32, i32) {
    %c0_i32 = arith.constant 0 : i32
    %c0_i32_0 = arith.constant 0 : i32
    return %arg0, %c0_i32 : i32, i32
  }
}

module attributes {stable_mosaic.version = 11 : i64} {
  func.func @_mm_bias_relu_kernel(%arg0: i32, %arg1: memref<256x384xbf16, #tpu.memory_space<vmem>>, %arg2: memref<384x128xbf16, #tpu.memory_space<vmem>>, %arg3: memref<1x128xf32, #tpu.memory_space<vmem>>, %arg4: memref<256x128xbf16, #tpu.memory_space<vmem>>) attributes {dimension_semantics = [#tpu.dimension_semantics<parallel>], iteration_bounds = array<i64: 1>, scalar_prefetch = 0 : i64, scratch_operands = 0 : i64, tpu.core_type = #tpu.core_type<tc>, window_params = [{transform_indices = @transform_0, window_bounds = array<i64: 256, 384>}, {pipeline_mode = #tpu.pipeline_mode<synchronous>, transform_indices = @transform_1, window_bounds = array<i64: 384, 128>}, {pipeline_mode = #tpu.pipeline_mode<synchronous>, transform_indices = @transform_2, window_bounds = array<i64: 1, 128>}, {transform_indices = @transform_3, window_bounds = array<i64: 256, 128>}]} {
    %c0 = arith.constant 0 : index
    %c0_0 = arith.constant 0 : index
    %0 = vector.load %arg1[%c0, %c0_0] : memref<256x384xbf16, #tpu.memory_space<vmem>>, vector<256x384xbf16>
    %c0_1 = arith.constant 0 : index
    %c0_2 = arith.constant 0 : index
    %1 = vector.load %arg2[%c0_1, %c0_2] : memref<384x128xbf16, #tpu.memory_space<vmem>>, vector<384x128xbf16>
    %cst = arith.constant dense<0.000000e+00> : vector<256x128xf32>
    %2 = tpu.matmul %0, %1, %cst {dimension_numbers = #tpu.dot_dimension_numbers<[1], [0], [0], [1], [0, 0, 1, 1], [], []>} : vector<256x384xbf16>, vector<384x128xbf16>, vector<256x128xf32> -> vector<256x128xf32>
    %c0_3 = arith.constant 0 : index
    %c0_4 = arith.constant 0 : index
    %3 = vector.load %arg3[%c0_3, %c0_4] : memref<1x128xf32, #tpu.memory_space<vmem>>, vector<1x128xf32>
    %4 = vector.broadcast %3 : vector<1x128xf32> to vector<256x128xf32>
    %5 = arith.addf %2, %4 : vector<256x128xf32>
    %cst_5 = arith.constant 0.000000e+00 : f32
    %6 = vector.broadcast %cst_5 : f32 to vector<256x128xf32>
    %7 = arith.maximumf %5, %6 : vector<256x128xf32>
    %8 = arith.truncf %7 : vector<256x128xf32> to vector<256x128xbf16>
    %c0_6 = arith.constant 0 : index
    %c0_7 = arith.constant 0 : index
    %9 = vector.load %arg4[%c0_6, %c0_7] : memref<256x128xbf16, #tpu.memory_space<vmem>>, vector<256x128xbf16>
    tpu.vector_store %arg4[%c0_6, %c0_7], %8 {strides = array<i32>} : memref<256x128xbf16, #tpu.memory_space<vmem>>, vector<256x128xbf16>,
    return
  }
  func.func @transform_0(%arg0: i32) -> (i32, i32) {
    %c0_i32 = arith.constant 0 : i32
    %c0_i32_0 = arith.constant 0 : i32
    return %arg0, %c0_i32 : i32, i32
  }
  func.func @transform_1(%arg0: i32) -> (i32, i32) {
    %c0_i32 = arith.constant 0 : i32
    %c0_i32_0 = arith.constant 0 : i32
    %c0_i32_1 = arith.constant 0 : i32
    return %c0_i32, %c0_i32_0 : i32, i32
  }
  func.func @transform_2(%arg0: i32) -> (i32, i32) {
    %c0_i32 = arith.constant 0 : i32
    %c0_i32_0 = arith.constant 0 : i32
    %c0_i32_1 = arith.constant 0 : i32
    return %c0_i32, %c0_i32_0 : i32, i32
  }
  func.func @transform_3(%arg0: i32) -> (i32, i32) {
    %c0_i32 = arith.constant 0 : i32
    %c0_i32_0 = arith.constant 0 : i32
    return %arg0, %c0_i32 : i32, i32
  }
}

module attributes {stable_mosaic.version = 11 : i64} {
  func.func @_conv_pool_kernel(%arg0: i32, %arg1: memref<192x384xbf16, #tpu.memory_space<vmem>>, %arg2: memref<384x128xbf16, #tpu.memory_space<vmem>>, %arg3: memref<1x128xf32, #tpu.memory_space<vmem>>, %arg4: memref<8x128xf32, #tpu.memory_space<vmem>>, %arg5: memref<192x128xf32, #tpu.memory_space<vmem>>) attributes {dimension_semantics = [#tpu.dimension_semantics<parallel>], iteration_bounds = array<i64: 2>, scalar_prefetch = 0 : i64, scratch_operands = 1 : i64, tpu.core_type = #tpu.core_type<tc>, window_params = [{transform_indices = @transform_0, window_bounds = array<i64: 192, 384>}, {pipeline_mode = #tpu.pipeline_mode<synchronous>, transform_indices = @transform_1, window_bounds = array<i64: 384, 128>}, {pipeline_mode = #tpu.pipeline_mode<synchronous>, transform_indices = @transform_2, window_bounds = array<i64: 1, 128>}, {transform_indices = @transform_3, window_bounds = array<i64: 8, 128>}]} {
    %c0 = arith.constant 0 : index
    %c0_0 = arith.constant 0 : index
    %0 = vector.load %arg1[%c0, %c0_0] : memref<192x384xbf16, #tpu.memory_space<vmem>>, vector<192x384xbf16>
    %c0_1 = arith.constant 0 : index
    %c0_2 = arith.constant 0 : index
    %1 = vector.load %arg2[%c0_1, %c0_2] : memref<384x128xbf16, #tpu.memory_space<vmem>>, vector<384x128xbf16>
    %cst = arith.constant dense<0.000000e+00> : vector<192x128xf32>
    %2 = tpu.matmul %0, %1, %cst {dimension_numbers = #tpu.dot_dimension_numbers<[1], [0], [0], [1], [0, 0, 1, 1], [], []>} : vector<192x384xbf16>, vector<384x128xbf16>, vector<192x128xf32> -> vector<192x128xf32>
    %c0_3 = arith.constant 0 : index
    %c0_4 = arith.constant 0 : index
    %3 = vector.load %arg3[%c0_3, %c0_4] : memref<1x128xf32, #tpu.memory_space<vmem>>, vector<1x128xf32>
    %4 = vector.broadcast %3 : vector<1x128xf32> to vector<192x128xf32>
    %5 = arith.addf %2, %4 : vector<192x128xf32>
    %cst_5 = arith.constant 0.000000e+00 : f32
    %6 = vector.broadcast %cst_5 : f32 to vector<192x128xf32>
    %7 = arith.maximumf %5, %6 : vector<192x128xf32>
    %c0_6 = arith.constant 0 : index
    %c0_7 = arith.constant 0 : index
    %8 = vector.load %arg5[%c0_6, %c0_7] : memref<192x128xf32, #tpu.memory_space<vmem>>, vector<192x128xf32>
    tpu.vector_store %arg5[%c0_6, %c0_7], %7 {strides = array<i32>} : memref<192x128xf32, #tpu.memory_space<vmem>>, vector<192x128xf32>,
    %c0_8 = arith.constant 0 : index
    %c0_9 = arith.constant 0 : index
    %9 = vector.load %arg5[%c0_8, %c0_9] : memref<192x128xf32, #tpu.memory_space<vmem>>, vector<22x128xf32>
    %cst_10 = arith.constant dense<0.000000e+00> : vector<128xf32>
    %10 = vector.multi_reduction <add>, %9, %cst_10 [0] : vector<22x128xf32> to vector<128xf32>
    %11 = vector.shape_cast %10 : vector<128xf32> to vector<1x128xf32>
    %c24 = arith.constant 24 : index
    %c0_11 = arith.constant 0 : index
    %12 = vector.load %arg5[%c24, %c0_11] : memref<192x128xf32, #tpu.memory_space<vmem>>, vector<22x128xf32>
    %cst_12 = arith.constant dense<0.000000e+00> : vector<128xf32>
    %13 = vector.multi_reduction <add>, %12, %cst_12 [0] : vector<22x128xf32> to vector<128xf32>
    %14 = vector.shape_cast %13 : vector<128xf32> to vector<1x128xf32>
    %c48 = arith.constant 48 : index
    %c0_13 = arith.constant 0 : index
    %15 = vector.load %arg5[%c48, %c0_13] : memref<192x128xf32, #tpu.memory_space<vmem>>, vector<22x128xf32>
    %cst_14 = arith.constant dense<0.000000e+00> : vector<128xf32>
    %16 = vector.multi_reduction <add>, %15, %cst_14 [0] : vector<22x128xf32> to vector<128xf32>
    %17 = vector.shape_cast %16 : vector<128xf32> to vector<1x128xf32>
    %c72 = arith.constant 72 : index
    %c0_15 = arith.constant 0 : index
    %18 = vector.load %arg5[%c72, %c0_15] : memref<192x128xf32, #tpu.memory_space<vmem>>, vector<22x128xf32>
    %cst_16 = arith.constant dense<0.000000e+00> : vector<128xf32>
    %19 = vector.multi_reduction <add>, %18, %cst_16 [0] : vector<22x128xf32> to vector<128xf32>
    %20 = vector.shape_cast %19 : vector<128xf32> to vector<1x128xf32>
    %c96 = arith.constant 96 : index
    %c0_17 = arith.constant 0 : index
    %21 = vector.load %arg5[%c96, %c0_17] : memref<192x128xf32, #tpu.memory_space<vmem>>, vector<22x128xf32>
    %cst_18 = arith.constant dense<0.000000e+00> : vector<128xf32>
    %22 = vector.multi_reduction <add>, %21, %cst_18 [0] : vector<22x128xf32> to vector<128xf32>
    %23 = vector.shape_cast %22 : vector<128xf32> to vector<1x128xf32>
    %c120 = arith.constant 120 : index
    %c0_19 = arith.constant 0 : index
    %24 = vector.load %arg5[%c120, %c0_19] : memref<192x128xf32, #tpu.memory_space<vmem>>, vector<22x128xf32>
    %cst_20 = arith.constant dense<0.000000e+00> : vector<128xf32>
    %25 = vector.multi_reduction <add>, %24, %cst_20 [0] : vector<22x128xf32> to vector<128xf32>
    %26 = vector.shape_cast %25 : vector<128xf32> to vector<1x128xf32>
    %c144 = arith.constant 144 : index
    %c0_21 = arith.constant 0 : index
    %27 = vector.load %arg5[%c144, %c0_21] : memref<192x128xf32, #tpu.memory_space<vmem>>, vector<22x128xf32>
    %cst_22 = arith.constant dense<0.000000e+00> : vector<128xf32>
    %28 = vector.multi_reduction <add>, %27, %cst_22 [0] : vector<22x128xf32> to vector<128xf32>
    %29 = vector.shape_cast %28 : vector<128xf32> to vector<1x128xf32>
    %c168 = arith.constant 168 : index
    %c0_23 = arith.constant 0 : index
    %30 = vector.load %arg5[%c168, %c0_23] : memref<192x128xf32, #tpu.memory_space<vmem>>, vector<22x128xf32>
    %cst_24 = arith.constant dense<0.000000e+00> : vector<128xf32>
    %31 = vector.multi_reduction <add>, %30, %cst_24 [0] : vector<22x128xf32> to vector<128xf32>
    %32 = vector.shape_cast %31 : vector<128xf32> to vector<1x128xf32>
    %33 = tpu.concatenate %11, %14, %17, %20, %23, %26, %29, %32 in 0 : vector<1x128xf32>, vector<1x128xf32>, vector<1x128xf32>, vector<1x128xf32>, vector<1x128xf32>, vector<1x128xf32>, vector<1x128xf32>, vector<1x128xf32> -> vector<8x128xf32>
    %cst_25 = arith.constant 0.0454545468 : f32
    %34 = vector.broadcast %cst_25 : f32 to vector<8x128xf32>
    %35 = arith.mulf %33, %34 : vector<8x128xf32>
    %c0_26 = arith.constant 0 : index
    %c0_27 = arith.constant 0 : index
    %36 = vector.load %arg4[%c0_26, %c0_27] : memref<8x128xf32, #tpu.memory_space<vmem>>, vector<8x128xf32>
    tpu.vector_store %arg4[%c0_26, %c0_27], %35 {strides = array<i32>} : memref<8x128xf32, #tpu.memory_space<vmem>>, vector<8x128xf32>,
    return
  }
  func.func @transform_0(%arg0: i32) -> (i32, i32) {
    %c0_i32 = arith.constant 0 : i32
    %c0_i32_0 = arith.constant 0 : i32
    return %arg0, %c0_i32 : i32, i32
  }
  func.func @transform_1(%arg0: i32) -> (i32, i32) {
    %c0_i32 = arith.constant 0 : i32
    %c0_i32_0 = arith.constant 0 : i32
    %c0_i32_1 = arith.constant 0 : i32
    return %c0_i32, %c0_i32_0 : i32, i32
  }
  func.func @transform_2(%arg0: i32) -> (i32, i32) {
    %c0_i32 = arith.constant 0 : i32
    %c0_i32_0 = arith.constant 0 : i32
    %c0_i32_1 = arith.constant 0 : i32
    return %c0_i32, %c0_i32_0 : i32, i32
  }
  func.func @transform_3(%arg0: i32) -> (i32, i32) {
    %c0_i32 = arith.constant 0 : i32
    %c0_i32_0 = arith.constant 0 : i32
    return %arg0, %c0_i32 : i32, i32
  }
}

module attributes {stable_mosaic.version = 11 : i64} {
  func.func @_bilstm_kernel(%arg0: i32, %arg1: memref<6x8x128xf32, #tpu.memory_space<vmem>>, %arg2: memref<128x1024xbf16, #tpu.memory_space<vmem>>, %arg3: memref<1x1024xf32, #tpu.memory_space<vmem>>, %arg4: memref<128x512xbf16, #tpu.memory_space<vmem>>, %arg5: memref<128x512xbf16, #tpu.memory_space<vmem>>, %arg6: memref<6x8x128xf32, #tpu.memory_space<vmem>>, %arg7: memref<6x8x128xf32, #tpu.memory_space<vmem>>) attributes {dimension_semantics = [#tpu.dimension_semantics<parallel>], iteration_bounds = array<i64: 1>, scalar_prefetch = 0 : i64, scratch_operands = 0 : i64, tpu.core_type = #tpu.core_type<tc>, window_params = [{transform_indices = @transform_0, window_bounds = array<i64: 6, 8, 128>}, {pipeline_mode = #tpu.pipeline_mode<synchronous>, transform_indices = @transform_1, window_bounds = array<i64: 128, 1024>}, {pipeline_mode = #tpu.pipeline_mode<synchronous>, transform_indices = @transform_2, window_bounds = array<i64: 1, 1024>}, {pipeline_mode = #tpu.pipeline_mode<synchronous>, transform_indices = @transform_3, window_bounds = array<i64: 128, 512>}, {pipeline_mode = #tpu.pipeline_mode<synchronous>, transform_indices = @transform_4, window_bounds = array<i64: 128, 512>}, {transform_indices = @transform_5, window_bounds = array<i64: 6, 8, 128>}, {transform_indices = @transform_6, window_bounds = array<i64: 6, 8, 128>}]} {
    %c0 = arith.constant 0 : index
    %c0_0 = arith.constant 0 : index
    %c0_1 = arith.constant 0 : index
    %0 = vector.load %arg1[%c0, %c0_0, %c0_1] : memref<6x8x128xf32, #tpu.memory_space<vmem>>, vector<6x8x128xf32>
    %1 = vector.shape_cast %0 : vector<6x8x128xf32> to vector<48x128xf32>
    %2 = arith.truncf %1 : vector<48x128xf32> to vector<48x128xbf16>
    %c0_2 = arith.constant 0 : index
    %c0_3 = arith.constant 0 : index
    %3 = vector.load %arg2[%c0_2, %c0_3] : memref<128x1024xbf16, #tpu.memory_space<vmem>>, vector<128x1024xbf16>
    %cst = arith.constant dense<0.000000e+00> : vector<48x1024xf32>
    %4 = tpu.matmul %2, %3, %cst {dimension_numbers = #tpu.dot_dimension_numbers<[1], [0], [0], [1], [0, 0, 1, 1], [], []>} : vector<48x128xbf16>, vector<128x1024xbf16>, vector<48x1024xf32> -> vector<48x1024xf32>
    %c0_4 = arith.constant 0 : index
    %c0_5 = arith.constant 0 : index
    %5 = vector.load %arg3[%c0_4, %c0_5] : memref<1x1024xf32, #tpu.memory_space<vmem>>, vector<1x1024xf32>
    %6 = vector.broadcast %5 : vector<1x1024xf32> to vector<48x1024xf32>
    %7 = arith.addf %4, %6 : vector<48x1024xf32>
    %c0_6 = arith.constant 0 : index
    %c0_7 = arith.constant 0 : index
    %8 = vector.load %arg4[%c0_6, %c0_7] : memref<128x512xbf16, #tpu.memory_space<vmem>>, vector<128x512xbf16>
    %c0_8 = arith.constant 0 : index
    %c0_9 = arith.constant 0 : index
    %9 = vector.load %arg5[%c0_8, %c0_9] : memref<128x512xbf16, #tpu.memory_space<vmem>>, vector<128x512xbf16>
    %cst_10 = arith.constant 0.000000e+00 : f32
    %10 = vector.broadcast %cst_10 : f32 to vector<8x128xf32>
    %cst_11 = arith.constant 0.000000e+00 : f32
    %11 = vector.broadcast %cst_11 : f32 to vector<8x128xf32>
    %12 = vector.extract_strided_slice %7 {offsets = [0, 0], sizes = [8, 512], strides = [1, 1]} : vector<48x1024xf32> to vector<8x512xf32>
    %13 = arith.truncf %10 : vector<8x128xf32> to vector<8x128xbf16>
    %cst_12 = arith.constant dense<0.000000e+00> : vector<8x512xf32>
    %14 = tpu.matmul %13, %8, %cst_12 {dimension_numbers = #tpu.dot_dimension_numbers<[1], [0], [0], [1], [0, 0, 1, 1], [], []>} : vector<8x128xbf16>, vector<128x512xbf16>, vector<8x512xf32> -> vector<8x512xf32>
    %15 = arith.addf %12, %14 : vector<8x512xf32>
    %16 = vector.extract_strided_slice %15 {offsets = [0, 0], sizes = [8, 128], strides = [1, 1]} : vector<8x512xf32> to vector<8x128xf32>
    %17 = arith.negf %16 : vector<8x128xf32>
    %18 = math.exp %17 : vector<8x128xf32>
    %cst_13 = arith.constant 1.000000e+00 : f32
    %19 = vector.broadcast %cst_13 : f32 to vector<8x128xf32>
    %20 = arith.addf %19, %18 : vector<8x128xf32>
    %21 = arith.divf %19, %20 : vector<8x128xf32>
    %22 = vector.extract_strided_slice %15 {offsets = [0, 128], sizes = [8, 128], strides = [1, 1]} : vector<8x512xf32> to vector<8x128xf32>
    %23 = arith.negf %22 : vector<8x128xf32>
    %24 = math.exp %23 : vector<8x128xf32>
    %cst_14 = arith.constant 1.000000e+00 : f32
    %25 = vector.broadcast %cst_14 : f32 to vector<8x128xf32>
    %26 = arith.addf %25, %24 : vector<8x128xf32>
    %27 = arith.divf %25, %26 : vector<8x128xf32>
    %28 = vector.extract_strided_slice %15 {offsets = [0, 256], sizes = [8, 128], strides = [1, 1]} : vector<8x512xf32> to vector<8x128xf32>
    %29 = math.tanh %28 : vector<8x128xf32>
    %30 = vector.extract_strided_slice %15 {offsets = [0, 384], sizes = [8, 128], strides = [1, 1]} : vector<8x512xf32> to vector<8x128xf32>
    %31 = arith.negf %30 : vector<8x128xf32>
    %32 = math.exp %31 : vector<8x128xf32>
    %cst_15 = arith.constant 1.000000e+00 : f32
    %33 = vector.broadcast %cst_15 : f32 to vector<8x128xf32>
    %34 = arith.addf %33, %32 : vector<8x128xf32>
    %35 = arith.divf %33, %34 : vector<8x128xf32>
    %36 = arith.mulf %27, %11 : vector<8x128xf32>
    %37 = arith.mulf %21, %29 : vector<8x128xf32>
    %38 = arith.addf %36, %37 : vector<8x128xf32>
    %39 = math.tanh %38 : vector<8x128xf32>
    %40 = arith.mulf %35, %39 : vector<8x128xf32>
    %c0_16 = arith.constant 0 : index
    %c0_17 = arith.constant 0 : index
    %c0_18 = arith.constant 0 : index
    %41 = vector.load %arg6[%c0_16, %c0_17, %c0_18] : memref<6x8x128xf32, #tpu.memory_space<vmem>>, vector<1x8x128xf32>
    %42 = vector.shape_cast %41 : vector<1x8x128xf32> to vector<8x128xf32>
    %43 = vector.shape_cast %40 : vector<8x128xf32> to vector<1x8x128xf32>
    tpu.vector_store %arg6[%c0_16, %c0_17, %c0_18], %43 {strides = array<i32>} : memref<6x8x128xf32, #tpu.memory_space<vmem>>, vector<1x8x128xf32>,
    %44 = vector.extract_strided_slice %7 {offsets = [8, 0], sizes = [8, 512], strides = [1, 1]} : vector<48x1024xf32> to vector<8x512xf32>
    %45 = arith.truncf %40 : vector<8x128xf32> to vector<8x128xbf16>
    %cst_19 = arith.constant dense<0.000000e+00> : vector<8x512xf32>
    %46 = tpu.matmul %45, %8, %cst_19 {dimension_numbers = #tpu.dot_dimension_numbers<[1], [0], [0], [1], [0, 0, 1, 1], [], []>} : vector<8x128xbf16>, vector<128x512xbf16>, vector<8x512xf32> -> vector<8x512xf32>
    %47 = arith.addf %44, %46 : vector<8x512xf32>
    %48 = vector.extract_strided_slice %47 {offsets = [0, 0], sizes = [8, 128], strides = [1, 1]} : vector<8x512xf32> to vector<8x128xf32>
    %49 = arith.negf %48 : vector<8x128xf32>
    %50 = math.exp %49 : vector<8x128xf32>
    %cst_20 = arith.constant 1.000000e+00 : f32
    %51 = vector.broadcast %cst_20 : f32 to vector<8x128xf32>
    %52 = arith.addf %51, %50 : vector<8x128xf32>
    %53 = arith.divf %51, %52 : vector<8x128xf32>
    %54 = vector.extract_strided_slice %47 {offsets = [0, 128], sizes = [8, 128], strides = [1, 1]} : vector<8x512xf32> to vector<8x128xf32>
    %55 = arith.negf %54 : vector<8x128xf32>
    %56 = math.exp %55 : vector<8x128xf32>
    %cst_21 = arith.constant 1.000000e+00 : f32
    %57 = vector.broadcast %cst_21 : f32 to vector<8x128xf32>
    %58 = arith.addf %57, %56 : vector<8x128xf32>
    %59 = arith.divf %57, %58 : vector<8x128xf32>
    %60 = vector.extract_strided_slice %47 {offsets = [0, 256], sizes = [8, 128], strides = [1, 1]} : vector<8x512xf32> to vector<8x128xf32>
    %61 = math.tanh %60 : vector<8x128xf32>
    %62 = vector.extract_strided_slice %47 {offsets = [0, 384], sizes = [8, 128], strides = [1, 1]} : vector<8x512xf32> to vector<8x128xf32>
    %63 = arith.negf %62 : vector<8x128xf32>
    %64 = math.exp %63 : vector<8x128xf32>
    %cst_22 = arith.constant 1.000000e+00 : f32
    %65 = vector.broadcast %cst_22 : f32 to vector<8x128xf32>
    %66 = arith.addf %65, %64 : vector<8x128xf32>
    %67 = arith.divf %65, %66 : vector<8x128xf32>
    %68 = arith.mulf %59, %38 : vector<8x128xf32>
    %69 = arith.mulf %53, %61 : vector<8x128xf32>
    %70 = arith.addf %68, %69 : vector<8x128xf32>
    %71 = math.tanh %70 : vector<8x128xf32>
    %72 = arith.mulf %67, %71 : vector<8x128xf32>
    %c1 = arith.constant 1 : index
    %c0_23 = arith.constant 0 : index
    %c0_24 = arith.constant 0 : index
    %73 = vector.load %arg6[%c1, %c0_23, %c0_24] : memref<6x8x128xf32, #tpu.memory_space<vmem>>, vector<1x8x128xf32>
    %74 = vector.shape_cast %73 : vector<1x8x128xf32> to vector<8x128xf32>
    %75 = vector.shape_cast %72 : vector<8x128xf32> to vector<1x8x128xf32>
    tpu.vector_store %arg6[%c1, %c0_23, %c0_24], %75 {strides = array<i32>} : memref<6x8x128xf32, #tpu.memory_space<vmem>>, vector<1x8x128xf32>,
    %76 = vector.extract_strided_slice %7 {offsets = [16, 0], sizes = [8, 512], strides = [1, 1]} : vector<48x1024xf32> to vector<8x512xf32>
    %77 = arith.truncf %72 : vector<8x128xf32> to vector<8x128xbf16>
    %cst_25 = arith.constant dense<0.000000e+00> : vector<8x512xf32>
    %78 = tpu.matmul %77, %8, %cst_25 {dimension_numbers = #tpu.dot_dimension_numbers<[1], [0], [0], [1], [0, 0, 1, 1], [], []>} : vector<8x128xbf16>, vector<128x512xbf16>, vector<8x512xf32> -> vector<8x512xf32>
    %79 = arith.addf %76, %78 : vector<8x512xf32>
    %80 = vector.extract_strided_slice %79 {offsets = [0, 0], sizes = [8, 128], strides = [1, 1]} : vector<8x512xf32> to vector<8x128xf32>
    %81 = arith.negf %80 : vector<8x128xf32>
    %82 = math.exp %81 : vector<8x128xf32>
    %cst_26 = arith.constant 1.000000e+00 : f32
    %83 = vector.broadcast %cst_26 : f32 to vector<8x128xf32>
    %84 = arith.addf %83, %82 : vector<8x128xf32>
    %85 = arith.divf %83, %84 : vector<8x128xf32>
    %86 = vector.extract_strided_slice %79 {offsets = [0, 128], sizes = [8, 128], strides = [1, 1]} : vector<8x512xf32> to vector<8x128xf32>
    %87 = arith.negf %86 : vector<8x128xf32>
    %88 = math.exp %87 : vector<8x128xf32>
    %cst_27 = arith.constant 1.000000e+00 : f32
    %89 = vector.broadcast %cst_27 : f32 to vector<8x128xf32>
    %90 = arith.addf %89, %88 : vector<8x128xf32>
    %91 = arith.divf %89, %90 : vector<8x128xf32>
    %92 = vector.extract_strided_slice %79 {offsets = [0, 256], sizes = [8, 128], strides = [1, 1]} : vector<8x512xf32> to vector<8x128xf32>
    %93 = math.tanh %92 : vector<8x128xf32>
    %94 = vector.extract_strided_slice %79 {offsets = [0, 384], sizes = [8, 128], strides = [1, 1]} : vector<8x512xf32> to vector<8x128xf32>
    %95 = arith.negf %94 : vector<8x128xf32>
    %96 = math.exp %95 : vector<8x128xf32>
    %cst_28 = arith.constant 1.000000e+00 : f32
    %97 = vector.broadcast %cst_28 : f32 to vector<8x128xf32>
    %98 = arith.addf %97, %96 : vector<8x128xf32>
    %99 = arith.divf %97, %98 : vector<8x128xf32>
    %100 = arith.mulf %91, %70 : vector<8x128xf32>
    %101 = arith.mulf %85, %93 : vector<8x128xf32>
    %102 = arith.addf %100, %101 : vector<8x128xf32>
    %103 = math.tanh %102 : vector<8x128xf32>
    %104 = arith.mulf %99, %103 : vector<8x128xf32>
    %c2 = arith.constant 2 : index
    %c0_29 = arith.constant 0 : index
    %c0_30 = arith.constant 0 : index
    %105 = vector.load %arg6[%c2, %c0_29, %c0_30] : memref<6x8x128xf32, #tpu.memory_space<vmem>>, vector<1x8x128xf32>
    %106 = vector.shape_cast %105 : vector<1x8x128xf32> to vector<8x128xf32>
    %107 = vector.shape_cast %104 : vector<8x128xf32> to vector<1x8x128xf32>
    tpu.vector_store %arg6[%c2, %c0_29, %c0_30], %107 {strides = array<i32>} : memref<6x8x128xf32, #tpu.memory_space<vmem>>, vector<1x8x128xf32>,
    %108 = vector.extract_strided_slice %7 {offsets = [24, 0], sizes = [8, 512], strides = [1, 1]} : vector<48x1024xf32> to vector<8x512xf32>
    %109 = arith.truncf %104 : vector<8x128xf32> to vector<8x128xbf16>
    %cst_31 = arith.constant dense<0.000000e+00> : vector<8x512xf32>
    %110 = tpu.matmul %109, %8, %cst_31 {dimension_numbers = #tpu.dot_dimension_numbers<[1], [0], [0], [1], [0, 0, 1, 1], [], []>} : vector<8x128xbf16>, vector<128x512xbf16>, vector<8x512xf32> -> vector<8x512xf32>
    %111 = arith.addf %108, %110 : vector<8x512xf32>
    %112 = vector.extract_strided_slice %111 {offsets = [0, 0], sizes = [8, 128], strides = [1, 1]} : vector<8x512xf32> to vector<8x128xf32>
    %113 = arith.negf %112 : vector<8x128xf32>
    %114 = math.exp %113 : vector<8x128xf32>
    %cst_32 = arith.constant 1.000000e+00 : f32
    %115 = vector.broadcast %cst_32 : f32 to vector<8x128xf32>
    %116 = arith.addf %115, %114 : vector<8x128xf32>
    %117 = arith.divf %115, %116 : vector<8x128xf32>
    %118 = vector.extract_strided_slice %111 {offsets = [0, 128], sizes = [8, 128], strides = [1, 1]} : vector<8x512xf32> to vector<8x128xf32>
    %119 = arith.negf %118 : vector<8x128xf32>
    %120 = math.exp %119 : vector<8x128xf32>
    %cst_33 = arith.constant 1.000000e+00 : f32
    %121 = vector.broadcast %cst_33 : f32 to vector<8x128xf32>
    %122 = arith.addf %121, %120 : vector<8x128xf32>
    %123 = arith.divf %121, %122 : vector<8x128xf32>
    %124 = vector.extract_strided_slice %111 {offsets = [0, 256], sizes = [8, 128], strides = [1, 1]} : vector<8x512xf32> to vector<8x128xf32>
    %125 = math.tanh %124 : vector<8x128xf32>
    %126 = vector.extract_strided_slice %111 {offsets = [0, 384], sizes = [8, 128], strides = [1, 1]} : vector<8x512xf32> to vector<8x128xf32>
    %127 = arith.negf %126 : vector<8x128xf32>
    %128 = math.exp %127 : vector<8x128xf32>
    %cst_34 = arith.constant 1.000000e+00 : f32
    %129 = vector.broadcast %cst_34 : f32 to vector<8x128xf32>
    %130 = arith.addf %129, %128 : vector<8x128xf32>
    %131 = arith.divf %129, %130 : vector<8x128xf32>
    %132 = arith.mulf %123, %102 : vector<8x128xf32>
    %133 = arith.mulf %117, %125 : vector<8x128xf32>
    %134 = arith.addf %132, %133 : vector<8x128xf32>
    %135 = math.tanh %134 : vector<8x128xf32>
    %136 = arith.mulf %131, %135 : vector<8x128xf32>
    %c3 = arith.constant 3 : index
    %c0_35 = arith.constant 0 : index
    %c0_36 = arith.constant 0 : index
    %137 = vector.load %arg6[%c3, %c0_35, %c0_36] : memref<6x8x128xf32, #tpu.memory_space<vmem>>, vector<1x8x128xf32>
    %138 = vector.shape_cast %137 : vector<1x8x128xf32> to vector<8x128xf32>
    %139 = vector.shape_cast %136 : vector<8x128xf32> to vector<1x8x128xf32>
    tpu.vector_store %arg6[%c3, %c0_35, %c0_36], %139 {strides = array<i32>} : memref<6x8x128xf32, #tpu.memory_space<vmem>>, vector<1x8x128xf32>,
    %140 = vector.extract_strided_slice %7 {offsets = [32, 0], sizes = [8, 512], strides = [1, 1]} : vector<48x1024xf32> to vector<8x512xf32>
    %141 = arith.truncf %136 : vector<8x128xf32> to vector<8x128xbf16>
    %cst_37 = arith.constant dense<0.000000e+00> : vector<8x512xf32>
    %142 = tpu.matmul %141, %8, %cst_37 {dimension_numbers = #tpu.dot_dimension_numbers<[1], [0], [0], [1], [0, 0, 1, 1], [], []>} : vector<8x128xbf16>, vector<128x512xbf16>, vector<8x512xf32> -> vector<8x512xf32>
    %143 = arith.addf %140, %142 : vector<8x512xf32>
    %144 = vector.extract_strided_slice %143 {offsets = [0, 0], sizes = [8, 128], strides = [1, 1]} : vector<8x512xf32> to vector<8x128xf32>
    %145 = arith.negf %144 : vector<8x128xf32>
    %146 = math.exp %145 : vector<8x128xf32>
    %cst_38 = arith.constant 1.000000e+00 : f32
    %147 = vector.broadcast %cst_38 : f32 to vector<8x128xf32>
    %148 = arith.addf %147, %146 : vector<8x128xf32>
    %149 = arith.divf %147, %148 : vector<8x128xf32>
    %150 = vector.extract_strided_slice %143 {offsets = [0, 128], sizes = [8, 128], strides = [1, 1]} : vector<8x512xf32> to vector<8x128xf32>
    %151 = arith.negf %150 : vector<8x128xf32>
    %152 = math.exp %151 : vector<8x128xf32>
    %cst_39 = arith.constant 1.000000e+00 : f32
    %153 = vector.broadcast %cst_39 : f32 to vector<8x128xf32>
    %154 = arith.addf %153, %152 : vector<8x128xf32>
    %155 = arith.divf %153, %154 : vector<8x128xf32>
    %156 = vector.extract_strided_slice %143 {offsets = [0, 256], sizes = [8, 128], strides = [1, 1]} : vector<8x512xf32> to vector<8x128xf32>
    %157 = math.tanh %156 : vector<8x128xf32>
    %158 = vector.extract_strided_slice %143 {offsets = [0, 384], sizes = [8, 128], strides = [1, 1]} : vector<8x512xf32> to vector<8x128xf32>
    %159 = arith.negf %158 : vector<8x128xf32>
    %160 = math.exp %159 : vector<8x128xf32>
    %cst_40 = arith.constant 1.000000e+00 : f32
    %161 = vector.broadcast %cst_40 : f32 to vector<8x128xf32>
    %162 = arith.addf %161, %160 : vector<8x128xf32>
    %163 = arith.divf %161, %162 : vector<8x128xf32>
    %164 = arith.mulf %155, %134 : vector<8x128xf32>
    %165 = arith.mulf %149, %157 : vector<8x128xf32>
    %166 = arith.addf %164, %165 : vector<8x128xf32>
    %167 = math.tanh %166 : vector<8x128xf32>
    %168 = arith.mulf %163, %167 : vector<8x128xf32>
    %c4 = arith.constant 4 : index
    %c0_41 = arith.constant 0 : index
    %c0_42 = arith.constant 0 : index
    %169 = vector.load %arg6[%c4, %c0_41, %c0_42] : memref<6x8x128xf32, #tpu.memory_space<vmem>>, vector<1x8x128xf32>
    %170 = vector.shape_cast %169 : vector<1x8x128xf32> to vector<8x128xf32>
    %171 = vector.shape_cast %168 : vector<8x128xf32> to vector<1x8x128xf32>
    tpu.vector_store %arg6[%c4, %c0_41, %c0_42], %171 {strides = array<i32>} : memref<6x8x128xf32, #tpu.memory_space<vmem>>, vector<1x8x128xf32>,
    %172 = vector.extract_strided_slice %7 {offsets = [40, 0], sizes = [8, 512], strides = [1, 1]} : vector<48x1024xf32> to vector<8x512xf32>
    %173 = arith.truncf %168 : vector<8x128xf32> to vector<8x128xbf16>
    %cst_43 = arith.constant dense<0.000000e+00> : vector<8x512xf32>
    %174 = tpu.matmul %173, %8, %cst_43 {dimension_numbers = #tpu.dot_dimension_numbers<[1], [0], [0], [1], [0, 0, 1, 1], [], []>} : vector<8x128xbf16>, vector<128x512xbf16>, vector<8x512xf32> -> vector<8x512xf32>
    %175 = arith.addf %172, %174 : vector<8x512xf32>
    %176 = vector.extract_strided_slice %175 {offsets = [0, 0], sizes = [8, 128], strides = [1, 1]} : vector<8x512xf32> to vector<8x128xf32>
    %177 = arith.negf %176 : vector<8x128xf32>
    %178 = math.exp %177 : vector<8x128xf32>
    %cst_44 = arith.constant 1.000000e+00 : f32
    %179 = vector.broadcast %cst_44 : f32 to vector<8x128xf32>
    %180 = arith.addf %179, %178 : vector<8x128xf32>
    %181 = arith.divf %179, %180 : vector<8x128xf32>
    %182 = vector.extract_strided_slice %175 {offsets = [0, 128], sizes = [8, 128], strides = [1, 1]} : vector<8x512xf32> to vector<8x128xf32>
    %183 = arith.negf %182 : vector<8x128xf32>
    %184 = math.exp %183 : vector<8x128xf32>
    %cst_45 = arith.constant 1.000000e+00 : f32
    %185 = vector.broadcast %cst_45 : f32 to vector<8x128xf32>
    %186 = arith.addf %185, %184 : vector<8x128xf32>
    %187 = arith.divf %185, %186 : vector<8x128xf32>
    %188 = vector.extract_strided_slice %175 {offsets = [0, 256], sizes = [8, 128], strides = [1, 1]} : vector<8x512xf32> to vector<8x128xf32>
    %189 = math.tanh %188 : vector<8x128xf32>
    %190 = vector.extract_strided_slice %175 {offsets = [0, 384], sizes = [8, 128], strides = [1, 1]} : vector<8x512xf32> to vector<8x128xf32>
    %191 = arith.negf %190 : vector<8x128xf32>
    %192 = math.exp %191 : vector<8x128xf32>
    %cst_46 = arith.constant 1.000000e+00 : f32
    %193 = vector.broadcast %cst_46 : f32 to vector<8x128xf32>
    %194 = arith.addf %193, %192 : vector<8x128xf32>
    %195 = arith.divf %193, %194 : vector<8x128xf32>
    %196 = arith.mulf %187, %166 : vector<8x128xf32>
    %197 = arith.mulf %181, %189 : vector<8x128xf32>
    %198 = arith.addf %196, %197 : vector<8x128xf32>
    %199 = math.tanh %198 : vector<8x128xf32>
    %200 = arith.mulf %195, %199 : vector<8x128xf32>
    %c5 = arith.constant 5 : index
    %c0_47 = arith.constant 0 : index
    %c0_48 = arith.constant 0 : index
    %201 = vector.load %arg6[%c5, %c0_47, %c0_48] : memref<6x8x128xf32, #tpu.memory_space<vmem>>, vector<1x8x128xf32>
    %202 = vector.shape_cast %201 : vector<1x8x128xf32> to vector<8x128xf32>
    %203 = vector.shape_cast %200 : vector<8x128xf32> to vector<1x8x128xf32>
    tpu.vector_store %arg6[%c5, %c0_47, %c0_48], %203 {strides = array<i32>} : memref<6x8x128xf32, #tpu.memory_space<vmem>>, vector<1x8x128xf32>,
    %cst_49 = arith.constant 0.000000e+00 : f32
    %204 = vector.broadcast %cst_49 : f32 to vector<8x128xf32>
    %cst_50 = arith.constant 0.000000e+00 : f32
    %205 = vector.broadcast %cst_50 : f32 to vector<8x128xf32>
    %206 = vector.extract_strided_slice %7 {offsets = [40, 512], sizes = [8, 512], strides = [1, 1]} : vector<48x1024xf32> to vector<8x512xf32>
    %207 = arith.truncf %204 : vector<8x128xf32> to vector<8x128xbf16>
    %cst_51 = arith.constant dense<0.000000e+00> : vector<8x512xf32>
    %208 = tpu.matmul %207, %9, %cst_51 {dimension_numbers = #tpu.dot_dimension_numbers<[1], [0], [0], [1], [0, 0, 1, 1], [], []>} : vector<8x128xbf16>, vector<128x512xbf16>, vector<8x512xf32> -> vector<8x512xf32>
    %209 = arith.addf %206, %208 : vector<8x512xf32>
    %210 = vector.extract_strided_slice %209 {offsets = [0, 0], sizes = [8, 128], strides = [1, 1]} : vector<8x512xf32> to vector<8x128xf32>
    %211 = arith.negf %210 : vector<8x128xf32>
    %212 = math.exp %211 : vector<8x128xf32>
    %cst_52 = arith.constant 1.000000e+00 : f32
    %213 = vector.broadcast %cst_52 : f32 to vector<8x128xf32>
    %214 = arith.addf %213, %212 : vector<8x128xf32>
    %215 = arith.divf %213, %214 : vector<8x128xf32>
    %216 = vector.extract_strided_slice %209 {offsets = [0, 128], sizes = [8, 128], strides = [1, 1]} : vector<8x512xf32> to vector<8x128xf32>
    %217 = arith.negf %216 : vector<8x128xf32>
    %218 = math.exp %217 : vector<8x128xf32>
    %cst_53 = arith.constant 1.000000e+00 : f32
    %219 = vector.broadcast %cst_53 : f32 to vector<8x128xf32>
    %220 = arith.addf %219, %218 : vector<8x128xf32>
    %221 = arith.divf %219, %220 : vector<8x128xf32>
    %222 = vector.extract_strided_slice %209 {offsets = [0, 256], sizes = [8, 128], strides = [1, 1]} : vector<8x512xf32> to vector<8x128xf32>
    %223 = math.tanh %222 : vector<8x128xf32>
    %224 = vector.extract_strided_slice %209 {offsets = [0, 384], sizes = [8, 128], strides = [1, 1]} : vector<8x512xf32> to vector<8x128xf32>
    %225 = arith.negf %224 : vector<8x128xf32>
    %226 = math.exp %225 : vector<8x128xf32>
    %cst_54 = arith.constant 1.000000e+00 : f32
    %227 = vector.broadcast %cst_54 : f32 to vector<8x128xf32>
    %228 = arith.addf %227, %226 : vector<8x128xf32>
    %229 = arith.divf %227, %228 : vector<8x128xf32>
    %230 = arith.mulf %221, %205 : vector<8x128xf32>
    %231 = arith.mulf %215, %223 : vector<8x128xf32>
    %232 = arith.addf %230, %231 : vector<8x128xf32>
    %233 = math.tanh %232 : vector<8x128xf32>
    %234 = arith.mulf %229, %233 : vector<8x128xf32>
    %c5_55 = arith.constant 5 : index
    %c0_56 = arith.constant 0 : index
    %c0_57 = arith.constant 0 : index
    %235 = vector.load %arg7[%c5_55, %c0_56, %c0_57] : memref<6x8x128xf32, #tpu.memory_space<vmem>>, vector<1x8x128xf32>
    %236 = vector.shape_cast %235 : vector<1x8x128xf32> to vector<8x128xf32>
    %237 = vector.shape_cast %234 : vector<8x128xf32> to vector<1x8x128xf32>
    tpu.vector_store %arg7[%c5_55, %c0_56, %c0_57], %237 {strides = array<i32>} : memref<6x8x128xf32, #tpu.memory_space<vmem>>, vector<1x8x128xf32>,
    %238 = vector.extract_strided_slice %7 {offsets = [32, 512], sizes = [8, 512], strides = [1, 1]} : vector<48x1024xf32> to vector<8x512xf32>
    %239 = arith.truncf %234 : vector<8x128xf32> to vector<8x128xbf16>
    %cst_58 = arith.constant dense<0.000000e+00> : vector<8x512xf32>
    %240 = tpu.matmul %239, %9, %cst_58 {dimension_numbers = #tpu.dot_dimension_numbers<[1], [0], [0], [1], [0, 0, 1, 1], [], []>} : vector<8x128xbf16>, vector<128x512xbf16>, vector<8x512xf32> -> vector<8x512xf32>
    %241 = arith.addf %238, %240 : vector<8x512xf32>
    %242 = vector.extract_strided_slice %241 {offsets = [0, 0], sizes = [8, 128], strides = [1, 1]} : vector<8x512xf32> to vector<8x128xf32>
    %243 = arith.negf %242 : vector<8x128xf32>
    %244 = math.exp %243 : vector<8x128xf32>
    %cst_59 = arith.constant 1.000000e+00 : f32
    %245 = vector.broadcast %cst_59 : f32 to vector<8x128xf32>
    %246 = arith.addf %245, %244 : vector<8x128xf32>
    %247 = arith.divf %245, %246 : vector<8x128xf32>
    %248 = vector.extract_strided_slice %241 {offsets = [0, 128], sizes = [8, 128], strides = [1, 1]} : vector<8x512xf32> to vector<8x128xf32>
    %249 = arith.negf %248 : vector<8x128xf32>
    %250 = math.exp %249 : vector<8x128xf32>
    %cst_60 = arith.constant 1.000000e+00 : f32
    %251 = vector.broadcast %cst_60 : f32 to vector<8x128xf32>
    %252 = arith.addf %251, %250 : vector<8x128xf32>
    %253 = arith.divf %251, %252 : vector<8x128xf32>
    %254 = vector.extract_strided_slice %241 {offsets = [0, 256], sizes = [8, 128], strides = [1, 1]} : vector<8x512xf32> to vector<8x128xf32>
    %255 = math.tanh %254 : vector<8x128xf32>
    %256 = vector.extract_strided_slice %241 {offsets = [0, 384], sizes = [8, 128], strides = [1, 1]} : vector<8x512xf32> to vector<8x128xf32>
    %257 = arith.negf %256 : vector<8x128xf32>
    %258 = math.exp %257 : vector<8x128xf32>
    %cst_61 = arith.constant 1.000000e+00 : f32
    %259 = vector.broadcast %cst_61 : f32 to vector<8x128xf32>
    %260 = arith.addf %259, %258 : vector<8x128xf32>
    %261 = arith.divf %259, %260 : vector<8x128xf32>
    %262 = arith.mulf %253, %232 : vector<8x128xf32>
    %263 = arith.mulf %247, %255 : vector<8x128xf32>
    %264 = arith.addf %262, %263 : vector<8x128xf32>
    %265 = math.tanh %264 : vector<8x128xf32>
    %266 = arith.mulf %261, %265 : vector<8x128xf32>
    %c4_62 = arith.constant 4 : index
    %c0_63 = arith.constant 0 : index
    %c0_64 = arith.constant 0 : index
    %267 = vector.load %arg7[%c4_62, %c0_63, %c0_64] : memref<6x8x128xf32, #tpu.memory_space<vmem>>, vector<1x8x128xf32>
    %268 = vector.shape_cast %267 : vector<1x8x128xf32> to vector<8x128xf32>
    %269 = vector.shape_cast %266 : vector<8x128xf32> to vector<1x8x128xf32>
    tpu.vector_store %arg7[%c4_62, %c0_63, %c0_64], %269 {strides = array<i32>} : memref<6x8x128xf32, #tpu.memory_space<vmem>>, vector<1x8x128xf32>,
    %270 = vector.extract_strided_slice %7 {offsets = [24, 512], sizes = [8, 512], strides = [1, 1]} : vector<48x1024xf32> to vector<8x512xf32>
    %271 = arith.truncf %266 : vector<8x128xf32> to vector<8x128xbf16>
    %cst_65 = arith.constant dense<0.000000e+00> : vector<8x512xf32>
    %272 = tpu.matmul %271, %9, %cst_65 {dimension_numbers = #tpu.dot_dimension_numbers<[1], [0], [0], [1], [0, 0, 1, 1], [], []>} : vector<8x128xbf16>, vector<128x512xbf16>, vector<8x512xf32> -> vector<8x512xf32>
    %273 = arith.addf %270, %272 : vector<8x512xf32>
    %274 = vector.extract_strided_slice %273 {offsets = [0, 0], sizes = [8, 128], strides = [1, 1]} : vector<8x512xf32> to vector<8x128xf32>
    %275 = arith.negf %274 : vector<8x128xf32>
    %276 = math.exp %275 : vector<8x128xf32>
    %cst_66 = arith.constant 1.000000e+00 : f32
    %277 = vector.broadcast %cst_66 : f32 to vector<8x128xf32>
    %278 = arith.addf %277, %276 : vector<8x128xf32>
    %279 = arith.divf %277, %278 : vector<8x128xf32>
    %280 = vector.extract_strided_slice %273 {offsets = [0, 128], sizes = [8, 128], strides = [1, 1]} : vector<8x512xf32> to vector<8x128xf32>
    %281 = arith.negf %280 : vector<8x128xf32>
    %282 = math.exp %281 : vector<8x128xf32>
    %cst_67 = arith.constant 1.000000e+00 : f32
    %283 = vector.broadcast %cst_67 : f32 to vector<8x128xf32>
    %284 = arith.addf %283, %282 : vector<8x128xf32>
    %285 = arith.divf %283, %284 : vector<8x128xf32>
    %286 = vector.extract_strided_slice %273 {offsets = [0, 256], sizes = [8, 128], strides = [1, 1]} : vector<8x512xf32> to vector<8x128xf32>
    %287 = math.tanh %286 : vector<8x128xf32>
    %288 = vector.extract_strided_slice %273 {offsets = [0, 384], sizes = [8, 128], strides = [1, 1]} : vector<8x512xf32> to vector<8x128xf32>
    %289 = arith.negf %288 : vector<8x128xf32>
    %290 = math.exp %289 : vector<8x128xf32>
    %cst_68 = arith.constant 1.000000e+00 : f32
    %291 = vector.broadcast %cst_68 : f32 to vector<8x128xf32>
    %292 = arith.addf %291, %290 : vector<8x128xf32>
    %293 = arith.divf %291, %292 : vector<8x128xf32>
    %294 = arith.mulf %285, %264 : vector<8x128xf32>
    %295 = arith.mulf %279, %287 : vector<8x128xf32>
    %296 = arith.addf %294, %295 : vector<8x128xf32>
    %297 = math.tanh %296 : vector<8x128xf32>
    %298 = arith.mulf %293, %297 : vector<8x128xf32>
    %c3_69 = arith.constant 3 : index
    %c0_70 = arith.constant 0 : index
    %c0_71 = arith.constant 0 : index
    %299 = vector.load %arg7[%c3_69, %c0_70, %c0_71] : memref<6x8x128xf32, #tpu.memory_space<vmem>>, vector<1x8x128xf32>
    %300 = vector.shape_cast %299 : vector<1x8x128xf32> to vector<8x128xf32>
    %301 = vector.shape_cast %298 : vector<8x128xf32> to vector<1x8x128xf32>
    tpu.vector_store %arg7[%c3_69, %c0_70, %c0_71], %301 {strides = array<i32>} : memref<6x8x128xf32, #tpu.memory_space<vmem>>, vector<1x8x128xf32>,
    %302 = vector.extract_strided_slice %7 {offsets = [16, 512], sizes = [8, 512], strides = [1, 1]} : vector<48x1024xf32> to vector<8x512xf32>
    %303 = arith.truncf %298 : vector<8x128xf32> to vector<8x128xbf16>
    %cst_72 = arith.constant dense<0.000000e+00> : vector<8x512xf32>
    %304 = tpu.matmul %303, %9, %cst_72 {dimension_numbers = #tpu.dot_dimension_numbers<[1], [0], [0], [1], [0, 0, 1, 1], [], []>} : vector<8x128xbf16>, vector<128x512xbf16>, vector<8x512xf32> -> vector<8x512xf32>
    %305 = arith.addf %302, %304 : vector<8x512xf32>
    %306 = vector.extract_strided_slice %305 {offsets = [0, 0], sizes = [8, 128], strides = [1, 1]} : vector<8x512xf32> to vector<8x128xf32>
    %307 = arith.negf %306 : vector<8x128xf32>
    %308 = math.exp %307 : vector<8x128xf32>
    %cst_73 = arith.constant 1.000000e+00 : f32
    %309 = vector.broadcast %cst_73 : f32 to vector<8x128xf32>
    %310 = arith.addf %309, %308 : vector<8x128xf32>
    %311 = arith.divf %309, %310 : vector<8x128xf32>
    %312 = vector.extract_strided_slice %305 {offsets = [0, 128], sizes = [8, 128], strides = [1, 1]} : vector<8x512xf32> to vector<8x128xf32>
    %313 = arith.negf %312 : vector<8x128xf32>
    %314 = math.exp %313 : vector<8x128xf32>
    %cst_74 = arith.constant 1.000000e+00 : f32
    %315 = vector.broadcast %cst_74 : f32 to vector<8x128xf32>
    %316 = arith.addf %315, %314 : vector<8x128xf32>
    %317 = arith.divf %315, %316 : vector<8x128xf32>
    %318 = vector.extract_strided_slice %305 {offsets = [0, 256], sizes = [8, 128], strides = [1, 1]} : vector<8x512xf32> to vector<8x128xf32>
    %319 = math.tanh %318 : vector<8x128xf32>
    %320 = vector.extract_strided_slice %305 {offsets = [0, 384], sizes = [8, 128], strides = [1, 1]} : vector<8x512xf32> to vector<8x128xf32>
    %321 = arith.negf %320 : vector<8x128xf32>
    %322 = math.exp %321 : vector<8x128xf32>
    %cst_75 = arith.constant 1.000000e+00 : f32
    %323 = vector.broadcast %cst_75 : f32 to vector<8x128xf32>
    %324 = arith.addf %323, %322 : vector<8x128xf32>
    %325 = arith.divf %323, %324 : vector<8x128xf32>
    %326 = arith.mulf %317, %296 : vector<8x128xf32>
    %327 = arith.mulf %311, %319 : vector<8x128xf32>
    %328 = arith.addf %326, %327 : vector<8x128xf32>
    %329 = math.tanh %328 : vector<8x128xf32>
    %330 = arith.mulf %325, %329 : vector<8x128xf32>
    %c2_76 = arith.constant 2 : index
    %c0_77 = arith.constant 0 : index
    %c0_78 = arith.constant 0 : index
    %331 = vector.load %arg7[%c2_76, %c0_77, %c0_78] : memref<6x8x128xf32, #tpu.memory_space<vmem>>, vector<1x8x128xf32>
    %332 = vector.shape_cast %331 : vector<1x8x128xf32> to vector<8x128xf32>
    %333 = vector.shape_cast %330 : vector<8x128xf32> to vector<1x8x128xf32>
    tpu.vector_store %arg7[%c2_76, %c0_77, %c0_78], %333 {strides = array<i32>} : memref<6x8x128xf32, #tpu.memory_space<vmem>>, vector<1x8x128xf32>,
    %334 = vector.extract_strided_slice %7 {offsets = [8, 512], sizes = [8, 512], strides = [1, 1]} : vector<48x1024xf32> to vector<8x512xf32>
    %335 = arith.truncf %330 : vector<8x128xf32> to vector<8x128xbf16>
    %cst_79 = arith.constant dense<0.000000e+00> : vector<8x512xf32>
    %336 = tpu.matmul %335, %9, %cst_79 {dimension_numbers = #tpu.dot_dimension_numbers<[1], [0], [0], [1], [0, 0, 1, 1], [], []>} : vector<8x128xbf16>, vector<128x512xbf16>, vector<8x512xf32> -> vector<8x512xf32>
    %337 = arith.addf %334, %336 : vector<8x512xf32>
    %338 = vector.extract_strided_slice %337 {offsets = [0, 0], sizes = [8, 128], strides = [1, 1]} : vector<8x512xf32> to vector<8x128xf32>
    %339 = arith.negf %338 : vector<8x128xf32>
    %340 = math.exp %339 : vector<8x128xf32>
    %cst_80 = arith.constant 1.000000e+00 : f32
    %341 = vector.broadcast %cst_80 : f32 to vector<8x128xf32>
    %342 = arith.addf %341, %340 : vector<8x128xf32>
    %343 = arith.divf %341, %342 : vector<8x128xf32>
    %344 = vector.extract_strided_slice %337 {offsets = [0, 128], sizes = [8, 128], strides = [1, 1]} : vector<8x512xf32> to vector<8x128xf32>
    %345 = arith.negf %344 : vector<8x128xf32>
    %346 = math.exp %345 : vector<8x128xf32>
    %cst_81 = arith.constant 1.000000e+00 : f32
    %347 = vector.broadcast %cst_81 : f32 to vector<8x128xf32>
    %348 = arith.addf %347, %346 : vector<8x128xf32>
    %349 = arith.divf %347, %348 : vector<8x128xf32>
    %350 = vector.extract_strided_slice %337 {offsets = [0, 256], sizes = [8, 128], strides = [1, 1]} : vector<8x512xf32> to vector<8x128xf32>
    %351 = math.tanh %350 : vector<8x128xf32>
    %352 = vector.extract_strided_slice %337 {offsets = [0, 384], sizes = [8, 128], strides = [1, 1]} : vector<8x512xf32> to vector<8x128xf32>
    %353 = arith.negf %352 : vector<8x128xf32>
    %354 = math.exp %353 : vector<8x128xf32>
    %cst_82 = arith.constant 1.000000e+00 : f32
    %355 = vector.broadcast %cst_82 : f32 to vector<8x128xf32>
    %356 = arith.addf %355, %354 : vector<8x128xf32>
    %357 = arith.divf %355, %356 : vector<8x128xf32>
    %358 = arith.mulf %349, %328 : vector<8x128xf32>
    %359 = arith.mulf %343, %351 : vector<8x128xf32>
    %360 = arith.addf %358, %359 : vector<8x128xf32>
    %361 = math.tanh %360 : vector<8x128xf32>
    %362 = arith.mulf %357, %361 : vector<8x128xf32>
    %c1_83 = arith.constant 1 : index
    %c0_84 = arith.constant 0 : index
    %c0_85 = arith.constant 0 : index
    %363 = vector.load %arg7[%c1_83, %c0_84, %c0_85] : memref<6x8x128xf32, #tpu.memory_space<vmem>>, vector<1x8x128xf32>
    %364 = vector.shape_cast %363 : vector<1x8x128xf32> to vector<8x128xf32>
    %365 = vector.shape_cast %362 : vector<8x128xf32> to vector<1x8x128xf32>
    tpu.vector_store %arg7[%c1_83, %c0_84, %c0_85], %365 {strides = array<i32>} : memref<6x8x128xf32, #tpu.memory_space<vmem>>, vector<1x8x128xf32>,
    %366 = vector.extract_strided_slice %7 {offsets = [0, 512], sizes = [8, 512], strides = [1, 1]} : vector<48x1024xf32> to vector<8x512xf32>
    %367 = arith.truncf %362 : vector<8x128xf32> to vector<8x128xbf16>
    %cst_86 = arith.constant dense<0.000000e+00> : vector<8x512xf32>
    %368 = tpu.matmul %367, %9, %cst_86 {dimension_numbers = #tpu.dot_dimension_numbers<[1], [0], [0], [1], [0, 0, 1, 1], [], []>} : vector<8x128xbf16>, vector<128x512xbf16>, vector<8x512xf32> -> vector<8x512xf32>
    %369 = arith.addf %366, %368 : vector<8x512xf32>
    %370 = vector.extract_strided_slice %369 {offsets = [0, 0], sizes = [8, 128], strides = [1, 1]} : vector<8x512xf32> to vector<8x128xf32>
    %371 = arith.negf %370 : vector<8x128xf32>
    %372 = math.exp %371 : vector<8x128xf32>
    %cst_87 = arith.constant 1.000000e+00 : f32
    %373 = vector.broadcast %cst_87 : f32 to vector<8x128xf32>
    %374 = arith.addf %373, %372 : vector<8x128xf32>
    %375 = arith.divf %373, %374 : vector<8x128xf32>
    %376 = vector.extract_strided_slice %369 {offsets = [0, 128], sizes = [8, 128], strides = [1, 1]} : vector<8x512xf32> to vector<8x128xf32>
    %377 = arith.negf %376 : vector<8x128xf32>
    %378 = math.exp %377 : vector<8x128xf32>
    %cst_88 = arith.constant 1.000000e+00 : f32
    %379 = vector.broadcast %cst_88 : f32 to vector<8x128xf32>
    %380 = arith.addf %379, %378 : vector<8x128xf32>
    %381 = arith.divf %379, %380 : vector<8x128xf32>
    %382 = vector.extract_strided_slice %369 {offsets = [0, 256], sizes = [8, 128], strides = [1, 1]} : vector<8x512xf32> to vector<8x128xf32>
    %383 = math.tanh %382 : vector<8x128xf32>
    %384 = vector.extract_strided_slice %369 {offsets = [0, 384], sizes = [8, 128], strides = [1, 1]} : vector<8x512xf32> to vector<8x128xf32>
    %385 = arith.negf %384 : vector<8x128xf32>
    %386 = math.exp %385 : vector<8x128xf32>
    %cst_89 = arith.constant 1.000000e+00 : f32
    %387 = vector.broadcast %cst_89 : f32 to vector<8x128xf32>
    %388 = arith.addf %387, %386 : vector<8x128xf32>
    %389 = arith.divf %387, %388 : vector<8x128xf32>
    %390 = arith.mulf %381, %360 : vector<8x128xf32>
    %391 = arith.mulf %375, %383 : vector<8x128xf32>
    %392 = arith.addf %390, %391 : vector<8x128xf32>
    %393 = math.tanh %392 : vector<8x128xf32>
    %394 = arith.mulf %389, %393 : vector<8x128xf32>
    %c0_90 = arith.constant 0 : index
    %c0_91 = arith.constant 0 : index
    %c0_92 = arith.constant 0 : index
    %395 = vector.load %arg7[%c0_90, %c0_91, %c0_92] : memref<6x8x128xf32, #tpu.memory_space<vmem>>, vector<1x8x128xf32>
    %396 = vector.shape_cast %395 : vector<1x8x128xf32> to vector<8x128xf32>
    %397 = vector.shape_cast %394 : vector<8x128xf32> to vector<1x8x128xf32>
    tpu.vector_store %arg7[%c0_90, %c0_91, %c0_92], %397 {strides = array<i32>} : memref<6x8x128xf32, #tpu.memory_space<vmem>>, vector<1x8x128xf32>,
    return
  }
  func.func @transform_0(%arg0: i32) -> (i32, i32, i32) {
    %c0_i32 = arith.constant 0 : i32
    %c0_i32_0 = arith.constant 0 : i32
    %c0_i32_1 = arith.constant 0 : i32
    return %c0_i32, %arg0, %c0_i32_0 : i32, i32, i32
  }
  func.func @transform_1(%arg0: i32) -> (i32, i32) {
    %c0_i32 = arith.constant 0 : i32
    %c0_i32_0 = arith.constant 0 : i32
    %c0_i32_1 = arith.constant 0 : i32
    return %c0_i32, %c0_i32_0 : i32, i32
  }
  func.func @transform_2(%arg0: i32) -> (i32, i32) {
    %c0_i32 = arith.constant 0 : i32
    %c0_i32_0 = arith.constant 0 : i32
    %c0_i32_1 = arith.constant 0 : i32
    return %c0_i32, %c0_i32_0 : i32, i32
  }
  func.func @transform_3(%arg0: i32) -> (i32, i32) {
    %c0_i32 = arith.constant 0 : i32
    %c0_i32_0 = arith.constant 0 : i32
    %c0_i32_1 = arith.constant 0 : i32
    return %c0_i32, %c0_i32_0 : i32, i32
  }
  func.func @transform_4(%arg0: i32) -> (i32, i32) {
    %c0_i32 = arith.constant 0 : i32
    %c0_i32_0 = arith.constant 0 : i32
    %c0_i32_1 = arith.constant 0 : i32
    return %c0_i32, %c0_i32_0 : i32, i32
  }
  func.func @transform_5(%arg0: i32) -> (i32, i32, i32) {
    %c0_i32 = arith.constant 0 : i32
    %c0_i32_0 = arith.constant 0 : i32
    %c0_i32_1 = arith.constant 0 : i32
    return %c0_i32, %arg0, %c0_i32_0 : i32, i32, i32
  }
  func.func @transform_6(%arg0: i32) -> (i32, i32, i32) {
    %c0_i32 = arith.constant 0 : i32
    %c0_i32_0 = arith.constant 0 : i32
    %c0_i32_1 = arith.constant 0 : i32
    return %c0_i32, %arg0, %c0_i32_0 : i32, i32, i32
  }
}

module attributes {stable_mosaic.version = 11 : i64} {
  func.func @_head_kernel(%arg0: memref<6x8x128xf32, #tpu.memory_space<vmem>>, %arg1: memref<6x8x128xf32, #tpu.memory_space<vmem>>, %arg2: memref<8x129xf32, #tpu.memory_space<vmem>>, %arg3: memref<128x256xf32, #tpu.memory_space<vmem>>, %arg4: memref<128x256xf32, #tpu.memory_space<vmem>>, %arg5: memref<256x1xf32, #tpu.memory_space<vmem>>, %arg6: memref<128x256xf32, #tpu.memory_space<vmem>>, %arg7: memref<128x256xf32, #tpu.memory_space<vmem>>, %arg8: memref<1x256xf32, #tpu.memory_space<vmem>>, %arg9: memref<129x256xf32, #tpu.memory_space<vmem>>, %arg10: memref<1x256xf32, #tpu.memory_space<vmem>>, %arg11: memref<8x512xf32, #tpu.memory_space<vmem>>, %arg12: memref<8x8xf32, #tpu.memory_space<vmem>>) attributes {dimension_semantics = [], scalar_prefetch = 0 : i64, scratch_operands = 0 : i64, tpu.core_type = #tpu.core_type<tc>} {
    %c0 = arith.constant 0 : index
    %c0_0 = arith.constant 0 : index
    %c0_1 = arith.constant 0 : index
    %0 = vector.load %arg0[%c0, %c0_0, %c0_1] : memref<6x8x128xf32, #tpu.memory_space<vmem>>, vector<6x8x128xf32>
    %c0_2 = arith.constant 0 : index
    %c0_3 = arith.constant 0 : index
    %c0_4 = arith.constant 0 : index
    %1 = vector.load %arg1[%c0_2, %c0_3, %c0_4] : memref<6x8x128xf32, #tpu.memory_space<vmem>>, vector<6x8x128xf32>
    %2 = vector.shape_cast %0 : vector<6x8x128xf32> to vector<48x128xf32>
    %3 = vector.shape_cast %1 : vector<6x8x128xf32> to vector<48x128xf32>
    %c0_5 = arith.constant 0 : index
    %c0_6 = arith.constant 0 : index
    %4 = vector.load %arg3[%c0_5, %c0_6] : memref<128x256xf32, #tpu.memory_space<vmem>>, vector<128x256xf32>
    %cst = arith.constant dense<0.000000e+00> : vector<48x256xf32>
    %5 = tpu.matmul %2, %4, %cst {dimension_numbers = #tpu.dot_dimension_numbers<[1], [0], [0], [1], [0, 0, 1, 1], [], []>} : vector<48x128xf32>, vector<128x256xf32>, vector<48x256xf32> -> vector<48x256xf32>
    %c0_7 = arith.constant 0 : index
    %c0_8 = arith.constant 0 : index
    %6 = vector.load %arg4[%c0_7, %c0_8] : memref<128x256xf32, #tpu.memory_space<vmem>>, vector<128x256xf32>
    %cst_9 = arith.constant dense<0.000000e+00> : vector<48x256xf32>
    %7 = tpu.matmul %3, %6, %cst_9 {dimension_numbers = #tpu.dot_dimension_numbers<[1], [0], [0], [1], [0, 0, 1, 1], [], []>} : vector<48x128xf32>, vector<128x256xf32>, vector<48x256xf32> -> vector<48x256xf32>
    %8 = arith.addf %5, %7 : vector<48x256xf32>
    %9 = math.tanh %8 : vector<48x256xf32>
    %c0_10 = arith.constant 0 : index
    %c0_11 = arith.constant 0 : index
    %10 = vector.load %arg5[%c0_10, %c0_11] : memref<256x1xf32, #tpu.memory_space<vmem>>, vector<256x1xf32>
    %cst_12 = arith.constant dense<0.000000e+00> : vector<48x1xf32>
    %11 = tpu.matmul %9, %10, %cst_12 {dimension_numbers = #tpu.dot_dimension_numbers<[1], [0], [0], [1], [0, 0, 1, 1], [], []>} : vector<48x256xf32>, vector<256x1xf32>, vector<48x1xf32> -> vector<48x1xf32>
    %12 = vector.extract_strided_slice %11 {offsets = [0, 0], sizes = [8, 1], strides = [1, 1]} : vector<48x1xf32> to vector<8x1xf32>
    %13 = vector.extract_strided_slice %11 {offsets = [8, 0], sizes = [8, 1], strides = [1, 1]} : vector<48x1xf32> to vector<8x1xf32>
    %14 = vector.extract_strided_slice %11 {offsets = [16, 0], sizes = [8, 1], strides = [1, 1]} : vector<48x1xf32> to vector<8x1xf32>
    %15 = vector.extract_strided_slice %11 {offsets = [24, 0], sizes = [8, 1], strides = [1, 1]} : vector<48x1xf32> to vector<8x1xf32>
    %16 = vector.extract_strided_slice %11 {offsets = [32, 0], sizes = [8, 1], strides = [1, 1]} : vector<48x1xf32> to vector<8x1xf32>
    %17 = vector.extract_strided_slice %11 {offsets = [40, 0], sizes = [8, 1], strides = [1, 1]} : vector<48x1xf32> to vector<8x1xf32>
    %18 = arith.maximumf %12, %13 : vector<8x1xf32>
    %19 = arith.maximumf %18, %14 : vector<8x1xf32>
    %20 = arith.maximumf %19, %15 : vector<8x1xf32>
    %21 = arith.maximumf %20, %16 : vector<8x1xf32>
    %22 = arith.maximumf %21, %17 : vector<8x1xf32>
    %23 = arith.subf %12, %22 : vector<8x1xf32>
    %24 = math.exp %23 : vector<8x1xf32>
    %25 = arith.subf %13, %22 : vector<8x1xf32>
    %26 = math.exp %25 : vector<8x1xf32>
    %27 = arith.subf %14, %22 : vector<8x1xf32>
    %28 = math.exp %27 : vector<8x1xf32>
    %29 = arith.subf %15, %22 : vector<8x1xf32>
    %30 = math.exp %29 : vector<8x1xf32>
    %31 = arith.subf %16, %22 : vector<8x1xf32>
    %32 = math.exp %31 : vector<8x1xf32>
    %33 = arith.subf %17, %22 : vector<8x1xf32>
    %34 = math.exp %33 : vector<8x1xf32>
    %35 = arith.addf %24, %26 : vector<8x1xf32>
    %36 = arith.addf %35, %28 : vector<8x1xf32>
    %37 = arith.addf %36, %30 : vector<8x1xf32>
    %38 = arith.addf %37, %32 : vector<8x1xf32>
    %39 = arith.addf %38, %34 : vector<8x1xf32>
    %40 = vector.extract_strided_slice %2 {offsets = [0, 0], sizes = [8, 128], strides = [1, 1]} : vector<48x128xf32> to vector<8x128xf32>
    %41 = vector.broadcast %24 : vector<8x1xf32> to vector<8x128xf32>
    %42 = arith.mulf %40, %41 : vector<8x128xf32>
    %43 = vector.extract_strided_slice %3 {offsets = [0, 0], sizes = [8, 128], strides = [1, 1]} : vector<48x128xf32> to vector<8x128xf32>
    %44 = vector.broadcast %24 : vector<8x1xf32> to vector<8x128xf32>
    %45 = arith.mulf %43, %44 : vector<8x128xf32>
    %46 = vector.extract_strided_slice %2 {offsets = [8, 0], sizes = [8, 128], strides = [1, 1]} : vector<48x128xf32> to vector<8x128xf32>
    %47 = vector.broadcast %26 : vector<8x1xf32> to vector<8x128xf32>
    %48 = arith.mulf %46, %47 : vector<8x128xf32>
    %49 = arith.addf %42, %48 : vector<8x128xf32>
    %50 = vector.extract_strided_slice %3 {offsets = [8, 0], sizes = [8, 128], strides = [1, 1]} : vector<48x128xf32> to vector<8x128xf32>
    %51 = vector.broadcast %26 : vector<8x1xf32> to vector<8x128xf32>
    %52 = arith.mulf %50, %51 : vector<8x128xf32>
    %53 = arith.addf %45, %52 : vector<8x128xf32>
    %54 = vector.extract_strided_slice %2 {offsets = [16, 0], sizes = [8, 128], strides = [1, 1]} : vector<48x128xf32> to vector<8x128xf32>
    %55 = vector.broadcast %28 : vector<8x1xf32> to vector<8x128xf32>
    %56 = arith.mulf %54, %55 : vector<8x128xf32>
    %57 = arith.addf %49, %56 : vector<8x128xf32>
    %58 = vector.extract_strided_slice %3 {offsets = [16, 0], sizes = [8, 128], strides = [1, 1]} : vector<48x128xf32> to vector<8x128xf32>
    %59 = vector.broadcast %28 : vector<8x1xf32> to vector<8x128xf32>
    %60 = arith.mulf %58, %59 : vector<8x128xf32>
    %61 = arith.addf %53, %60 : vector<8x128xf32>
    %62 = vector.extract_strided_slice %2 {offsets = [24, 0], sizes = [8, 128], strides = [1, 1]} : vector<48x128xf32> to vector<8x128xf32>
    %63 = vector.broadcast %30 : vector<8x1xf32> to vector<8x128xf32>
    %64 = arith.mulf %62, %63 : vector<8x128xf32>
    %65 = arith.addf %57, %64 : vector<8x128xf32>
    %66 = vector.extract_strided_slice %3 {offsets = [24, 0], sizes = [8, 128], strides = [1, 1]} : vector<48x128xf32> to vector<8x128xf32>
    %67 = vector.broadcast %30 : vector<8x1xf32> to vector<8x128xf32>
    %68 = arith.mulf %66, %67 : vector<8x128xf32>
    %69 = arith.addf %61, %68 : vector<8x128xf32>
    %70 = vector.extract_strided_slice %2 {offsets = [32, 0], sizes = [8, 128], strides = [1, 1]} : vector<48x128xf32> to vector<8x128xf32>
    %71 = vector.broadcast %32 : vector<8x1xf32> to vector<8x128xf32>
    %72 = arith.mulf %70, %71 : vector<8x128xf32>
    %73 = arith.addf %65, %72 : vector<8x128xf32>
    %74 = vector.extract_strided_slice %3 {offsets = [32, 0], sizes = [8, 128], strides = [1, 1]} : vector<48x128xf32> to vector<8x128xf32>
    %75 = vector.broadcast %32 : vector<8x1xf32> to vector<8x128xf32>
    %76 = arith.mulf %74, %75 : vector<8x128xf32>
    %77 = arith.addf %69, %76 : vector<8x128xf32>
    %78 = vector.extract_strided_slice %2 {offsets = [40, 0], sizes = [8, 128], strides = [1, 1]} : vector<48x128xf32> to vector<8x128xf32>
    %79 = vector.broadcast %34 : vector<8x1xf32> to vector<8x128xf32>
    %80 = arith.mulf %78, %79 : vector<8x128xf32>
    %81 = arith.addf %73, %80 : vector<8x128xf32>
    %82 = vector.extract_strided_slice %3 {offsets = [40, 0], sizes = [8, 128], strides = [1, 1]} : vector<48x128xf32> to vector<8x128xf32>
    %83 = vector.broadcast %34 : vector<8x1xf32> to vector<8x128xf32>
    %84 = arith.mulf %82, %83 : vector<8x128xf32>
    %85 = arith.addf %77, %84 : vector<8x128xf32>
    %cst_13 = arith.constant 1.000000e+00 : f32
    %86 = vector.broadcast %cst_13 : f32 to vector<8x1xf32>
    %87 = arith.divf %86, %39 : vector<8x1xf32>
    %88 = vector.broadcast %87 : vector<8x1xf32> to vector<8x128xf32>
    %89 = arith.mulf %81, %88 : vector<8x128xf32>
    %90 = vector.broadcast %87 : vector<8x1xf32> to vector<8x128xf32>
    %91 = arith.mulf %85, %90 : vector<8x128xf32>
    %c0_14 = arith.constant 0 : index
    %c0_15 = arith.constant 0 : index
    %92 = vector.load %arg6[%c0_14, %c0_15] : memref<128x256xf32, #tpu.memory_space<vmem>>, vector<128x256xf32>
    %cst_16 = arith.constant dense<0.000000e+00> : vector<8x256xf32>
    %93 = tpu.matmul %89, %92, %cst_16 {dimension_numbers = #tpu.dot_dimension_numbers<[1], [0], [0], [1], [0, 0, 1, 1], [], []>} : vector<8x128xf32>, vector<128x256xf32>, vector<8x256xf32> -> vector<8x256xf32>
    %c0_17 = arith.constant 0 : index
    %c0_18 = arith.constant 0 : index
    %94 = vector.load %arg7[%c0_17, %c0_18] : memref<128x256xf32, #tpu.memory_space<vmem>>, vector<128x256xf32>
    %cst_19 = arith.constant dense<0.000000e+00> : vector<8x256xf32>
    %95 = tpu.matmul %91, %94, %cst_19 {dimension_numbers = #tpu.dot_dimension_numbers<[1], [0], [0], [1], [0, 0, 1, 1], [], []>} : vector<8x128xf32>, vector<128x256xf32>, vector<8x256xf32> -> vector<8x256xf32>
    %96 = arith.addf %93, %95 : vector<8x256xf32>
    %c0_20 = arith.constant 0 : index
    %c0_21 = arith.constant 0 : index
    %97 = vector.load %arg8[%c0_20, %c0_21] : memref<1x256xf32, #tpu.memory_space<vmem>>, vector<1x256xf32>
    %98 = vector.broadcast %97 : vector<1x256xf32> to vector<8x256xf32>
    %99 = arith.addf %96, %98 : vector<8x256xf32>
    %c0_22 = arith.constant 0 : index
    %c0_23 = arith.constant 0 : index
    %100 = vector.load %arg2[%c0_22, %c0_23] : memref<8x129xf32, #tpu.memory_space<vmem>>, vector<8x129xf32>
    %c0_24 = arith.constant 0 : index
    %c0_25 = arith.constant 0 : index
    %101 = vector.load %arg9[%c0_24, %c0_25] : memref<129x256xf32, #tpu.memory_space<vmem>>, vector<129x256xf32>
    %cst_26 = arith.constant dense<0.000000e+00> : vector<8x256xf32>
    %102 = tpu.matmul %100, %101, %cst_26 {dimension_numbers = #tpu.dot_dimension_numbers<[1], [0], [0], [1], [0, 0, 1, 1], [], []>} : vector<8x129xf32>, vector<129x256xf32>, vector<8x256xf32> -> vector<8x256xf32>
    %c0_27 = arith.constant 0 : index
    %c0_28 = arith.constant 0 : index
    %103 = vector.load %arg10[%c0_27, %c0_28] : memref<1x256xf32, #tpu.memory_space<vmem>>, vector<1x256xf32>
    %104 = vector.broadcast %103 : vector<1x256xf32> to vector<8x256xf32>
    %105 = arith.addf %102, %104 : vector<8x256xf32>
    %106 = tpu.concatenate %99, %105 in 1 : vector<8x256xf32>, vector<8x256xf32> -> vector<8x512xf32>
    %c0_29 = arith.constant 0 : index
    %c0_30 = arith.constant 0 : index
    %107 = vector.load %arg11[%c0_29, %c0_30] : memref<8x512xf32, #tpu.memory_space<vmem>>, vector<8x512xf32>
    tpu.vector_store %arg11[%c0_29, %c0_30], %106 {strides = array<i32>} : memref<8x512xf32, #tpu.memory_space<vmem>>, vector<8x512xf32>,
    %108 = tpu.iota {dimensions = array<i32: 0>} : vector<8x8xi32>
    %109 = tpu.iota {dimensions = array<i32: 1>} : vector<8x8xi32>
    %c2_i32 = arith.constant 2 : i32
    %110 = vector.broadcast %c2_i32 : i32 to vector<8x8xi32>
    %111 = arith.cmpi slt, %108, %110 : vector<8x8xi32>
    %c2_i32_31 = arith.constant 2 : i32
    %112 = vector.broadcast %c2_i32_31 : i32 to vector<8x8xi32>
    %113 = arith.cmpi slt, %109, %112 : vector<8x8xi32>
    %114 = arith.andi %111, %113 : vector<8x8xi1>
    %115 = arith.mulf %106, %106 : vector<8x512xf32>
    %cst_32 = arith.constant dense<0.000000e+00> : vector<8xf32>
    %116 = vector.multi_reduction <add>, %115, %cst_32 [1] : vector<8x512xf32> to vector<8xf32>
    %117 = vector.shape_cast %116 : vector<8xf32> to vector<8x1xf32>
    %118 = math.rsqrt %117 : vector<8x1xf32>
    %119 = vector.broadcast %118 : vector<8x1xf32> to vector<8x512xf32>
    %120 = arith.mulf %106, %119 : vector<8x512xf32>
    %cst_33 = arith.constant dense<0.000000e+00> : vector<8x8xf32>
    %121 = tpu.matmul %120, %120, %cst_33 {dimension_numbers = #tpu.dot_dimension_numbers<[1], [1], [0], [0], [0, 0, 1, 0], [], []>} : vector<8x512xf32>, vector<8x512xf32>, vector<8x8xf32> -> vector<8x8xf32>
    %cst_34 = arith.constant 0.707106769 : f32
    %122 = vector.broadcast %cst_34 : f32 to vector<8x8xf32>
    %123 = arith.cmpf ogt, %121, %122 : vector<8x8xf32>
    %124 = arith.andi %123, %114 : vector<8x8xi1>
    %cst_35 = arith.constant 0.000000e+00 : f32
    %125 = vector.broadcast %cst_35 : f32 to vector<8x8xf32>
    %126 = arith.select %124, %121, %125 : vector<8x8xi1>, vector<8x8xf32>
    %cst_36 = arith.constant dense<0.000000e+00> : vector<8xf32>
    %127 = vector.multi_reduction <add>, %126, %cst_36 [1] : vector<8x8xf32> to vector<8xf32>
    %128 = vector.shape_cast %127 : vector<8xf32> to vector<8x1xf32>
    %cst_37 = arith.constant 0.000000e+00 : f32
    %129 = vector.broadcast %cst_37 : f32 to vector<8x1xf32>
    %130 = arith.cmpf ogt, %128, %129 : vector<8x1xf32>
    %131 = math.rsqrt %128 : vector<8x1xf32>
    %cst_38 = arith.constant 0.000000e+00 : f32
    %132 = vector.broadcast %cst_38 : f32 to vector<8x1xf32>
    %133 = arith.select %130, %131, %132 : vector<8x1xi1>, vector<8x1xf32>
    %134 = arith.cmpi eq, %108, %109 : vector<8x8xi32>
    %135 = arith.extui %134 : vector<8x8xi1> to vector<8x8xi32>
    %136 = arith.sitofp %135 : vector<8x8xi32> to vector<8x8xf32>
    %137 = vector.broadcast %133 : vector<8x1xf32> to vector<8x8xf32>
    %138 = arith.mulf %136, %137 : vector<8x8xf32>
    %cst_39 = arith.constant dense<0.000000e+00> : vector<8x8xf32>
    %139 = tpu.matmul %126, %138, %cst_39 {dimension_numbers = #tpu.dot_dimension_numbers<[1], [0], [0], [1], [0, 0, 1, 1], [], []>} : vector<8x8xf32>, vector<8x8xf32>, vector<8x8xf32> -> vector<8x8xf32>
    %cst_40 = arith.constant dense<0.000000e+00> : vector<8x8xf32>
    %140 = tpu.matmul %138, %139, %cst_40 {dimension_numbers = #tpu.dot_dimension_numbers<[1], [0], [0], [1], [0, 0, 1, 1], [], []>} : vector<8x8xf32>, vector<8x8xf32>, vector<8x8xf32> -> vector<8x8xf32>
    %c0_41 = arith.constant 0 : index
    %c0_42 = arith.constant 0 : index
    %141 = vector.load %arg12[%c0_41, %c0_42] : memref<8x8xf32, #tpu.memory_space<vmem>>, vector<8x8xf32>
    tpu.vector_store %arg12[%c0_41, %c0_42], %140 {strides = array<i32>} : memref<8x8xf32, #tpu.memory_space<vmem>>, vector<8x8xf32>,
    return
  }
}

</mosaic_0001>

<bundles_post_ra>
// kernel: cnn_lstm_attention_gat_forward.5
= control target key start
LH: loop header
LB: loop body
LE: loop exit
PB: predicated region body
PF: predicated region fallthrough
CT: control target
= control target key end

     0   :  { %vm195_vm0 = vcmask 1041408   ;;  %vm196_vm1 = vcmask 1042432   ;;  %v830_v1 = vmov 65535   ;;  %vm146_vm2 = vcmask 171008   ;;  %s1006_s1 = inlined_call_operand.vmem [shape: bf16[21,128], index: 1, kind: input, shape index: {}]   ;;  %s1007_s0 = inlined_call_operand.vmem [shape: bf16[256,21], index: 0, kind: input, shape index: {}]   ;;  %s1008_s2 = inlined_call_operand.vmem [shape: f32[1,128], index: 2, kind: input, shape index: {}]   ;;  %s1009_s3 = inlined_call_operand.vmem [shape: bf16[256,128], index: 3, kind: output, shape index: {}]  }
   0x1   :  { %v812_v0 = vld [vmem:[%s1006_s1 + $0x8] ss:$0 sps:$4 sm:$0x77]   ;;  %v197_v2 = vsel %vm195_vm0, 4294967295, %v830_v1  ;;  %v813_v4 = vld [vmem:[%s1006_s1] sm:$0xff]   ;;  %v818_v10 = vld [vmem:[%s1007_s0 + $0x10] sm:$0xff]  }
   0x2   :  { %v198_v3 = vsel %vm196_vm1, %v197_v2, 0  ;;  %v814_v6 = vld [vmem:[%s1007_s0] sm:$0xff]   ;;  %v816_v8 = vld [vmem:[%s1007_s0 + $0x8] sm:$0xff]   ;;  %v819_v11 = vld [vmem:[%s1007_s0 + $0x50] sm:$0xff]  }
   0x3   :  { %v200_v5 = vand.u32 %v812_v0, %v198_v3  ;;  %v815_v7 = vld [vmem:[%s1007_s0 + $0x40] sm:$0xff]   ;;  %775 = vmatprep.mubr.msk.bf16.mxu0 %vm146_vm2, %v814_v6  ;;  %v817_v9 = vld [vmem:[%s1007_s0 + $0x48] sm:$0xff]   ;;  %v820_v12 = vld [vmem:[%s1007_s0 + $0x18] sm:$0xff]  }
   0x4   :  { %791 = vmatprep.mubr.msk.bf16.mxu1 %vm146_vm2, %v815_v7  ;;  %v821_v13 = vld [vmem:[%s1007_s0 + $0x58] sm:$0xff]   ;;  %v822_v14 = vld [vmem:[%s1007_s0 + $0x20] sm:$0xff]   ;;  %v824_v16 = vld [vmem:[%s1007_s0 + $0x28] sm:$0xff]  }
   0x5   :  { %771 = vmatprep.subr.bf16.mxu0 %v200_v5  ;;  %807 = vmatprep.subr.bf16.mxu1 %v200_v5  ;;  %v823_v15 = vld [vmem:[%s1007_s0 + $0x60] sm:$0xff]   ;;  %v825_v17 = vld [vmem:[%s1007_s0 + $0x68] sm:$0xff]   ;;  %v826_v18 = vld [vmem:[%s1007_s0 + $0x30] sm:$0xff]  }
   0x6   :  { %772 = vmatpush3.bf16.msra.mxu0 %v200_v5  ;;  %809 = vmatpush3.bf16.msra.mxu1 %v200_v5  ;;  %v827_v19 = vld [vmem:[%s1007_s0 + $0x70] sm:$0xff]   ;;  %v828_v20 = vld [vmem:[%s1007_s0 + $0x38] sm:$0xff]   ;;  %v924_v22 = vld [vmem:[%s1008_s2] ss:$0 sm:$0xff] }
   0x7   :  { %773 = vmatprep.subr.bf16.mxu0 %v813_v4  ;;  %808 = vmatprep.subr.bf16.mxu1 %v813_v4  ;;  %v829_v21 = vld [vmem:[%s1007_s0 + $0x78] sm:$0xff]  }
   0xa   :  { %774 = vmatpush3.bf16.msra.mxu0 %v813_v4  ;;  %810 = vmatpush3.bf16.msra.mxu1 %v813_v4 }
   0xd   :  { %776 = vmatmul.mubr.msk.bf16.vlgmr.msra.gmra.mxu0 %vm146_vm2, %v816_v8  ;;  %792 = vmatmul.mubr.msk.bf16.vlgmr.msra.gmra.mxu1 %vm146_vm2, %v817_v9 }
   0xe   :  { %779 = vmatprep.mubr.msk.bf16.mxu0 %vm146_vm2, %v818_v10  ;;  %795 = vmatprep.mubr.msk.bf16.mxu1 %vm146_vm2, %v819_v11 }
  0x15   :  { %780 = vmatmul.mubr.msk.bf16.gmra.mxu0 %vm146_vm2, %v820_v12  ;;  %796 = vmatmul.mubr.msk.bf16.gmra.mxu1 %vm146_vm2, %v821_v13 }
  0x16   :  { %783 = vmatprep.mubr.msk.bf16.mxu0 %vm146_vm2, %v822_v14  ;;  %799 = vmatprep.mubr.msk.bf16.mxu1 %vm146_vm2, %v823_v15 }
  0x1d   :  { %784 = vmatmul.mubr.msk.bf16.gmra.mxu0 %vm146_vm2, %v824_v16  ;;  %800 = vmatmul.mubr.msk.bf16.gmra.mxu1 %vm146_vm2, %v825_v17 }
  0x1e   :  { %787 = vmatprep.mubr.msk.bf16.mxu0 %vm146_vm2, %v826_v18  ;;  %803 = vmatprep.mubr.msk.bf16.mxu1 %vm146_vm2, %v827_v19 }
  0x25   :  { %788 = vmatmul.mubr.msk.bf16.gmra.mxu0 %vm146_vm2, %v828_v20  ;;  %804 = vmatmul.mubr.msk.bf16.gmra.mxu1 %vm146_vm2, %v829_v21 }
  0xcd   :  { %v777_v23 = vpop.f32.mrf.mxu0  ;;  %v793_v24 = vpop.f32.mrf.mxu1 }
  0xce   :  { %v245_v25 = vadd.f32 %v777_v23, %v924_v22  ;;  %v309_v26 = vadd.f32 %v793_v24, %v924_v22 }
  0xcf   :  { %v236_v27 = vpop.f32.mrf.mxu0  ;;  %v300_v28 = vpop.f32.mrf.mxu1 }
  0xd0   :  { %v237_v29 = vadd.f32 %v924_v22, %v236_v27  ;;  %v301_v30 = vadd.f32 %v924_v22, %v300_v28  ;;  %v365_v35 = vmax.f32 %v245_v25, 0.0  ;;  %v381_v36 = vmax.f32 %v309_v26, 0.0 }
  0xd1   :  { %v778_v31 = vpop.f32.mrf.mxu0  ;;  %v794_v32 = vpop.f32.mrf.mxu1 }
  0xd2   :  { %v248_v33 = vadd.f32 %v778_v31, %v924_v22  ;;  %v312_v34 = vadd.f32 %v794_v32, %v924_v22  ;;  %v363_v43 = vmax.f32 %v237_v29, 0.0  ;;  %v379_v44 = vmax.f32 %v301_v30, 0.0 }
  0xd3   :  { %v239_v37 = vpop.f32.mrf.mxu0  ;;  %v303_v38 = vpop.f32.mrf.mxu1 }
  0xd4   :  { %v366_v39 = vmax.f32 %v248_v33, 0.0  ;;  %v382_v40 = vmax.f32 %v312_v34, 0.0  ;;  %v240_v41 = vadd.f32 %v924_v22, %v239_v37  ;;  %v304_v42 = vadd.f32 %v924_v22, %v303_v38 }
  0xd5   :  { %v781_v45 = vpop.f32.mrf.mxu0  ;;  %v797_v46 = vpop.f32.mrf.mxu1 }
  0xd6   :  { %v666_v47 = vpack.c.bf16 %v366_v39, %v365_v35  ;;  %v706_v48 = vpack.c.bf16 %v382_v40, %v381_v36  ;;  %v364_v49 = vmax.f32 %v240_v41, 0.0  ;;  %v380_v50 = vmax.f32 %v304_v42, 0.0 }
  0xd7   :  { %v261_v51 = vadd.f32 %v781_v45, %v924_v22  ;;  %v325_v52 = vadd.f32 %v797_v46, %v924_v22  ;;  %v252_v53 = vpop.f32.mrf.mxu0  ;;  %v316_v54 = vpop.f32.mrf.mxu1 }
  0xd8   :  { %738 = vst [vmem:[%s1009_s3 + $0x8] sm:$0xff] %v666_v47   ;;  %746 = vst [vmem:[%s1009_s3 + $0x48] sm:$0xff] %v706_v48   ;;  %v661_v55 = vpack.c.bf16 %v364_v49, %v363_v43  ;;  %v701_v56 = vpack.c.bf16 %v380_v50, %v379_v44  ;;  %v253_v57 = vadd.f32 %v924_v22, %v252_v53 }
  0xd9   :  { %v317_v58 = vadd.f32 %v924_v22, %v316_v54  ;;  %v782_v59 = vpop.f32.mrf.mxu0  ;;  %v798_v60 = vpop.f32.mrf.mxu1  ;;  %v369_v63 = vmax.f32 %v261_v51, 0.0  ;;  %v385_v0 = vmax.f32 %v325_v52, 0.0 }
  0xda   :  { %662 = vst [vmem:[%s1009_s3] sm:$0xff] %v661_v55   ;;  %745 = vst [vmem:[%s1009_s3 + $0x40] sm:$0xff] %v701_v56   ;;  %v264_v61 = vadd.f32 %v782_v59, %v924_v22  ;;  %v328_v62 = vadd.f32 %v798_v60, %v924_v22  ;;  %v367_v7 = vmax.f32 %v253_v57, 0.0 }
  0xdb   :  { %v255_v1 = vpop.f32.mrf.mxu0  ;;  %v319_v2 = vpop.f32.mrf.mxu1  ;;  %v383_v8 = vmax.f32 %v317_v58, 0.0 }
  0xdc   :  { %v370_v3 = vmax.f32 %v264_v61, 0.0  ;;  %v386_v4 = vmax.f32 %v328_v62, 0.0  ;;  %v256_v5 = vadd.f32 %v924_v22, %v255_v1  ;;  %v320_v6 = vadd.f32 %v924_v22, %v319_v2 }
  0xdd   :  { %v785_v9 = vpop.f32.mrf.mxu0  ;;  %v801_v10 = vpop.f32.mrf.mxu1 }
  0xde   :  { %v676_v11 = vpack.c.bf16 %v370_v3, %v369_v63  ;;  %v716_v12 = vpack.c.bf16 %v386_v4, %v385_v0  ;;  %v368_v13 = vmax.f32 %v256_v5, 0.0  ;;  %v384_v14 = vmax.f32 %v320_v6, 0.0 }
  0xdf   :  { %v277_v15 = vadd.f32 %v785_v9, %v924_v22  ;;  %v341_v16 = vadd.f32 %v801_v10, %v924_v22  ;;  %v268_v17 = vpop.f32.mrf.mxu0  ;;  %v332_v18 = vpop.f32.mrf.mxu1 }
  0xe0   :  { %740 = vst [vmem:[%s1009_s3 + $0x18] sm:$0xff] %v676_v11   ;;  %748 = vst [vmem:[%s1009_s3 + $0x58] sm:$0xff] %v716_v12   ;;  %v671_v19 = vpack.c.bf16 %v368_v13, %v367_v7  ;;  %v711_v20 = vpack.c.bf16 %v384_v14, %v383_v8  ;;  %v269_v21 = vadd.f32 %v924_v22, %v268_v17 }
  0xe1   :  { %v333_v23 = vadd.f32 %v924_v22, %v332_v18  ;;  %v786_v24 = vpop.f32.mrf.mxu0  ;;  %v802_v25 = vpop.f32.mrf.mxu1  ;;  %v373_v28 = vmax.f32 %v277_v15, 0.0  ;;  %v389_v29 = vmax.f32 %v341_v16, 0.0 }
  0xe2   :  { %739 = vst [vmem:[%s1009_s3 + $0x10] sm:$0xff] %v671_v19   ;;  %747 = vst [vmem:[%s1009_s3 + $0x50] sm:$0xff] %v711_v20   ;;  %v280_v26 = vadd.f32 %v786_v24, %v924_v22  ;;  %v344_v27 = vadd.f32 %v802_v25, %v924_v22  ;;  %v371_v36 = vmax.f32 %v269_v21, 0.0 }
  0xe3   :  { %v271_v30 = vpop.f32.mrf.mxu0  ;;  %v335_v31 = vpop.f32.mrf.mxu1  ;;  %v387_v37 = vmax.f32 %v333_v23, 0.0 }
  0xe4   :  { %v374_v32 = vmax.f32 %v280_v26, 0.0  ;;  %v390_v33 = vmax.f32 %v344_v27, 0.0  ;;  %v272_v34 = vadd.f32 %v924_v22, %v271_v30  ;;  %v336_v35 = vadd.f32 %v924_v22, %v335_v31 }
  0xe5   :  { %v789_v38 = vpop.f32.mrf.mxu0  ;;  %v805_v39 = vpop.f32.mrf.mxu1 }
  0xe6   :  { %v686_v40 = vpack.c.bf16 %v374_v32, %v373_v28  ;;  %v726_v41 = vpack.c.bf16 %v390_v33, %v389_v29  ;;  %v372_v42 = vmax.f32 %v272_v34, 0.0  ;;  %v388_v43 = vmax.f32 %v336_v35, 0.0 }
  0xe7   :  { %v293_v44 = vadd.f32 %v789_v38, %v924_v22  ;;  %v357_v45 = vadd.f32 %v805_v39, %v924_v22  ;;  %v284_v46 = vpop.f32.mrf.mxu0  ;;  %v348_v47 = vpop.f32.mrf.mxu1 }
  0xe8   :  { %742 = vst [vmem:[%s1009_s3 + $0x28] sm:$0xff] %v686_v40   ;;  %750 = vst [vmem:[%s1009_s3 + $0x68] sm:$0xff] %v726_v41   ;;  %v681_v48 = vpack.c.bf16 %v372_v42, %v371_v36  ;;  %v721_v49 = vpack.c.bf16 %v388_v43, %v387_v37  ;;  %v285_v50 = vadd.f32 %v924_v22, %v284_v46 }
  0xe9   :  { %v349_v51 = vadd.f32 %v924_v22, %v348_v47  ;;  %v790_v52 = vpop.f32.mrf.mxu0  ;;  %v806_v53 = vpop.f32.mrf.mxu1  ;;  %v377_v56 = vmax.f32 %v293_v44, 0.0  ;;  %v393_v57 = vmax.f32 %v357_v45, 0.0 }
  0xea   :  { %741 = vst [vmem:[%s1009_s3 + $0x20] sm:$0xff] %v681_v48   ;;  %749 = vst [vmem:[%s1009_s3 + $0x60] sm:$0xff] %v721_v49   ;;  %v296_v54 = vadd.f32 %v790_v52, %v924_v22  ;;  %v360_v55 = vadd.f32 %v806_v53, %v924_v22  ;;  %v375_v0 = vmax.f32 %v285_v50, 0.0 }
  0xeb   :  { %v287_v58 = vpop.f32.mrf.mxu0  ;;  %v351_v59 = vpop.f32.mrf.mxu1  ;;  %v391_v1 = vmax.f32 %v349_v51, 0.0 }
  0xec   :  { %v378_v60 = vmax.f32 %v296_v54, 0.0  ;;  %v394_v61 = vmax.f32 %v360_v55, 0.0  ;;  %v288_v62 = vadd.f32 %v924_v22, %v287_v58  ;;  %v352_v63 = vadd.f32 %v924_v22, %v351_v59 }
  0xee   :  { %v696_v2 = vpack.c.bf16 %v378_v60, %v377_v56  ;;  %v736_v3 = vpack.c.bf16 %v394_v61, %v393_v57  ;;  %v376_v4 = vmax.f32 %v288_v62, 0.0  ;;  %v392_v5 = vmax.f32 %v352_v63, 0.0 }
  0xf0   :  { %744 = vst [vmem:[%s1009_s3 + $0x38] sm:$0xff] %v696_v2   ;;  %752 = vst [vmem:[%s1009_s3 + $0x78] sm:$0xff] %v736_v3   ;;  %v691_v6 = vpack.c.bf16 %v376_v4, %v375_v0  ;;  %v731_v7 = vpack.c.bf16 %v392_v5, %v391_v1 }
  0xf2   :  { %743 = vst [vmem:[%s1009_s3 + $0x30] sm:$0xff] %v691_v6   ;;  %751 = vst [vmem:[%s1009_s3 + $0x70] sm:$0xff] %v731_v7  }

// kernel: cnn_lstm_attention_gat_forward.6
= control target key start
LH: loop header
LB: loop body
LE: loop exit
PB: predicated region body
PF: predicated region fallthrough
CT: control target
= control target key end

     0   :  { %s1929_s1 = inlined_call_operand.vmem [shape: bf16[384,128], index: 1, kind: input, shape index: {}]   ;;  %s1930_s0 = inlined_call_operand.vmem [shape: bf16[256,384], index: 0, kind: input, shape index: {}]   ;;  %s1931_s2 = inlined_call_operand.vmem [shape: f32[1,128], index: 2, kind: input, shape index: {}]   ;;  %s1932_s3 = inlined_call_operand.vmem [shape: bf16[256,128], index: 3, kind: output, shape index: {}]  }
   0x1   :  { %v1484_v0 = vld [vmem:[%s1929_s1 + $0x78] sm:$0xff]   ;;  %v1486_v2 = vld [vmem:[%s1929_s1 + $0x70] sm:$0xff]   ;;  %v1488_v4 = vld [vmem:[%s1929_s1 + $0x68] sm:$0xff]  }
   0x2   :  { %v1485_v1 = vld [vmem:[%s1929_s1 + $0x38] sm:$0xff]   ;;  %1284 = vmatprep.subr.bf16.mxu0 %v1484_v0  ;;  %1468 = vmatprep.subr.bf16.mxu1 %v1484_v0  ;;  %v1487_v3 = vld [vmem:[%s1929_s1 + $0x30] sm:$0xff]   ;;  %v1489_v5 = vld [vmem:[%s1929_s1 + $0x28] sm:$0xff]  }
   0x3   :  { %1285 = vmatpush3.bf16.msra.mxu0 %v1485_v1  ;;  %1476 = vmatpush3.bf16.msra.mxu1 %v1485_v1  ;;  %v1490_v6 = vld [vmem:[%s1929_s1 + $0x60] sm:$0xff]   ;;  %v1492_v8 = vld [vmem:[%s1929_s1 + $0x58] sm:$0xff]   ;;  %v1494_v10 = vld [vmem:[%s1929_s1 + $0x50] sm:$0xff]  }
   0x4   :  { %1286 = vmatprep.subr.bf16.mxu0 %v1486_v2  ;;  %1469 = vmatprep.subr.bf16.mxu1 %v1486_v2  ;;  %v1491_v7 = vld [vmem:[%s1929_s1 + $0x20] sm:$0xff]   ;;  %v1493_v9 = vld [vmem:[%s1929_s1 + $0x18] sm:$0xff]   ;;  %v1495_v13 = vld [vmem:[%s1929_s1 + $0x10] sm:$0xff]  }
   0x5   :  { %v1502_v11 = vld [vmem:[%s1930_s0 + $0x4] ss:$12 sps:$4 sm:$0xff]   ;;  %v1496_v14 = vld [vmem:[%s1929_s1 + $0x48] sm:$0xff]   ;;  %v1506_v18 = vld [vmem:[%s1929_s1 + $0xb8] sm:$0xff]  }
   0x6   :  { %v1505_v12 = vld [vmem:[%s1930_s0 + $0x124] ss:$12 sps:$4 sm:$0xff]   ;;  %566 = vmatprep.mubr.bf16.mxu0 %v1502_v11  ;;  %v1497_v15 = vld [vmem:[%s1929_s1 + $0x8] sm:$0xff]   ;;  %v1516_v28 = vld [vmem:[%s1930_s0 + $0x34] ss:$12 sps:$4 sm:$0xff]  }
   0x7   :  { %1287 = vmatpush3.bf16.msra.mxu0 %v1487_v3  ;;  %1477 = vmatpush3.bf16.msra.mxu1 %v1487_v3  ;;  %v1498_v16 = vld [vmem:[%s1929_s1 + $0x40] sm:$0xff]   ;;  %v1508_v21 = vld [vmem:[%s1930_s0 + $0x1c] ss:$12 sps:$4 sm:$0xff]   ;;  %v1507_v22 = vld [vmem:[%s1929_s1 + $0xb0] sm:$0xff]  }
   0x8   :  { %1288 = vmatprep.subr.bf16.mxu0 %v1488_v4  ;;  %1470 = vmatprep.subr.bf16.mxu1 %v1488_v4  ;;  %v1499_v17 = vld [vmem:[%s1929_s1] sm:$0xff]   ;;  %v1510_v23 = vld [vmem:[%s1930_s0 + $0x13c] ss:$12 sps:$4 sm:$0xff]   ;;  %v1523_v33 = vld [vmem:[%s1929_s1 + $0x90] sm:$0xff]  }
   0x9   :  { %662 = vmatprep.mubr.bf16.mxu1 %v1505_v12  ;;  %v1500_v19 = vld [vmem:[%s1930_s0] ss:$12 sps:$4 sm:$0xff]   ;;  %v1512_v24 = vld [vmem:[%s1930_s0 + $0x18] ss:$12 sps:$4 sm:$0xff]   ;;  %v1520_v31 = vld [vmem:[%s1930_s0 + $0x30] ss:$12 sps:$4 sm:$0xff]  }
   0xa   :  { %v1503_v20 = vld [vmem:[%s1930_s0 + $0x120] ss:$12 sps:$4 sm:$0xff]   ;;  %v1513_v26 = vld [vmem:[%s1930_s0 + $0x138] ss:$12 sps:$4 sm:$0xff]   ;;  %v1521_v32 = vld [vmem:[%s1930_s0 + $0x150] ss:$12 sps:$4 sm:$0xff]  }
   0xb   :  { %1289 = vmatpush3.bf16.msra.mxu0 %v1489_v5  ;;  %1478 = vmatpush3.bf16.msra.mxu1 %v1489_v5  ;;  %v1514_v25 = vld [vmem:[%s1929_s1 + $0xa8] sm:$0xff]   ;;  %v1515_v27 = vld [vmem:[%s1929_s1 + $0xa0] sm:$0xff]   ;;  %v1522_v30 = vld [vmem:[%s1929_s1 + $0x98] sm:$0xff]  }
   0xc   :  { %1290 = vmatprep.subr.bf16.mxu0 %v1490_v6  ;;  %1471 = vmatprep.subr.bf16.mxu1 %v1490_v6  ;;  %v1518_v29 = vld [vmem:[%s1930_s0 + $0x154] ss:$12 sps:$4 sm:$0xff]   ;;  %v1524_v34 = vld [vmem:[%s1930_s0 + $0x4c] ss:$12 sps:$4 sm:$0xff]   ;;  %v1532_v39 = vld [vmem:[%s1930_s0 + $0x64] ss:$12 sps:$4 sm:$0xff]  }
   0xd   :  { %v1526_v35 = vld [vmem:[%s1930_s0 + $0x16c] ss:$12 sps:$4 sm:$0xff]   ;;  %v1528_v37 = vld [vmem:[%s1930_s0 + $0x48] ss:$12 sps:$4 sm:$0xff]   ;;  %v1531_v40 = vld [vmem:[%s1929_s1 + $0x80] sm:$0xff]  }
   0xe   :  { %v1530_v36 = vld [vmem:[%s1929_s1 + $0x88] sm:$0xff]   ;;  %v1539_v45 = vld [vmem:[%s1930_s0 + $0x38] ss:$12 sps:$4 sm:$0xff]   ;;  %v1541_v47 = vld [vmem:[%s1930_s0 + $0x50] ss:$12 sps:$4 sm:$0xff]  }
   0xf   :  { %1291 = vmatpush3.bf16.msra.mxu0 %v1491_v7  ;;  %1479 = vmatpush3.bf16.msra.mxu1 %v1491_v7  ;;  %v1529_v38 = vld [vmem:[%s1930_s0 + $0x168] ss:$12 sps:$4 sm:$0xff]   ;;  %v1535_v42 = vld [vmem:[%s1930_s0 + $0x60] ss:$12 sps:$4 sm:$0xff]   ;;  %v1540_v46 = vld [vmem:[%s1930_s0 + $0x78] ss:$12 sps:$4 sm:$0xff]  }
  0x10   :  { %1292 = vmatprep.subr.bf16.mxu0 %v1492_v8  ;;  %1472 = vmatprep.subr.bf16.mxu1 %v1492_v8  ;;  %v1534_v41 = vld [vmem:[%s1930_s0 + $0x8] ss:$12 sps:$4 sm:$0xff]   ;;  %v1536_v43 = vld [vmem:[%s1930_s0 + $0x20] ss:$12 sps:$4 sm:$0xff]   ;;  %v1545_v50 = vld [vmem:[%s1930_s0 + $0x90] ss:$12 sps:$4 sm:$0xff]  }
  0x11   :  { %v1537_v44 = vld [vmem:[%s1930_s0 + $0x7c] ss:$12 sps:$4 sm:$0xff]   ;;  %v1542_v48 = vld [vmem:[%s1930_s0 + $0x94] ss:$12 sps:$4 sm:$0xff]   ;;  %v1547_v52 = vld [vmem:[%s1930_s0 + $0xac] ss:$12 sps:$4 sm:$0xff]  }
  0x12   :  { %v1544_v49 = vld [vmem:[%s1930_s0 + $0x68] ss:$12 sps:$4 sm:$0xff]   ;;  %v1546_v51 = vld [vmem:[%s1930_s0 + $0x80] ss:$12 sps:$4 sm:$0xff]   ;;  %v1549_v53 = vld [vmem:[%s1930_s0 + $0x98] ss:$12 sps:$4 sm:$0xff]  }
  0x13   :  { %1293 = vmatpush3.bf16.msra.mxu0 %v1493_v9  ;;  %1480 = vmatpush3.bf16.msra.mxu1 %v1493_v9  ;;  %v1550_v54 = vld [vmem:[%s1930_s0 + $0xa8] ss:$12 sps:$4 sm:$0xff]   ;;  %v1551_v55 = vld [vmem:[%s1930_s0 + $0xb0] ss:$12 sps:$4 sm:$0xff]   ;;  %v1555_v58 = vld [vmem:[%s1930_s0 + $0xc0] ss:$12 sps:$4 sm:$0xff]  }
  0x14   :  { %1294 = vmatprep.subr.bf16.mxu0 %v1494_v10  ;;  %1473 = vmatprep.subr.bf16.mxu1 %v1494_v10  ;;  %v1552_v56 = vld [vmem:[%s1930_s0 + $0xc4] ss:$12 sps:$4 sm:$0xff]   ;;  %v1554_v57 = vld [vmem:[%s1930_s0 + $0xc8] ss:$12 sps:$4 sm:$0xff]   ;;  %v1556_v59 = vld [vmem:[%s1930_s0 + $0xe0] ss:$12 sps:$4 sm:$0xff]  }
  0x15   :  { %v1557_v60 = vld [vmem:[%s1930_s0 + $0xdc] ss:$12 sps:$4 sm:$0xff]   ;;  %v1559_v61 = vld [vmem:[%s1930_s0 + $0xf8] ss:$12 sps:$4 sm:$0xff]   ;;  %v1562_v0 = vld [vmem:[%s1930_s0 + $0xf4] ss:$12 sps:$4 sm:$0xff]  }
  0x16   :  { %v1560_v62 = vld [vmem:[%s1930_s0 + $0xd8] ss:$12 sps:$4 sm:$0xff]   ;;  %v1561_v63 = vld [vmem:[%s1930_s0 + $0x110] ss:$12 sps:$4 sm:$0xff]   ;;  %v1564_v1 = vld [vmem:[%s1930_s0 + $0x128] ss:$12 sps:$4 sm:$0xff]  }
  0x17   :  { %1295 = vmatpush3.bf16.msra.mxu0 %v1495_v13  ;;  %1481 = vmatpush3.bf16.msra.mxu1 %v1495_v13  ;;  %v1565_v2 = vld [vmem:[%s1930_s0 + $0xf0] ss:$12 sps:$4 sm:$0xff]   ;;  %v1566_v3 = vld [vmem:[%s1930_s0 + $0x140] ss:$12 sps:$4 sm:$0xff]   ;;  %v1569_v5 = vld [vmem:[%s1930_s0 + $0x158] ss:$12 sps:$4 sm:$0xff]  }
  0x18   :  { %1296 = vmatprep.subr.bf16.mxu0 %v1496_v14  ;;  %1474 = vmatprep.subr.bf16.mxu1 %v1496_v14  ;;  %v1567_v4 = vld [vmem:[%s1930_s0 + $0x10c] ss:$12 sps:$4 sm:$0xff]   ;;  %v1570_v6 = vld [vmem:[%s1930_s0 + $0x108] ss:$12 sps:$4 sm:$0xff]   ;;  %v1571_v7 = vld [vmem:[%s1930_s0 + $0x170] ss:$12 sps:$4 sm:$0xff]  }
  0x1b   :  { %1297 = vmatpush3.bf16.msra.mxu0 %v1497_v15  ;;  %1482 = vmatpush3.bf16.msra.mxu1 %v1497_v15 }
  0x1c   :  { %1298 = vmatprep.subr.bf16.mxu0 %v1498_v16  ;;  %1475 = vmatprep.subr.bf16.mxu1 %v1498_v16 }
  0x1f   :  { %1299 = vmatpush3.bf16.msra.mxu0 %v1499_v17  ;;  %1483 = vmatpush3.bf16.msra.mxu1 %v1499_v17 }
  0x20   :  { %1420 = vmatprep.subr.bf16.mxu1 %v1506_v18 }
  0x22   :  { %567 = vmatmul.mubr.bf16.vlgmr.msra.gmra.mxu0 %v1500_v19  ;;  %663 = vmatmul.mubr.bf16.vlgmr.msra.gmra.mxu1 %v1503_v20 }
  0x23   :  { %1421 = vmatpush3.bf16.msra.mxu1 %v1506_v18  ;;  %574 = vmatprep.mubr.bf16.mxu0 %v1508_v21 }
  0x24   :  { %1422 = vmatprep.subr.bf16.mxu1 %v1507_v22  ;;  %670 = vmatprep.mubr.bf16.mxu1 %v1510_v23 }
  0x27   :  { %1423 = vmatpush3.bf16.msra.mxu1 %v1507_v22 }
  0x28   :  { %1424 = vmatprep.subr.bf16.mxu1 %v1514_v25 }
  0x2a   :  { %575 = vmatmul.mubr.bf16.gmra.mxu0 %v1512_v24  ;;  %671 = vmatmul.mubr.bf16.gmra.mxu1 %v1513_v26 }
  0x2b   :  { %1425 = vmatpush3.bf16.msra.mxu1 %v1514_v25  ;;  %582 = vmatprep.mubr.bf16.mxu0 %v1516_v28 }
  0x2c   :  { %1426 = vmatprep.subr.bf16.mxu1 %v1515_v27  ;;  %678 = vmatprep.mubr.bf16.mxu1 %v1518_v29 }
  0x2f   :  { %1427 = vmatpush3.bf16.msra.mxu1 %v1515_v27 }
  0x30   :  { %1428 = vmatprep.subr.bf16.mxu1 %v1522_v30 }
  0x32   :  { %583 = vmatmul.mubr.bf16.gmra.mxu0 %v1520_v31  ;;  %679 = vmatmul.mubr.bf16.gmra.mxu1 %v1521_v32 }
  0x33   :  { %1429 = vmatpush3.bf16.msra.mxu1 %v1522_v30  ;;  %590 = vmatprep.mubr.bf16.mxu0 %v1524_v34 }
  0x34   :  { %1430 = vmatprep.subr.bf16.mxu1 %v1523_v33  ;;  %686 = vmatprep.mubr.bf16.mxu1 %v1526_v35 }
  0x37   :  { %1431 = vmatpush3.bf16.msra.mxu1 %v1523_v33 }
  0x38   :  { %1432 = vmatprep.subr.bf16.mxu1 %v1530_v36 }
  0x3a   :  { %591 = vmatmul.mubr.bf16.gmra.mxu0 %v1528_v37  ;;  %687 = vmatmul.mubr.bf16.gmra.mxu1 %v1529_v38 }
  0x3b   :  { %1433 = vmatpush3.bf16.msra.mxu1 %v1530_v36  ;;  %598 = vmatprep.mubr.bf16.mxu0 %v1532_v39 }
  0x3c   :  { %1434 = vmatprep.subr.bf16.mxu1 %v1531_v40  ;;  %1436 = vmatprep.mubr.bf16.mxu1 %v1534_v41 }
  0x3f   :  { %1435 = vmatpush3.bf16.msra.mxu1 %v1531_v40 }
  0x42   :  { %599 = vmatmul.mubr.bf16.gmra.mxu0 %v1535_v42  ;;  %1437 = vmatmul.mubr.bf16.vlgmr.msra.gmra.mxu1 %v1536_v43 }
  0x43   :  { %606 = vmatprep.mubr.bf16.mxu0 %v1537_v44  ;;  %1440 = vmatprep.mubr.bf16.mxu1 %v1539_v45 }
  0x4a   :  { %607 = vmatmul.mubr.bf16.gmra.mxu0 %v1540_v46  ;;  %1441 = vmatmul.mubr.bf16.gmra.mxu1 %v1541_v47 }
  0x4b   :  { %614 = vmatprep.mubr.bf16.mxu0 %v1542_v48  ;;  %1444 = vmatprep.mubr.bf16.mxu1 %v1544_v49 }
  0x52   :  { %615 = vmatmul.mubr.bf16.gmra.mxu0 %v1545_v50  ;;  %1445 = vmatmul.mubr.bf16.gmra.mxu1 %v1546_v51  ;;  %v1831_v50 = vld [vmem:[%s1931_s2] ss:$0 sm:$0xff] }
  0x53   :  { %622 = vmatprep.mubr.bf16.mxu0 %v1547_v52  ;;  %1448 = vmatprep.mubr.bf16.mxu1 %v1549_v53 }
  0x5a   :  { %623 = vmatmul.mubr.bf16.gmra.mxu0 %v1550_v54  ;;  %1449 = vmatmul.mubr.bf16.gmra.mxu1 %v1551_v55 }
  0x5b   :  { %630 = vmatprep.mubr.bf16.mxu0 %v1552_v56  ;;  %1452 = vmatprep.mubr.bf16.mxu1 %v1554_v57 }
  0x62   :  { %631 = vmatmul.mubr.bf16.gmra.mxu0 %v1555_v58  ;;  %1453 = vmatmul.mubr.bf16.gmra.mxu1 %v1556_v59 }
  0x63   :  { %638 = vmatprep.mubr.bf16.mxu0 %v1557_v60  ;;  %1456 = vmatprep.mubr.bf16.mxu1 %v1559_v61 }
  0x6a   :  { %639 = vmatmul.mubr.bf16.gmra.mxu0 %v1560_v62  ;;  %1457 = vmatmul.mubr.bf16.gmra.mxu1 %v1561_v63 }
  0x6b   :  { %646 = vmatprep.mubr.bf16.mxu0 %v1562_v0  ;;  %1460 = vmatprep.mubr.bf16.mxu1 %v1564_v1 }
  0x72   :  { %647 = vmatmul.mubr.bf16.gmra.mxu0 %v1565_v2  ;;  %1461 = vmatmul.mubr.bf16.gmra.mxu1 %v1566_v3 }
  0x73   :  { %654 = vmatprep.mubr.bf16.mxu0 %v1567_v4  ;;  %1464 = vmatprep.mubr.bf16.mxu1 %v1569_v5 }
  0x7a   :  { %655 = vmatmul.mubr.bf16.gmra.mxu0 %v1570_v6  ;;  %1465 = vmatmul.mubr.bf16.gmra.mxu1 %v1571_v7 }
  0xe2   :  { %v1300_v8 = vpop.f32.mrf.mxu0  ;;  %v1372_v9 = vpop.f32.mrf.mxu1 }
  0xe4   :  { %v1301_v10 = vpop.f32.mrf.mxu0  ;;  %v1373_v11 = vpop.f32.mrf.mxu1 }
  0xe5   :  { %v1808_v12 = vadd.f32 %v1373_v11, %v1372_v9  ;;  %v1302_v47 = vadd.f32 %v1301_v10, %v1300_v8 }
  0xe6   :  { %v1303_v13 = vpop.f32.mrf.mxu0  ;;  %v1375_v14 = vpop.f32.mrf.mxu1 }
  0xe7   :  { %v569_v57 = vadd.f32 %v1302_v47, %v1831_v50 }
  0xe8   :  { %v1304_v15 = vpop.f32.mrf.mxu0  ;;  %v1376_v16 = vpop.f32.mrf.mxu1 }
  0xe9   :  { %v1810_v17 = vadd.f32 %v1376_v16, %v1375_v14  ;;  %v1305_v52 = vadd.f32 %v1304_v15, %v1303_v13 }
  0xea   :  { %v1306_v18 = vpop.f32.mrf.mxu0  ;;  %v1378_v19 = vpop.f32.mrf.mxu1 }
  0xeb   :  { %v572_v0 = vadd.f32 %v1305_v52, %v1831_v50 }
  0xec   :  { %v1307_v20 = vpop.f32.mrf.mxu0  ;;  %v1379_v21 = vpop.f32.mrf.mxu1 }
  0xed   :  { %v1812_v22 = vadd.f32 %v1379_v21, %v1378_v19  ;;  %v1308_v44 = vadd.f32 %v1307_v20, %v1306_v18 }
  0xee   :  { %v1309_v23 = vpop.f32.mrf.mxu0  ;;  %v1381_v24 = vpop.f32.mrf.mxu1 }
  0xef   :  { %v577_v53 = vadd.f32 %v1308_v44, %v1831_v50 }
  0xf0   :  { %v1310_v25 = vpop.f32.mrf.mxu0  ;;  %v1382_v26 = vpop.f32.mrf.mxu1 }
  0xf1   :  { %v1814_v27 = vadd.f32 %v1382_v26, %v1381_v24  ;;  %v1311_v48 = vadd.f32 %v1310_v25, %v1309_v23 }
  0xf2   :  { %v1312_v28 = vpop.f32.mrf.mxu0  ;;  %v1384_v29 = vpop.f32.mrf.mxu1 }
  0xf3   :  { %v580_v58 = vadd.f32 %v1311_v48, %v1831_v50 }
  0xf4   :  { %v1313_v30 = vpop.f32.mrf.mxu0  ;;  %v1385_v31 = vpop.f32.mrf.mxu1 }
  0xf5   :  { %v1816_v32 = vadd.f32 %v1385_v31, %v1384_v29  ;;  %v1314_v1 = vadd.f32 %v1313_v30, %v1312_v28 }
  0xf6   :  { %v1315_v33 = vpop.f32.mrf.mxu0  ;;  %v1387_v34 = vpop.f32.mrf.mxu1 }
  0xf7   :  { %v585_v21 = vadd.f32 %v1314_v1, %v1831_v50 }
  0xf8   :  { %v1316_v35 = vpop.f32.mrf.mxu0  ;;  %v1388_v36 = vpop.f32.mrf.mxu1 }
  0xf9   :  { %v1818_v37 = vadd.f32 %v1388_v36, %v1387_v34  ;;  %v1317_v8 = vadd.f32 %v1316_v35, %v1315_v33 }
  0xfa   :  { %v1318_v38 = vpop.f32.mrf.mxu0  ;;  %v1820_v39 = vpop.f32.mrf.mxu1 }
  0xfb   :  { %v588_v30 = vadd.f32 %v1317_v8, %v1831_v50 }
  0xfc   :  { %v1319_v40 = vpop.f32.mrf.mxu0  ;;  %v1822_v41 = vpop.f32.mrf.mxu1 }
  0xfd   :  { %v1320_v61 = vadd.f32 %v1319_v40, %v1318_v38 }
  0xfe   :  { %v1321_v42 = vpop.f32.mrf.mxu0  ;;  %v1824_v43 = vpop.f32.mrf.mxu1 }
  0xff   :  { %v593_v15 = vadd.f32 %v1320_v61, %v1831_v50 }
 0x100   :  { %v1322_v45 = vpop.f32.mrf.mxu0  ;;  %v1826_v46 = vpop.f32.mrf.mxu1 }
 0x101   :  { %v1323_v4 = vadd.f32 %v1322_v45, %v1321_v42 }
 0x102   :  { %v1324_v49 = vpop.f32.mrf.mxu0  ;;  %v1438_v51 = vpop.f32.mrf.mxu1 }
 0x103   :  { %v738_v56 = vadd.f32 %v1438_v51, %v577_v53  ;;  %v596_v23 = vadd.f32 %v1323_v4, %v1831_v50 }
 0x104   :  { %v1325_v54 = vpop.f32.mrf.mxu0  ;;  %v729_v55 = vpop.f32.mrf.mxu1 }
 0x105   :  { %v730_v62 = vadd.f32 %v729_v55, %v569_v57  ;;  %v858_v5 = vmax.f32 %v738_v56, 0.0  ;;  %v1326_v31 = vadd.f32 %v1325_v54, %v1324_v49 }
 0x106   :  { %v1327_v59 = vpop.f32.mrf.mxu0  ;;  %v1439_v60 = vpop.f32.mrf.mxu1 }
 0x107   :  { %v741_v63 = vadd.f32 %v1439_v60, %v580_v58  ;;  %v856_v11 = vmax.f32 %v730_v62, 0.0  ;;  %v601_v56 = vadd.f32 %v1326_v31, %v1831_v50 }
 0x108   :  { %v1328_v2 = vpop.f32.mrf.mxu0  ;;  %v732_v3 = vpop.f32.mrf.mxu1 }
 0x109   :  { %v859_v6 = vmax.f32 %v741_v63, 0.0  ;;  %v733_v7 = vadd.f32 %v732_v3, %v572_v0  ;;  %v1329_v42 = vadd.f32 %v1328_v2, %v1327_v59 }
 0x10a   :  { %v1330_v9 = vpop.f32.mrf.mxu0  ;;  %v1442_v10 = vpop.f32.mrf.mxu1 }
 0x10b   :  { %v1197_v13 = vpack.c.bf16 %v859_v6, %v858_v5  ;;  %v857_v14 = vmax.f32 %v733_v7, 0.0  ;;  %v754_v20 = vadd.f32 %v1442_v10, %v593_v15  ;;  %v604_v62 = vadd.f32 %v1329_v42, %v1831_v50 }
 0x10c   :  { %v1331_v16 = vpop.f32.mrf.mxu0  ;;  %v745_v18 = vpop.f32.mrf.mxu1 }
 0x10d   :  { %1269 = vst [vmem:[%s1932_s3 + $0x8] sm:$0xff] %v1197_v13   ;;  %v1192_v19 = vpack.c.bf16 %v857_v14, %v856_v11  ;;  %v1332_v26 = vadd.f32 %v1331_v16, %v1330_v9  ;;  %v746_v28 = vadd.f32 %v745_v18, %v585_v21  ;;  %v862_v35 = vmax.f32 %v754_v20, 0.0 }
 0x10e   :  { %v1333_v24 = vpop.f32.mrf.mxu0  ;;  %v1443_v25 = vpop.f32.mrf.mxu1 }
 0x10f   :  { %1193 = vst [vmem:[%s1932_s3] sm:$0xff] %v1192_v19   ;;  %v757_v29 = vadd.f32 %v1443_v25, %v596_v23  ;;  %v860_v47 = vmax.f32 %v746_v28, 0.0  ;;  %v609_v52 = vadd.f32 %v1332_v26, %v1831_v50 }
 0x110   :  { %v1334_v33 = vpop.f32.mrf.mxu0  ;;  %v748_v34 = vpop.f32.mrf.mxu1 }
 0x111   :  { %v863_v36 = vmax.f32 %v757_v29, 0.0  ;;  %v1335_v38 = vadd.f32 %v1334_v33, %v1333_v24  ;;  %v749_v40 = vadd.f32 %v748_v34, %v588_v30 }
 0x112   :  { %v1336_v44 = vpop.f32.mrf.mxu0  ;;  %v1446_v45 = vpop.f32.mrf.mxu1 }
 0x113   :  { %v1207_v48 = vpack.c.bf16 %v863_v36, %v862_v35  ;;  %v861_v51 = vmax.f32 %v749_v40, 0.0  ;;  %v770_v54 = vadd.f32 %v1446_v45, %v609_v52  ;;  %v612_v57 = vadd.f32 %v1335_v38, %v1831_v50 }
 0x114   :  { %v1337_v53 = vpop.f32.mrf.mxu0  ;;  %v761_v55 = vpop.f32.mrf.mxu1 }
 0x115   :  { %1271 = vst [vmem:[%s1932_s3 + $0x18] sm:$0xff] %v1207_v48   ;;  %v1202_v49 = vpack.c.bf16 %v861_v51, %v860_v47  ;;  %v762_v60 = vadd.f32 %v761_v55, %v601_v56  ;;  %v866_v1 = vmax.f32 %v770_v54, 0.0  ;;  %v1338_v2 = vadd.f32 %v1337_v53, %v1336_v44 }
 0x116   :  { %v1339_v58 = vpop.f32.mrf.mxu0  ;;  %v1447_v59 = vpop.f32.mrf.mxu1 }
 0x117   :  { %1270 = vst [vmem:[%s1932_s3 + $0x10] sm:$0xff] %v1202_v49   ;;  %v773_v61 = vadd.f32 %v1447_v59, %v612_v57  ;;  %v864_v7 = vmax.f32 %v762_v60, 0.0  ;;  %v617_v16 = vadd.f32 %v1338_v2, %v1831_v50 }
 0x118   :  { %v1340_v63 = vpop.f32.mrf.mxu0  ;;  %v764_v0 = vpop.f32.mrf.mxu1 }
 0x119   :  { %v867_v3 = vmax.f32 %v773_v61, 0.0  ;;  %v765_v4 = vadd.f32 %v764_v0, %v604_v62  ;;  %v1341_v9 = vadd.f32 %v1340_v63, %v1339_v58 }
 0x11a   :  { %v1342_v5 = vpop.f32.mrf.mxu0  ;;  %v1450_v6 = vpop.f32.mrf.mxu1 }
 0x11b   :  { %v1217_v8 = vpack.c.bf16 %v867_v3, %v866_v1  ;;  %v865_v10 = vmax.f32 %v765_v4, 0.0  ;;  %v620_v23 = vadd.f32 %v1341_v9, %v1831_v50 }
 0x11c   :  { %v1343_v11 = vpop.f32.mrf.mxu0  ;;  %v777_v13 = vpop.f32.mrf.mxu1 }
 0x11d   :  { %1273 = vst [vmem:[%s1932_s3 + $0x28] sm:$0xff] %v1217_v8   ;;  %v1212_v14 = vpack.c.bf16 %v865_v10, %v864_v7  ;;  %v1344_v15 = vadd.f32 %v1343_v11, %v1342_v5  ;;  %v778_v21 = vadd.f32 %v777_v13, %v617_v16 }
 0x11e   :  { %v1345_v18 = vpop.f32.mrf.mxu0  ;;  %v1451_v19 = vpop.f32.mrf.mxu1 }
 0x11f   :  { %1272 = vst [vmem:[%s1932_s3 + $0x20] sm:$0xff] %v1212_v14   ;;  %v625_v20 = vadd.f32 %v1344_v15, %v1831_v50  ;;  %v868_v33 = vmax.f32 %v778_v21, 0.0  ;;  %v673_v14 = vadd.f32 %v1812_v22, %v1831_v50  ;;  %v676_v21 = vadd.f32 %v1814_v27, %v1831_v50 }
 0x120   :  { %v1346_v24 = vpop.f32.mrf.mxu0  ;;  %v780_v25 = vpop.f32.mrf.mxu1  ;;  %v668_v27 = vadd.f32 %v1810_v17, %v1831_v50 }
 0x121   :  { %v1347_v26 = vadd.f32 %v1346_v24, %v1345_v18  ;;  %v781_v28 = vadd.f32 %v780_v25, %v620_v23  ;;  %v786_v31 = vadd.f32 %v1450_v6, %v625_v20  ;;  %v1392_v23 = vadd.f32 %v1822_v41, %v1820_v39 }
 0x122   :  { %v1348_v29 = vpop.f32.mrf.mxu0  ;;  %v1454_v30 = vpop.f32.mrf.mxu1  ;;  %v665_v24 = vadd.f32 %v1808_v12, %v1831_v50 }
 0x123   :  { %v628_v34 = vadd.f32 %v1347_v26, %v1831_v50  ;;  %v869_v35 = vmax.f32 %v781_v28, 0.0  ;;  %v870_v48 = vmax.f32 %v786_v31, 0.0  ;;  %v1395_v31 = vadd.f32 %v1826_v46, %v1824_v43 }
 0x124   :  { %v1349_v36 = vpop.f32.mrf.mxu0  ;;  %v793_v38 = vpop.f32.mrf.mxu1  ;;  %v689_v46 = vadd.f32 %v1392_v23, %v1831_v50 }
 0x125   :  { %v789_v40 = vadd.f32 %v1451_v19, %v628_v34  ;;  %v1222_v42 = vpack.c.bf16 %v869_v35, %v868_v33  ;;  %v1350_v44 = vadd.f32 %v1349_v36, %v1348_v29 }
 0x126   :  { %v1351_v45 = vpop.f32.mrf.mxu0  ;;  %v1455_v47 = vpop.f32.mrf.mxu1 }
 0x127   :  { %v871_v51 = vmax.f32 %v789_v40, 0.0  ;;  %1274 = vst [vmem:[%s1932_s3 + $0x30] sm:$0xff] %v1222_v42   ;;  %v633_v52 = vadd.f32 %v1350_v44, %v1831_v50 }
 0x128   :  { %v1352_v53 = vpop.f32.mrf.mxu0  ;;  %v796_v55 = vpop.f32.mrf.mxu1 }
 0x129   :  { %v1227_v49 = vpack.c.bf16 %v871_v51, %v870_v48  ;;  %v1353_v54 = vadd.f32 %v1352_v53, %v1351_v45  ;;  %v794_v58 = vadd.f32 %v793_v38, %v633_v52 }
 0x12a   :  { %v1354_v56 = vpop.f32.mrf.mxu0  ;;  %v1871_v57 = vpop.f32.mrf.mxu1 }
 0x12b   :  { %1275 = vst [vmem:[%s1932_s3 + $0x38] sm:$0xff] %v1227_v49   ;;  %v636_v59 = vadd.f32 %v1353_v54, %v1831_v50  ;;  %v872_v2 = vmax.f32 %v794_v58, 0.0  ;;  %v692_v49 = vadd.f32 %v1395_v31, %v1831_v50 }
 0x12c   :  { %v1355_v60 = vpop.f32.mrf.mxu0  ;;  %v809_v61 = vpop.f32.mrf.mxu1 }
 0x12d   :  { %v797_v62 = vadd.f32 %v796_v55, %v636_v59  ;;  %v1356_v63 = vadd.f32 %v1355_v60, %v1354_v56  ;;  %v681_v56 = vadd.f32 %v1816_v32, %v1831_v50 }
 0x12e   :  { %v1357_v0 = vpop.f32.mrf.mxu0  ;;  %v1877_v1 = vpop.f32.mrf.mxu1 }
 0x12f   :  { %v873_v3 = vmax.f32 %v797_v62, 0.0  ;;  %v641_v4 = vadd.f32 %v1356_v63, %v1831_v50 }
 0x130   :  { %v1358_v5 = vpop.f32.mrf.mxu0  ;;  %v812_v6 = vpop.f32.mrf.mxu1 }
 0x131   :  { %v1232_v7 = vpack.c.bf16 %v873_v3, %v872_v2  ;;  %v1359_v8 = vadd.f32 %v1358_v5, %v1357_v0  ;;  %v802_v11 = vadd.f32 %v1454_v30, %v641_v4  ;;  %v684_v3 = vadd.f32 %v1818_v37, %v1831_v50 }
 0x132   :  { %v1360_v9 = vpop.f32.mrf.mxu0  ;;  %v1462_v10 = vpop.f32.mrf.mxu1 }
 0x133   :  { %1276 = vst [vmem:[%s1932_s3 + $0x40] sm:$0xff] %v1232_v7   ;;  %v644_v13 = vadd.f32 %v1359_v8, %v1831_v50  ;;  %v834_v19 = vadd.f32 %v1462_v10, %v673_v14  ;;  %v874_v28 = vmax.f32 %v802_v11, 0.0 }
 0x134   :  { %v1361_v15 = vpop.f32.mrf.mxu0  ;;  %v825_v16 = vpop.f32.mrf.mxu1 }
 0x135   :  { %v805_v18 = vadd.f32 %v1455_v47, %v644_v13  ;;  %v1362_v20 = vadd.f32 %v1361_v15, %v1360_v9  ;;  %v826_v33 = vadd.f32 %v825_v16, %v665_v24  ;;  %v882_v41 = vmax.f32 %v834_v19, 0.0 }
 0x136   :  { %v1363_v25 = vpop.f32.mrf.mxu0  ;;  %v1463_v26 = vpop.f32.mrf.mxu1 }
 0x137   :  { %v875_v29 = vmax.f32 %v805_v18, 0.0  ;;  %v649_v22 = vadd.f32 %v1362_v20, %v1831_v50  ;;  %v837_v30 = vadd.f32 %v1463_v26, %v676_v21  ;;  %v880_v47 = vmax.f32 %v826_v33, 0.0 }
 0x138   :  { %v1364_v34 = vpop.f32.mrf.mxu0  ;;  %v828_v35 = vpop.f32.mrf.mxu1 }
 0x139   :  { %v1237_v39 = vpack.c.bf16 %v875_v29, %v874_v28  ;;  %v883_v36 = vmax.f32 %v837_v30, 0.0  ;;  %v1365_v12 = vadd.f32 %v1364_v34, %v1363_v25  ;;  %v829_v38 = vadd.f32 %v828_v35, %v668_v27 }
 0x13a   :  { %v1366_v40 = vpop.f32.mrf.mxu0  ;;  %v1466_v42 = vpop.f32.mrf.mxu1  ;;  %v810_v44 = vadd.f32 %v809_v61, %v649_v22 }
 0x13b   :  { %1277 = vst [vmem:[%s1932_s3 + $0x48] sm:$0xff] %v1237_v39   ;;  %v1257_v45 = vpack.c.bf16 %v883_v36, %v882_v41  ;;  %v652_v43 = vadd.f32 %v1365_v12, %v1831_v50  ;;  %v881_v17 = vmax.f32 %v829_v38, 0.0  ;;  %v850_v53 = vadd.f32 %v1466_v42, %v689_v46 }
 0x13c   :  { %v1367_v48 = vpop.f32.mrf.mxu0  ;;  %v841_v51 = vpop.f32.mrf.mxu1  ;;  %v876_v60 = vmax.f32 %v810_v44, 0.0 }
 0x13d   :  { %1281 = vst [vmem:[%s1932_s3 + $0x68] sm:$0xff] %v1257_v45   ;;  %v813_v52 = vadd.f32 %v812_v6, %v652_v43  ;;  %v1368_v55 = vadd.f32 %v1367_v48, %v1366_v40  ;;  %v1252_v54 = vpack.c.bf16 %v881_v17, %v880_v47  ;;  %v842_v0 = vadd.f32 %v841_v51, %v681_v56 }
 0x13e   :  { %v1369_v58 = vpop.f32.mrf.mxu0  ;;  %v1467_v59 = vpop.f32.mrf.mxu1  ;;  %v886_v6 = vmax.f32 %v850_v53, 0.0 }
 0x13f   :  { %v877_v61 = vmax.f32 %v813_v52, 0.0  ;;  %v657_v62 = vadd.f32 %v1368_v55, %v1831_v50  ;;  %v853_v63 = vadd.f32 %v1467_v59, %v692_v49  ;;  %1280 = vst [vmem:[%s1932_s3 + $0x60] sm:$0xff] %v1252_v54   ;;  %v884_v13 = vmax.f32 %v842_v0, 0.0 }
 0x140   :  { %v1370_v2 = vpop.f32.mrf.mxu0  ;;  %v844_v4 = vpop.f32.mrf.mxu1 }
 0x141   :  { %v1242_v5 = vpack.c.bf16 %v877_v61, %v876_v60  ;;  %v887_v32 = vmax.f32 %v853_v63, 0.0  ;;  %v1371_v7 = vadd.f32 %v1370_v2, %v1369_v58  ;;  %v845_v8 = vadd.f32 %v844_v4, %v684_v3 }
 0x142   :  { %v818_v9 = vadd.f32 %v1871_v57, %v657_v62 }
 0x143   :  { %1278 = vst [vmem:[%s1932_s3 + $0x50] sm:$0xff] %v1242_v5   ;;  %v1267_v10 = vpack.c.bf16 %v887_v32, %v886_v6  ;;  %v660_v11 = vadd.f32 %v1371_v7, %v1831_v50  ;;  %v885_v14 = vmax.f32 %v845_v8, 0.0 }
 0x144   :  { %v878_v16 = vmax.f32 %v818_v9, 0.0 }
 0x145   :  { %1283 = vst [vmem:[%s1932_s3 + $0x78] sm:$0xff] %v1267_v10   ;;  %v821_v37 = vadd.f32 %v1877_v1, %v660_v11  ;;  %v1262_v15 = vpack.c.bf16 %v885_v14, %v884_v13 }
 0x147   :  { %v879_v18 = vmax.f32 %v821_v37, 0.0  ;;  %1282 = vst [vmem:[%s1932_s3 + $0x70] sm:$0xff] %v1262_v15  }
 0x149   :  { %v1247_v19 = vpack.c.bf16 %v879_v18, %v878_v16 }
 0x14b   :  { %1279 = vst [vmem:[%s1932_s3 + $0x58] sm:$0xff] %v1247_v19  }

// kernel: cnn_lstm_attention_gat_forward.7
= control target key start
LH: loop header
LB: loop body
LE: loop exit
PB: predicated region body
PF: predicated region fallthrough
CT: control target
= control target key end

     0   :  { %s1412_s12 = smov 0   ;;  %s1605_s0 = inlined_call_operand.vmem [shape: bf16[384,384], index: 0, kind: input, shape index: {}]   ;;  %s1606_s1 = inlined_call_operand.vmem [shape: bf16[384,128], index: 1, kind: input, shape index: {}]   ;;  %s1607_s2 = inlined_call_operand.vmem [shape: f32[1,128], index: 2, kind: input, shape index: {}]   ;;  %s1608_s3 = inlined_call_operand.vmem [shape: f32[16,128], index: 3, kind: output, shape index: {}]  }
   0x1 LB: > { %s1418_s13 = sadd.s32 4294967295, %s1390_s12   ;;  %p1089_p0 = scmp.ge.s32.totalorder %s1390_s12, 1  ;;  %s1390_s12 = sphi %s1412_s12, %s13_s12  }
   0x2   : > { %p139_p1 = scmp.lt.s32.totalorder %s1390_s12, 3 }
   0x4   : > { %p140_p2 = pnand %p1089_p0, %p139_p1 }
   0x5   : > { %s163_s26 = smul.u32 (!%p140_p2), 24, %s1418_s13  ;;  %p170_p4 = scmp.lt.s32.totalorder (!%p140_p2), %s1418_s13, 1 }
   0x6   : > { %143 = sbr.rel (%p140_p2) target bundleno = 366 (0x16e), region = 32 }
   0x7   : > { %p164_p3 = scmp.lt.s32.totalorder (!%p140_p2), %s163_s26, 47 }
   0xb   : > { %v1312_v0 = vld [vmem:[%s1606_s1 + $0x78] sm:$0xff]   ;;  %v1314_v2 = vld [vmem:[%s1606_s1 + $0x70] sm:$0xff]   ;;  %v1317_v5 = vld [vmem:[%s1606_s1 + $0x68] sm:$0xff]   ;;  %s1610_s26 = smov (!%p164_p3, %s163_s26), 47  ;;  %vm924_vm0 = vcmask 1045504   ;;  %vm1017_vm1 = vcmask 1040384  }
   0xc   : > { %v1313_v1 = vld [vmem:[%s1606_s1 + $0x38] sm:$0xff]   ;;  %1155 = vmatprep.subr.bf16.mxu0 %v1312_v0  ;;  %v1316_v4 = vld [vmem:[%s1606_s1 + $0x30] sm:$0xff]   ;;  %v1319_v7 = vld [vmem:[%s1606_s1 + $0x28] sm:$0xff]   ;;  %s1303_s22 = smul.u32 12, %s1610_s26  ;;  %vm1019_vm2 = vcmask 1041408   ;;  %vm1021_vm3 = vcmask 1042432  }
   0xd   : > { %1156 = vmatpush3.bf16.msra.mxu0 %v1313_v1  ;;  %v1315_v3 = vld [vmem:[%s1606_s1 + $0xb8] sm:$0xff]   ;;  %v1318_v6 = vld [vmem:[%s1606_s1 + $0xb0] sm:$0xff]   ;;  %v1320_v8 = vld [vmem:[%s1606_s1 + $0x60] sm:$0xff]   ;;  %s1612_s13 = smov (!%p170_p4, %s1418_s13), 1  ;;  %vm1023_vm4 = vcmask 1043456   ;;  %vm1025_vm5 = vcmask 1044480  }
   0xe   : > { %1157 = vmatprep.subr.bf16.mxu0 %v1314_v2  ;;  %1263 = vmatprep.subr.bf16.mxu1 %v1315_v3  ;;  %v1321_v9 = vld [vmem:[%s1606_s1 + $0xa8] sm:$0xff]   ;;  %v1322_v10 = vld [vmem:[%s1606_s1 + $0x20] sm:$0xff]   ;;  %v1323_v11 = vld [vmem:[%s1606_s1 + $0x58] sm:$0xff]   ;;  %s1486_s6 = scalar_lea.vmem %s1605_s0, %s1303_s22  ;;  %s1091_s19 = sshll.u32 %s1612_s13, 3  ;;  %vm1028_vm6 = vcmask 1046528  }
   0xf   : > { %1264 = vmatpush3.bf16.msra.mxu1 %v1315_v3  ;;  %v1324_v12 = vld [vmem:[%s1606_s1 + $0xa0] sm:$0xff]   ;;  %v1325_v13 = vld [vmem:[%s1606_s1 + $0x18] sm:$0xff]   ;;  %v1326_v15 = vld [vmem:[%s1606_s1 + $0x50] sm:$0xff]   ;;  %s173_s22 = scalar_lea.vmem %s1608_s3, %s1091_s19 }
  0x10   : > { %1265 = vmatprep.subr.bf16.mxu1 %v1318_v6  ;;  %v1327_v14 = vld [vmem:[%s1606_s1 + $0x98] sm:$0xff]   ;;  %v1328_v16 = vld [vmem:[%s1606_s1 + $0x10] sm:$0xff]   ;;  %v1329_v18 = vld [vmem:[%s1606_s1 + $0x48] sm:$0xff]  }
  0x11   : > { %1158 = vmatpush3.bf16.msra.mxu0 %v1316_v4  ;;  %v1330_v17 = vld [vmem:[%s1606_s1 + $0x90] sm:$0xff]   ;;  %v1331_v19 = vld [vmem:[%s1606_s1 + $0x8] sm:$0xff]   ;;  %v1332_v20 = vld [vmem:[%s1606_s1 + $0x40] sm:$0xff]  }
  0x12   : > { %1159 = vmatprep.subr.bf16.mxu0 %v1317_v5  ;;  %v1333_v21 = vld [vmem:[%s1606_s1 + $0x88] sm:$0xff]   ;;  %v1337_v22 = vld [vmem:[%s1486_s6 + $0x4] ss:$12 sps:$4 sm:$0xff]   ;;  %v1344_v31 = vld [vmem:[%s1486_s6 + $0x34] ss:$12 sps:$4 sm:$0xff]  }
  0x13   : > { %1266 = vmatpush3.bf16.msra.mxu1 %v1318_v6  ;;  %v1334_v23 = vld [vmem:[%s1606_s1] sm:$0xff]   ;;  %646 = vmatprep.mubr.bf16.mxu0 %v1337_v22  ;;  %v1339_v24 = vld [vmem:[%s1486_s6 + $0x8] ss:$12 sps:$4 sm:$0xff]   ;;  %v1348_v32 = vld [vmem:[%s1486_s6 + $0x50] ss:$12 sps:$4 sm:$0xff]  }
  0x14   : > { %1267 = vmatprep.subr.bf16.mxu1 %v1321_v9  ;;  %v1338_v25 = vld [vmem:[%s1606_s1 + $0x80] sm:$0xff]   ;;  %1279 = vmatprep.mubr.bf16.mxu1 %v1339_v24  ;;  %v1341_v27 = vld [vmem:[%s1486_s6 + $0x1c] ss:$12 sps:$4 sm:$0xff]   ;;  %v1349_v35 = vld [vmem:[%s1486_s6 + $0x4c] ss:$12 sps:$4 sm:$0xff]  }
  0x15   : > { %1160 = vmatpush3.bf16.msra.mxu0 %v1319_v7  ;;  %v1335_v26 = vld [vmem:[%s1486_s6] ss:$12 sps:$4 sm:$0xff]   ;;  %v1347_v29 = vld [vmem:[%s1486_s6 + $0x38] ss:$12 sps:$4 sm:$0xff]   ;;  %v1355_v33 = vld [vmem:[%s1486_s6 + $0x68] ss:$12 sps:$4 sm:$0xff]  }
  0x16   : > { %1161 = vmatprep.subr.bf16.mxu0 %v1320_v8  ;;  %v1340_v28 = vld [vmem:[%s1486_s6 + $0x20] ss:$12 sps:$4 sm:$0xff]   ;;  %v1343_v30 = vld [vmem:[%s1486_s6 + $0x18] ss:$12 sps:$4 sm:$0xff]   ;;  %v1346_v34 = vld [vmem:[%s1486_s6 + $0x30] ss:$12 sps:$4 sm:$0xff]  }
  0x17   : > { %1268 = vmatpush3.bf16.msra.mxu1 %v1321_v9  ;;  %v1356_v36 = vld [vmem:[%s1486_s6 + $0x80] ss:$12 sps:$4 sm:$0xff]   ;;  %v1363_v37 = vld [vmem:[%s1486_s6 + $0x98] ss:$12 sps:$4 sm:$0xff]   ;;  %v1351_v38 = vld [vmem:[%s1486_s6 + $0x48] ss:$12 sps:$4 sm:$0xff]  }
  0x18   : > { %1269 = vmatprep.subr.bf16.mxu1 %v1324_v12  ;;  %v1352_v39 = vld [vmem:[%s1486_s6 + $0x64] ss:$12 sps:$4 sm:$0xff]   ;;  %v1371_v41 = vld [vmem:[%s1486_s6 + $0xc8] ss:$12 sps:$4 sm:$0xff]   ;;  %v1354_v42 = vld [vmem:[%s1486_s6 + $0x60] ss:$12 sps:$4 sm:$0xff]  }
  0x19   : > { %1162 = vmatpush3.bf16.msra.mxu0 %v1322_v10  ;;  %v1364_v40 = vld [vmem:[%s1486_s6 + $0xb0] ss:$12 sps:$4 sm:$0xff]   ;;  %v1372_v44 = vld [vmem:[%s1486_s6 + $0xe0] ss:$12 sps:$4 sm:$0xff]   ;;  %v1379_v45 = vld [vmem:[%s1486_s6 + $0xf8] ss:$12 sps:$4 sm:$0xff]  }
  0x1a   : > { %1163 = vmatprep.subr.bf16.mxu0 %v1323_v11  ;;  %v1357_v43 = vld [vmem:[%s1486_s6 + $0x7c] ss:$12 sps:$4 sm:$0xff]   ;;  %v1359_v46 = vld [vmem:[%s1486_s6 + $0x78] ss:$12 sps:$4 sm:$0xff]   ;;  %v1360_v47 = vld [vmem:[%s1486_s6 + $0x94] ss:$12 sps:$4 sm:$0xff]  }
  0x1b   : > { %1270 = vmatpush3.bf16.msra.mxu1 %v1324_v12  ;;  %v1380_v48 = vld [vmem:[%s1486_s6 + $0x110] ss:$12 sps:$4 sm:$0xff]   ;;  %v1365_v50 = vld [vmem:[%s1486_s6 + $0xac] ss:$12 sps:$4 sm:$0xff]   ;;  %v1367_v51 = vld [vmem:[%s1486_s6 + $0xa8] ss:$12 sps:$4 sm:$0xff]  }
  0x1c   : > { %1271 = vmatprep.subr.bf16.mxu1 %v1327_v14  ;;  %v1362_v49 = vld [vmem:[%s1486_s6 + $0x90] ss:$12 sps:$4 sm:$0xff]   ;;  %v1370_v53 = vld [vmem:[%s1486_s6 + $0xc0] ss:$12 sps:$4 sm:$0xff]   ;;  %v1375_v55 = vld [vmem:[%s1486_s6 + $0xd8] ss:$12 sps:$4 sm:$0xff]  }
  0x1d   : > { %1164 = vmatpush3.bf16.msra.mxu0 %v1325_v13  ;;  %v1368_v52 = vld [vmem:[%s1486_s6 + $0xc4] ss:$12 sps:$4 sm:$0xff]   ;;  %v1373_v54 = vld [vmem:[%s1486_s6 + $0xdc] ss:$12 sps:$4 sm:$0xff]   ;;  %v1376_v56 = vld [vmem:[%s1486_s6 + $0xf4] ss:$12 sps:$4 sm:$0xff]  }
  0x1e   : > { %1165 = vmatprep.subr.bf16.mxu0 %v1326_v15  ;;  %v1378_v57 = vld [vmem:[%s1486_s6 + $0xf0] ss:$12 sps:$4 sm:$0xff]   ;;  %v1381_v58 = vld [vmem:[%s1486_s6 + $0x10c] ss:$12 sps:$4 sm:$0xff]   ;;  %v1383_v59 = vld [vmem:[%s1486_s6 + $0x108] ss:$12 sps:$4 sm:$0xff]  }
  0x1f   : > { %1272 = vmatpush3.bf16.msra.mxu1 %v1327_v14  ;;  %v1539_v62 = vld [vmem:[%s1607_s2] ss:$0 sm:$0xff] }
  0x20   : > { %1273 = vmatprep.subr.bf16.mxu1 %v1330_v17 }
  0x21   : > { %1166 = vmatpush3.bf16.msra.mxu0 %v1328_v16 }
  0x22   : > { %1167 = vmatprep.subr.bf16.mxu0 %v1329_v18 }
  0x23   : > { %1274 = vmatpush3.bf16.msra.mxu1 %v1330_v17 }
  0x24   : > { %1275 = vmatprep.subr.bf16.mxu1 %v1333_v21 }
  0x25   : > { %1168 = vmatpush3.bf16.msra.mxu0 %v1331_v19 }
  0x26   : > { %1169 = vmatprep.subr.bf16.mxu0 %v1332_v20 }
  0x27   : > { %1276 = vmatpush3.bf16.msra.mxu1 %v1333_v21 }
  0x28   : > { %1277 = vmatprep.subr.bf16.mxu1 %v1338_v25 }
  0x29   : > { %1170 = vmatpush3.bf16.msra.mxu0 %v1334_v23 }
  0x2b   : > { %1278 = vmatpush3.bf16.msra.mxu1 %v1338_v25 }
  0x2c   : > { %647 = vmatmul.mubr.bf16.vlgmr.msra.gmra.mxu0 %v1335_v26 }
  0x2d   : > { %654 = vmatprep.mubr.bf16.mxu0 %v1341_v27 }
  0x2e   : > { %1280 = vmatmul.mubr.bf16.vlgmr.msra.gmra.mxu1 %v1340_v28 }
  0x2f   : > { %1283 = vmatprep.mubr.bf16.mxu1 %v1347_v29 }
  0x34   : > { %655 = vmatmul.mubr.bf16.gmra.mxu0 %v1343_v30 }
  0x35   : > { %662 = vmatprep.mubr.bf16.mxu0 %v1344_v31 }
  0x36   : > { %1284 = vmatmul.mubr.bf16.gmra.mxu1 %v1348_v32 }
  0x37   : > { %1287 = vmatprep.mubr.bf16.mxu1 %v1355_v33 }
  0x3c   : > { %663 = vmatmul.mubr.bf16.gmra.mxu0 %v1346_v34 }
  0x3d   : > { %670 = vmatprep.mubr.bf16.mxu0 %v1349_v35 }
  0x3e   : > { %1288 = vmatmul.mubr.bf16.gmra.mxu1 %v1356_v36 }
  0x3f   : > { %1291 = vmatprep.mubr.bf16.mxu1 %v1363_v37 }
  0x44   : > { %671 = vmatmul.mubr.bf16.gmra.mxu0 %v1351_v38 }
  0x45   : > { %678 = vmatprep.mubr.bf16.mxu0 %v1352_v39 }
  0x46   : > { %1292 = vmatmul.mubr.bf16.gmra.mxu1 %v1364_v40 }
  0x47   : > { %1295 = vmatprep.mubr.bf16.mxu1 %v1371_v41 }
  0x4c   : > { %679 = vmatmul.mubr.bf16.gmra.mxu0 %v1354_v42 }
  0x4d   : > { %686 = vmatprep.mubr.bf16.mxu0 %v1357_v43 }
  0x4e   : > { %1296 = vmatmul.mubr.bf16.gmra.mxu1 %v1372_v44 }
  0x4f   : > { %1299 = vmatprep.mubr.bf16.mxu1 %v1379_v45 }
  0x54   : > { %687 = vmatmul.mubr.bf16.gmra.mxu0 %v1359_v46 }
  0x55   : > { %694 = vmatprep.mubr.bf16.mxu0 %v1360_v47 }
  0x56   : > { %1300 = vmatmul.mubr.bf16.gmra.mxu1 %v1380_v48 }
  0x5c   : > { %695 = vmatmul.mubr.bf16.gmra.mxu0 %v1362_v49 }
  0x5d   : > { %702 = vmatprep.mubr.bf16.mxu0 %v1365_v50 }
  0x64   : > { %703 = vmatmul.mubr.bf16.gmra.mxu0 %v1367_v51 }
  0x65   : > { %710 = vmatprep.mubr.bf16.mxu0 %v1368_v52 }
  0x6c   : > { %711 = vmatmul.mubr.bf16.gmra.mxu0 %v1370_v53 }
  0x6d   : > { %718 = vmatprep.mubr.bf16.mxu0 %v1373_v54 }
  0x74   : > { %719 = vmatmul.mubr.bf16.gmra.mxu0 %v1375_v55 }
  0x75   : > { %726 = vmatprep.mubr.bf16.mxu0 %v1376_v56 }
  0x7c   : > { %727 = vmatmul.mubr.bf16.gmra.mxu0 %v1378_v57 }
  0x7d   : > { %734 = vmatprep.mubr.bf16.mxu0 %v1381_v58 }
  0x84   : > { %735 = vmatmul.mubr.bf16.gmra.mxu0 %v1383_v59 }
  0xec   : > { %v1171_v60 = vpop.f32.mrf.mxu0 }
  0xee   : > { %v1172_v61 = vpop.f32.mrf.mxu0  ;;  %v1281_v0 = vpop.f32.mrf.mxu1 }
  0xef   : > { %v1173_v63 = vadd.f32 %v1172_v61, %v1171_v60 }
  0xf0   : > { %v1174_v1 = vpop.f32.mrf.mxu0  ;;  %v777_v3 = vpop.f32.mrf.mxu1 }
  0xf1   : > { %v649_v2 = vadd.f32 %v1173_v63, %v1539_v62 }
  0xf2   : > { %v1175_v4 = vpop.f32.mrf.mxu0  ;;  %v1282_v7 = vpop.f32.mrf.mxu1 }
  0xf3   : > { %v1176_v5 = vadd.f32 %v1175_v4, %v1174_v1  ;;  %v778_v6 = vadd.f32 %v777_v3, %v649_v2 }
  0xf4   : > { %v1177_v8 = vpop.f32.mrf.mxu0  ;;  %v780_v11 = vpop.f32.mrf.mxu1 }
  0xf5   : > { %v872_v9 = vmax.f32 %v778_v6, 0.0  ;;  %v652_v10 = vadd.f32 %v1176_v5, %v1539_v62 }
  0xf6   : > { %v1178_v12 = vpop.f32.mrf.mxu0  ;;  %v1285_v16 = vpop.f32.mrf.mxu1 }
  0xf7   : > { %v1179_v13 = vadd.f32 %v1178_v12, %v1177_v8  ;;  %v781_v14 = vadd.f32 %v780_v11, %v652_v10 }
  0xf8   : > { %v1180_v15 = vpop.f32.mrf.mxu0  ;;  %v793_v24 = vpop.f32.mrf.mxu1 }
  0xf9   : > { %v657_v17 = vadd.f32 %v1179_v13, %v1539_v62  ;;  %v873_v18 = vmax.f32 %v781_v14, 0.0 }
  0xfa   : > { %v1181_v19 = vpop.f32.mrf.mxu0  ;;  %v1286_v31 = vpop.f32.mrf.mxu1 }
  0xfb   : > { %v786_v20 = vadd.f32 %v1281_v0, %v657_v17  ;;  %v923_v21 = vadd.f32 %v873_v18, %v872_v9  ;;  %v1182_v22 = vadd.f32 %v1181_v19, %v1180_v15 }
  0xfc   : > { %v1183_v23 = vpop.f32.mrf.mxu0  ;;  %v796_v38 = vpop.f32.mrf.mxu1 }
  0xfd   : > { %v874_v25 = vmax.f32 %v786_v20, 0.0  ;;  %v660_v26 = vadd.f32 %v1182_v22, %v1539_v62 }
  0xfe   : > { %v1184_v27 = vpop.f32.mrf.mxu0  ;;  %v1289_v49 = vpop.f32.mrf.mxu1 }
  0xff   : > { %898 = vst [vmem:[#allocation2 + $0x10] sm:$0xff] %v874_v25  ;;  %v789_v28 = vadd.f32 %v1282_v7, %v660_v26  ;;  %v1185_v29 = vadd.f32 %v1184_v27, %v1183_v23 }
 0x100   : > { %v1186_v30 = vpop.f32.mrf.mxu0  ;;  %v809_v57 = vpop.f32.mrf.mxu1 }
 0x101   : > { %v875_v32 = vmax.f32 %v789_v28, 0.0  ;;  %v665_v33 = vadd.f32 %v1185_v29, %v1539_v62 }
 0x102   : > { %v1187_v34 = vpop.f32.mrf.mxu0  ;;  %v1290_v2 = vpop.f32.mrf.mxu1 }
 0x103   : > { %v1188_v35 = vadd.f32 %v1187_v34, %v1186_v30  ;;  %v794_v36 = vadd.f32 %v793_v24, %v665_v33 }
 0x104   : > { %v1189_v37 = vpop.f32.mrf.mxu0  ;;  %v812_v14 = vpop.f32.mrf.mxu1 }
 0x105   : > { %v876_v39 = vmax.f32 %v794_v36, 0.0  ;;  %v668_v40 = vadd.f32 %v1188_v35, %v1539_v62 }
 0x106   : > { %v922_v41 = vld [vmem:[#allocation2 + $0x10] sm:$0x3f]  ;;  %v1190_v42 = vpop.f32.mrf.mxu0  ;;  %v1293_v24 = vpop.f32.mrf.mxu1 }
 0x107   : > { %v925_v43 = vsel %vm924_vm0, %v922_v41, 0.0  ;;  %v936_v44 = vadd.f32 %v876_v39, %v875_v32  ;;  %v1191_v45 = vadd.f32 %v1190_v42, %v1189_v37  ;;  %v797_v46 = vadd.f32 %v796_v38, %v668_v40 }
 0x108   : > { %v926_v47 = vadd.f32 %v925_v43, %v923_v21  ;;  %v1192_v48 = vpop.f32.mrf.mxu0  ;;  %v825_v34 = vpop.f32.mrf.mxu1 }
 0x109   : > { %v673_v50 = vadd.f32 %v1191_v45, %v1539_v62  ;;  %v877_v51 = vmax.f32 %v797_v46, 0.0 }
 0x10a   : > { %v1193_v52 = vpop.f32.mrf.mxu0  ;;  %v927_v55 = vrot.slane %v926_v47, 4 }
 0x10b   : > { %v802_v53 = vadd.f32 %v1285_v16, %v673_v50  ;;  %901 = vst [vmem:[#allocation2 + $0x28] sm:$0xff] %v877_v51  ;;  %v1194_v54 = vadd.f32 %v1193_v52, %v1192_v48 }
 0x10c   : > { %v1195_v56 = vpop.f32.mrf.mxu0  ;;  %v928_v0 = vadd.f32 %v927_v55, %v926_v47  ;;  %v1294_v47 = vpop.f32.mrf.mxu1 }
 0x10d   : > { %v878_v58 = vmax.f32 %v802_v53, 0.0  ;;  %v676_v59 = vadd.f32 %v1194_v54, %v1539_v62 }
 0x10e   : > { %v1196_v60 = vpop.f32.mrf.mxu0  ;;  %v929_v11 = vrot.slane %v928_v0, 2 }
 0x10f   : > { %v805_v61 = vadd.f32 %v1286_v31, %v676_v59  ;;  %v1197_v63 = vadd.f32 %v1196_v60, %v1195_v56 }
 0x110   : > { %v1198_v1 = vpop.f32.mrf.mxu0  ;;  %v930_v21 = vadd.f32 %v929_v11, %v928_v0 }
 0x111   : > { %v879_v3 = vmax.f32 %v805_v61, 0.0  ;;  %v681_v4 = vadd.f32 %v1197_v63, %v1539_v62 }
 0x112   : > { %v935_v5 = vld [vmem:[#allocation2 + $0x28] sm:$0x3f]  ;;  %v1199_v6 = vpop.f32.mrf.mxu0  ;;  %v931_v31 = vrot.slane %v930_v21, 1 }
 0x113   : > { %v937_v7 = vsel %vm924_vm0, %v935_v5, 0.0  ;;  %v1200_v8 = vadd.f32 %v1199_v6, %v1198_v1  ;;  %v810_v9 = vadd.f32 %v809_v57, %v681_v4  ;;  %v948_v10 = vadd.f32 %v879_v3, %v878_v58  ;;  %v828_v57 = vpop.f32.mrf.mxu1 }
 0x114   : > { %v938_v12 = vadd.f32 %v937_v7, %v936_v44  ;;  %v1201_v13 = vpop.f32.mrf.mxu0  ;;  %v932_v43 = vadd.f32 %v931_v31, %v930_v21 }
 0x115   : > { %v880_v15 = vmax.f32 %v810_v9, 0.0  ;;  %v684_v16 = vadd.f32 %v1200_v8, %v1539_v62  ;;  %v1297_v3 = vpop.f32.mrf.mxu1 }
 0x116   : > { %v939_v17 = vrot.slane %v938_v12, 4  ;;  %v1202_v18 = vpop.f32.mrf.mxu0 }
 0x117   : > { %904 = vst [vmem:[#allocation2 + $0x88] sm:$0xff] %v880_v15  ;;  %v1203_v19 = vadd.f32 %v1202_v18, %v1201_v13  ;;  %v1553_v20 = vadd.f32 %v812_v14, %v684_v16 }
 0x118   : > { %v940_v22 = vadd.f32 %v939_v17, %v938_v12  ;;  %v1204_v23 = vpop.f32.mrf.mxu0  ;;  %v841_v12 = vpop.f32.mrf.mxu1 }
 0x119   : > { %v689_v25 = vadd.f32 %v1203_v19, %v1539_v62  ;;  %v881_v26 = vmax.f32 %v1553_v20, 0.0 }
 0x11a   : > { %v941_v27 = vrot.slane %v940_v22, 2  ;;  %v1205_v28 = vpop.f32.mrf.mxu0  ;;  %v1298_v21 = vpop.f32.mrf.mxu1 }
 0x11b   : > { %v1557_v29 = vadd.f32 %v1289_v49, %v689_v25  ;;  %v1206_v30 = vadd.f32 %v1205_v28, %v1204_v23 }
 0x11c   : > { %v942_v32 = vadd.f32 %v941_v27, %v940_v22  ;;  %v1207_v33 = vpop.f32.mrf.mxu0 }
 0x11d   : > { %v882_v35 = vmax.f32 %v1557_v29, 0.0  ;;  %v692_v36 = vadd.f32 %v1206_v30, %v1539_v62  ;;  %v844_v30 = vpop.f32.mrf.mxu1 }
 0x11e   : > { %v943_v37 = vrot.slane %v942_v32, 1  ;;  %v947_v38 = vld [vmem:[#allocation2 + $0x88] sm:$0x3f]  ;;  %v1208_v39 = vpop.f32.mrf.mxu0 }
 0x11f   : > { %v949_v40 = vsel %vm924_vm0, %v947_v38, 0.0  ;;  %v821_v41 = vadd.f32 %v1290_v2, %v692_v36  ;;  %v1209_v42 = vadd.f32 %v1208_v39, %v1207_v33  ;;  %v1301_v38 = vpop.f32.mrf.mxu1 }
 0x120   : > { %v944_v44 = vadd.f32 %v943_v37, %v942_v32  ;;  %v950_v45 = vadd.f32 %v949_v40, %v948_v10  ;;  %v1210_v46 = vpop.f32.mrf.mxu0 }
 0x121   : > { %v883_v48 = vmax.f32 %v821_v41, 0.0  ;;  %v697_v49 = vadd.f32 %v1209_v42, %v1539_v62 }
 0x122   : > { %v1018_v50 = vsel %vm1017_vm1, %v932_v43, %v944_v44  ;;  %v951_v51 = vrot.slane %v950_v45, 4  ;;  %v1211_v52 = vpop.f32.mrf.mxu0 }
 0x123   : > { %907 = vst [vmem:[#allocation2 + $0x98] sm:$0xff] %v883_v48  ;;  %v1212_v53 = vadd.f32 %v1211_v52, %v1210_v46  ;;  %v1563_v54 = vadd.f32 %v825_v34, %v697_v49 }
 0x124   : > { %v952_v55 = vadd.f32 %v951_v51, %v950_v45  ;;  %v1213_v56 = vpop.f32.mrf.mxu0  ;;  %v857_v45 = vpop.f32.mrf.mxu1 }
 0x125   : > { %v884_v58 = vmax.f32 %v1563_v54, 0.0  ;;  %v700_v59 = vadd.f32 %v1212_v53, %v1539_v62 }
 0x126   : > { %v953_v60 = vrot.slane %v952_v55, 2  ;;  %v1214_v61 = vpop.f32.mrf.mxu0  ;;  %v1302_v52 = vpop.f32.mrf.mxu1 }
 0x127   : > { %v1215_v63 = vadd.f32 %v1214_v61, %v1213_v56  ;;  %v1567_v0 = vadd.f32 %v828_v57, %v700_v59 }
 0x128   : > { %v954_v1 = vadd.f32 %v953_v60, %v952_v55  ;;  %v1216_v2 = vpop.f32.mrf.mxu0 }
 0x129   : > { %v705_v4 = vadd.f32 %v1215_v63, %v1539_v62  ;;  %v885_v5 = vmax.f32 %v1567_v0, 0.0  ;;  %v860_v63 = vpop.f32.mrf.mxu1 }
 0x12a   : > { %v955_v6 = vrot.slane %v954_v1, 1  ;;  %v1217_v7 = vpop.f32.mrf.mxu0  ;;  %v959_v60 = vld [vmem:[#allocation2 + $0x98] sm:$0x3f] }
 0x12b   : > { %v834_v8 = vadd.f32 %v1293_v24, %v705_v4  ;;  %v1218_v9 = vadd.f32 %v1217_v7, %v1216_v2  ;;  %v961_v7 = vsel %vm924_vm0, %v959_v60, 0.0 }
 0x12c   : > { %v956_v10 = vadd.f32 %v955_v6, %v954_v1  ;;  %v1219_v11 = vpop.f32.mrf.mxu0 }
 0x12d   : > { %v886_v13 = vmax.f32 %v834_v8, 0.0  ;;  %v708_v14 = vadd.f32 %v1218_v9, %v1539_v62 }
 0x12e   : > { %v1572_v15 = vsel %vm1019_vm2, %v1018_v50, %v956_v10  ;;  %v1220_v16 = vpop.f32.mrf.mxu0  ;;  %v960_v10 = vadd.f32 %v882_v35, %v881_v26 }
 0x12f   : > { %910 = vst [vmem:[#allocation2 + $0x70] sm:$0xff] %v886_v13  ;;  %v837_v17 = vadd.f32 %v1294_v47, %v708_v14  ;;  %v1221_v18 = vadd.f32 %v1220_v16, %v1219_v11  ;;  %v972_v13 = vadd.f32 %v885_v5, %v884_v58 }
 0x130   : > { %v1222_v19 = vpop.f32.mrf.mxu0 }
 0x131   : > { %v887_v22 = vmax.f32 %v837_v17, 0.0  ;;  %v713_v23 = vadd.f32 %v1221_v18, %v1539_v62  ;;  %v962_v18 = vadd.f32 %v961_v7, %v960_v10 }
 0x132   : > { %v1223_v25 = vpop.f32.mrf.mxu0 }
 0x133   : > { %v1224_v24 = vadd.f32 %v1223_v25, %v1222_v19  ;;  %v842_v27 = vadd.f32 %v841_v12, %v713_v23 }
 0x134   : > { %v1225_v28 = vpop.f32.mrf.mxu0 }
 0x135   : > { %v888_v31 = vmax.f32 %v842_v27, 0.0  ;;  %v716_v32 = vadd.f32 %v1224_v24, %v1539_v62  ;;  %v963_v24 = vrot.slane %v962_v18, 4 }
 0x136   : > { %v1226_v33 = vpop.f32.mrf.mxu0  ;;  %v971_v1 = vld [vmem:[#allocation2 + $0x70] sm:$0x3f] }
 0x137   : > { %v1227_v34 = vadd.f32 %v1226_v33, %v1225_v28  ;;  %v845_v36 = vadd.f32 %v844_v30, %v716_v32  ;;  %v973_v11 = vsel %vm924_vm0, %v971_v1, 0.0  ;;  %v984_v19 = vadd.f32 %v888_v31, %v887_v22 }
 0x138   : > { %v1228_v37 = vpop.f32.mrf.mxu0  ;;  %v974_v20 = vadd.f32 %v973_v11, %v972_v13  ;;  %v964_v33 = vadd.f32 %v963_v24, %v962_v18 }
 0x139   : > { %v721_v39 = vadd.f32 %v1227_v34, %v1539_v62  ;;  %v889_v40 = vmax.f32 %v845_v36, 0.0 }
 0x13a   : > { %v1229_v41 = vpop.f32.mrf.mxu0  ;;  %v975_v0 = vrot.slane %v974_v20, 4 }
 0x13b   : > { %v850_v42 = vadd.f32 %v1297_v3, %v721_v39  ;;  %913 = vst [vmem:[#allocation2 + $0x68] sm:$0xff] %v889_v40  ;;  %v1230_v43 = vadd.f32 %v1229_v41, %v1228_v37  ;;  %v965_v37 = vrot.slane %v964_v33, 2 }
 0x13c   : > { %v1231_v44 = vpop.f32.mrf.mxu0  ;;  %v976_v31 = vadd.f32 %v975_v0, %v974_v20 }
 0x13d   : > { %v890_v46 = vmax.f32 %v850_v42, 0.0  ;;  %v724_v47 = vadd.f32 %v1230_v43, %v1539_v62  ;;  %v966_v40 = vadd.f32 %v965_v37, %v964_v33 }
 0x13e   : > { %v1232_v48 = vpop.f32.mrf.mxu0 }
 0x13f   : > { %v853_v49 = vadd.f32 %v1298_v21, %v724_v47  ;;  %v1233_v50 = vadd.f32 %v1232_v48, %v1231_v44  ;;  %v967_v48 = vrot.slane %v966_v40, 1 }
 0x140   : > { %v1234_v51 = vpop.f32.mrf.mxu0 }
 0x141   : > { %v891_v53 = vmax.f32 %v853_v49, 0.0  ;;  %v729_v55 = vadd.f32 %v1233_v50, %v1539_v62 }
 0x142   : > { %v1235_v56 = vpop.f32.mrf.mxu0  ;;  %v983_v4 = vld [vmem:[#allocation2 + $0x68] sm:$0x3f] }
 0x143   : > { %v1236_v57 = vadd.f32 %v1235_v56, %v1234_v51  ;;  %v858_v59 = vadd.f32 %v857_v45, %v729_v55  ;;  %v985_v14 = vsel %vm924_vm0, %v983_v4, 0.0  ;;  %v996_v27 = vadd.f32 %v891_v53, %v890_v46 }
 0x144   : > { %v1237_v61 = vpop.f32.mrf.mxu0  ;;  %v986_v26 = vadd.f32 %v985_v14, %v984_v19  ;;  %v968_v55 = vadd.f32 %v967_v48, %v966_v40 }
 0x145   : > { %v892_v2 = vmax.f32 %v858_v59, 0.0  ;;  %v732_v3 = vadd.f32 %v1236_v57, %v1539_v62 }
 0x146   : > { %v1238_v6 = vpop.f32.mrf.mxu0  ;;  %v987_v28 = vrot.slane %v986_v26, 4 }
 0x147   : > { %916 = vst [vmem:[#allocation2 + $0x80] sm:$0xff] %v892_v2  ;;  %v1239_v8 = vadd.f32 %v1238_v6, %v1237_v61  ;;  %v861_v9 = vadd.f32 %v860_v63, %v732_v3  ;;  %v1022_v63 = vsel %vm1021_vm3, %v1572_v15, %v968_v55 }
 0x148   : > { %v1240_v12 = vpop.f32.mrf.mxu0  ;;  %v988_v34 = vadd.f32 %v987_v28, %v986_v26 }
 0x149   : > { %v737_v16 = vadd.f32 %v1239_v8, %v1539_v62  ;;  %v893_v17 = vmax.f32 %v861_v9, 0.0 }
 0x14a   : > { %v1241_v21 = vpop.f32.mrf.mxu0 }
 0x14b   : > { %v866_v23 = vadd.f32 %v1301_v38, %v737_v16  ;;  %v1242_v29 = vadd.f32 %v1241_v21, %v1240_v12  ;;  %v977_v38 = vrot.slane %v976_v31, 2 }
 0x14d   : > { %v894_v35 = vmax.f32 %v866_v23, 0.0  ;;  %v740_v25 = vadd.f32 %v1242_v29, %v1539_v62  ;;  %v989_v62 = vrot.slane %v988_v34, 2  ;;  %v978_v43 = vadd.f32 %v977_v38, %v976_v31 }
 0x14e   : > { %v995_v54 = vld [vmem:[#allocation2 + $0x80] sm:$0x3f] }
 0x14f   : > { %v997_v58 = vsel %vm924_vm0, %v995_v54, 0.0  ;;  %v869_v5 = vadd.f32 %v1302_v52, %v740_v25  ;;  %v1008_v41 = vadd.f32 %v894_v35, %v893_v17  ;;  %v990_v45 = vadd.f32 %v989_v62, %v988_v34 }
 0x150   : > { %v998_v30 = vadd.f32 %v997_v58, %v996_v27  ;;  %v979_v50 = vrot.slane %v978_v43, 1 }
 0x151   : > { %v895_v32 = vmax.f32 %v869_v5, 0.0  ;;  %v991_v51 = vrot.slane %v990_v45, 1 }
 0x152   : > { %v999_v22 = vrot.slane %v998_v30, 4  ;;  %v980_v57 = vadd.f32 %v979_v50, %v978_v43 }
 0x153   : > { %919 = vst [vmem:[#allocation2 + $0x8] sm:$0xff] %v895_v32  ;;  %v992_v59 = vadd.f32 %v991_v51, %v990_v45 }
 0x154   : > { %v1000_v36 = vadd.f32 %v999_v22, %v998_v30  ;;  %v1024_v2 = vsel %vm1023_vm4, %v1022_v63, %v980_v57 }
 0x155   : > { %v1026_v3 = vsel %vm1025_vm5, %v1024_v2, %v992_v59 }
 0x156   : > { %v1001_v39 = vrot.slane %v1000_v36, 2 }
 0x158   : > { %v1002_v47 = vadd.f32 %v1001_v39, %v1000_v36 }
 0x15a   : > { %v1007_v42 = vld [vmem:[#allocation2 + $0x8] sm:$0x3f]  ;;  %v1003_v53 = vrot.slane %v1002_v47, 1 }
 0x15b   : > { %v1009_v44 = vsel %vm924_vm0, %v1007_v42, 0.0 }
 0x15c   : > { %v1010_v46 = vadd.f32 %v1009_v44, %v1008_v41  ;;  %v1004_v61 = vadd.f32 %v1003_v53, %v1002_v47 }
 0x15e   : > { %v1011_v49 = vrot.slane %v1010_v46, 4  ;;  %v1027_v6 = vsel %vm924_vm0, %v1026_v3, %v1004_v61 }
 0x160   : > { %v1012_v52 = vadd.f32 %v1011_v49, %v1010_v46 }
 0x162   : > { %v1013_v56 = vrot.slane %v1012_v52, 2 }
 0x164   : > { %v1014_v60 = vadd.f32 %v1013_v56, %v1012_v52 }
 0x166   : > { %v1015_v1 = vrot.slane %v1014_v60, 1 }
 0x168   : > { %v1016_v4 = vadd.f32 %v1015_v1, %v1014_v60 }
 0x16a   : > { %v1029_v7 = vsel %vm1028_vm6, %v1027_v6, %v1016_v4 }
 0x16b   : > { %v1030_v8 = vmul.f32 0.045454547, %v1029_v7 }
 0x16d   : > { %1031 = vst [vmem:[%s173_s22] sm:$0xff] %v1030_v8 }
 0x16e PF: > { %s13_s12 = sadd.s32 1, %s1390_s12  }
 0x16f   : > { %p10_p5 = scmp.ge.s32.totalorder %s13_s12, 4  }
 0x171   :  { %12 = sbr.rel (!%p10_p5) target bundleno = 1 (0x1), region = 62 }

// kernel: cnn_lstm_attention_gat_forward.9
= control target key start
LH: loop header
LB: loop body
LE: loop exit
PB: predicated region body
PF: predicated region fallthrough
CT: control target
= control target key end

     0   :  { %v1347_v3 = vmov 0.0   ;;  %vm814_vm0 = vcmask 7168   ;;  %vm818_vm1 = vcmask 1040384   ;;  %vm1064_vm6 = vcmask 64512   ;;  %s2137_s4 = inlined_call_operand.vmem [shape: f32[128,256], index: 4, kind: input, shape index: {}]   ;;  %s2138_s3 = inlined_call_operand.vmem [shape: f32[128,256], index: 3, kind: input, shape index: {}]   ;;  %s2139_s1 = inlined_call_operand.vmem [shape: f32[6,8,128], index: 1, kind: input, shape index: {}]   ;;  %s2140_s0 = inlined_call_operand.vmem [shape: f32[6,8,128], index: 0, kind: input, shape index: {}]   ;;  %s2141_s5 = inlined_call_operand.vmem [shape: f32[256,1], index: 5, kind: input, shape index: {}]   ;;  %s2142_s7 = inlined_call_operand.vmem [shape: f32[128,256], index: 7, kind: input, shape index: {}]   ;;  %s2143_s6 = inlined_call_operand.vmem [shape: f32[128,256], index: 6, kind: input, shape index: {}]   ;;  %s2144_s9 = inlined_call_operand.vmem [shape: f32[129,256], index: 9, kind: input, shape index: {}]   ;;  %s2145_s2 = inlined_call_operand.vmem [shape: f32[8,129], index: 2, kind: input, shape index: {}]   ;;  %s2146_s8 = inlined_call_operand.vmem [shape: f32[1,256], index: 8, kind: input, shape index: {}]   ;;  %s2147_s11 = inlined_call_operand.vmem [shape: f32[8,512], index: 11, kind: output, shape index: {0}]   ;;  %s2148_s10 = inlined_call_operand.vmem [shape: f32[1,256], index: 10, kind: input, shape index: {}]   ;;  %s2149_s12 = inlined_call_operand.vmem [shape: f32[8,8], index: 12, kind: output, shape index: {1}]  }
   0x1   :  { %v115_v0 = vld [vmem:[%s2137_s4 + $0xf8] sm:$0xff]  ;;  %v114_v2 = vld [vmem:[%s2137_s4 + $0xf0] sm:$0xff]  ;;  %180 = vmatprep.mubr.f32.mxu0 %v1347_v3  ;;  %281 = vmatprep.mubr.f32.mxu1 %v1347_v3  ;;  %v113_v5 = vld [vmem:[%s2137_s4 + $0xe8] sm:$0xff]  ;;  %vm1349_vm8 = vmmov 0  }
   0x2   :  { %v83_v1 = vld [vmem:[%s2138_s3 + $0xf8] sm:$0xff]  ;;  %116 = vmatprep.subr.mxu0 %v115_v0  ;;  %v82_v4 = vld [vmem:[%s2138_s3 + $0xf0] sm:$0xff]  ;;  %v81_v6 = vld [vmem:[%s2138_s3 + $0xe8] sm:$0xff] }
   0x3   :  { %217 = vmatprep.subr.mxu1 %v83_v1  ;;  %117 = vmatpush1.msra.mxu0 %v114_v2  ;;  %v112_v7 = vld [vmem:[%s2137_s4 + $0xe0] sm:$0xff]  ;;  %v111_v9 = vld [vmem:[%s2137_s4 + $0xd8] sm:$0xff]  ;;  %v110_v11 = vld [vmem:[%s2137_s4 + $0xd0] sm:$0xff] }
   0x4   :  { %218 = vmatpush1.msra.mxu1 %v82_v4  ;;  %v80_v8 = vld [vmem:[%s2138_s3 + $0xe0] sm:$0xff]  ;;  %118 = vmatprep.subr.mxu0 %v113_v5  ;;  %v79_v10 = vld [vmem:[%s2138_s3 + $0xd8] sm:$0xff]  ;;  %v78_v12 = vld [vmem:[%s2138_s3 + $0xd0] sm:$0xff] }
   0x5   :  { %219 = vmatprep.subr.mxu1 %v81_v6  ;;  %119 = vmatpush1.msra.mxu0 %v112_v7  ;;  %v109_v13 = vld [vmem:[%s2137_s4 + $0xc8] sm:$0xff]  ;;  %v108_v15 = vld [vmem:[%s2137_s4 + $0xc0] sm:$0xff]  ;;  %v107_v17 = vld [vmem:[%s2137_s4 + $0xb8] sm:$0xff] }
   0x6   :  { %220 = vmatpush1.msra.mxu1 %v80_v8  ;;  %v77_v14 = vld [vmem:[%s2138_s3 + $0xc8] sm:$0xff]  ;;  %120 = vmatprep.subr.mxu0 %v111_v9  ;;  %v76_v16 = vld [vmem:[%s2138_s3 + $0xc0] sm:$0xff]  ;;  %v75_v18 = vld [vmem:[%s2138_s3 + $0xb8] sm:$0xff] }
   0x7   :  { %221 = vmatprep.subr.mxu1 %v79_v10  ;;  %121 = vmatpush1.msra.mxu0 %v110_v11  ;;  %v106_v19 = vld [vmem:[%s2137_s4 + $0xb0] sm:$0xff]  ;;  %v105_v21 = vld [vmem:[%s2137_s4 + $0xa8] sm:$0xff]  ;;  %v104_v23 = vld [vmem:[%s2137_s4 + $0xa0] sm:$0xff] }
   0x8   :  { %222 = vmatpush1.msra.mxu1 %v78_v12  ;;  %122 = vmatprep.subr.mxu0 %v109_v13  ;;  %v74_v20 = vld [vmem:[%s2138_s3 + $0xb0] sm:$0xff]  ;;  %v73_v22 = vld [vmem:[%s2138_s3 + $0xa8] sm:$0xff]  ;;  %v72_v24 = vld [vmem:[%s2138_s3 + $0xa0] sm:$0xff] }
   0x9   :  { %223 = vmatprep.subr.mxu1 %v77_v14  ;;  %123 = vmatpush1.msra.mxu0 %v108_v15  ;;  %v103_v25 = vld [vmem:[%s2137_s4 + $0x98] sm:$0xff]  ;;  %v102_v27 = vld [vmem:[%s2137_s4 + $0x90] sm:$0xff]  ;;  %v101_v29 = vld [vmem:[%s2137_s4 + $0x88] sm:$0xff] }
   0xa   :  { %224 = vmatpush1.msra.mxu1 %v76_v16  ;;  %124 = vmatprep.subr.mxu0 %v107_v17  ;;  %v71_v26 = vld [vmem:[%s2138_s3 + $0x98] sm:$0xff]  ;;  %v70_v28 = vld [vmem:[%s2138_s3 + $0x90] sm:$0xff]  ;;  %v69_v30 = vld [vmem:[%s2138_s3 + $0x88] sm:$0xff] }
   0xb   :  { %225 = vmatprep.subr.mxu1 %v75_v18  ;;  %125 = vmatpush1.msra.mxu0 %v106_v19  ;;  %v100_v31 = vld [vmem:[%s2137_s4 + $0x80] sm:$0xff]  ;;  %v99_v33 = vld [vmem:[%s2137_s4 + $0x78] sm:$0xff]  ;;  %v98_v35 = vld [vmem:[%s2137_s4 + $0x70] sm:$0xff] }
   0xc   :  { %226 = vmatpush1.msra.mxu1 %v74_v20  ;;  %126 = vmatprep.subr.mxu0 %v105_v21  ;;  %v68_v32 = vld [vmem:[%s2138_s3 + $0x80] sm:$0xff]  ;;  %v67_v34 = vld [vmem:[%s2138_s3 + $0x78] sm:$0xff]  ;;  %v66_v36 = vld [vmem:[%s2138_s3 + $0x70] sm:$0xff] }
   0xd   :  { %227 = vmatprep.subr.mxu1 %v73_v22  ;;  %127 = vmatpush1.msra.mxu0 %v104_v23  ;;  %v97_v37 = vld [vmem:[%s2137_s4 + $0x68] sm:$0xff]  ;;  %v96_v39 = vld [vmem:[%s2137_s4 + $0x60] sm:$0xff]  ;;  %v95_v41 = vld [vmem:[%s2137_s4 + $0x58] sm:$0xff] }
   0xe   :  { %228 = vmatpush1.msra.mxu1 %v72_v24  ;;  %128 = vmatprep.subr.mxu0 %v103_v25  ;;  %v65_v38 = vld [vmem:[%s2138_s3 + $0x68] sm:$0xff]  ;;  %v64_v40 = vld [vmem:[%s2138_s3 + $0x60] sm:$0xff]  ;;  %v63_v42 = vld [vmem:[%s2138_s3 + $0x58] sm:$0xff] }
   0xf   :  { %229 = vmatprep.subr.mxu1 %v71_v26  ;;  %129 = vmatpush1.msra.mxu0 %v102_v27  ;;  %v94_v43 = vld [vmem:[%s2137_s4 + $0x50] sm:$0xff]  ;;  %v93_v45 = vld [vmem:[%s2137_s4 + $0x48] sm:$0xff]  ;;  %v92_v47 = vld [vmem:[%s2137_s4 + $0x40] sm:$0xff] }
  0x10   :  { %230 = vmatpush1.msra.mxu1 %v70_v28  ;;  %130 = vmatprep.subr.mxu0 %v101_v29  ;;  %v62_v44 = vld [vmem:[%s2138_s3 + $0x50] sm:$0xff]  ;;  %v61_v46 = vld [vmem:[%s2138_s3 + $0x48] sm:$0xff]  ;;  %v60_v48 = vld [vmem:[%s2138_s3 + $0x40] sm:$0xff] }
  0x11   :  { %231 = vmatprep.subr.mxu1 %v69_v30  ;;  %131 = vmatpush1.msra.mxu0 %v100_v31  ;;  %v91_v49 = vld [vmem:[%s2137_s4 + $0x38] sm:$0xff]  ;;  %v90_v51 = vld [vmem:[%s2137_s4 + $0x30] sm:$0xff]  ;;  %v89_v53 = vld [vmem:[%s2137_s4 + $0x28] sm:$0xff] }
  0x12   :  { %232 = vmatpush1.msra.mxu1 %v68_v32  ;;  %132 = vmatprep.subr.mxu0 %v99_v33  ;;  %v59_v50 = vld [vmem:[%s2138_s3 + $0x38] sm:$0xff]  ;;  %v58_v52 = vld [vmem:[%s2138_s3 + $0x30] sm:$0xff]  ;;  %v57_v54 = vld [vmem:[%s2138_s3 + $0x28] sm:$0xff] }
  0x13   :  { %233 = vmatprep.subr.mxu1 %v67_v34  ;;  %133 = vmatpush1.msra.mxu0 %v98_v35  ;;  %v88_v55 = vld [vmem:[%s2137_s4 + $0x20] sm:$0xff]  ;;  %v87_v57 = vld [vmem:[%s2137_s4 + $0x18] sm:$0xff]  ;;  %v86_v59 = vld [vmem:[%s2137_s4 + $0x10] sm:$0xff] }
  0x14   :  { %234 = vmatpush1.msra.mxu1 %v66_v36  ;;  %134 = vmatprep.subr.mxu0 %v97_v37  ;;  %v56_v56 = vld [vmem:[%s2138_s3 + $0x20] sm:$0xff]  ;;  %v55_v58 = vld [vmem:[%s2138_s3 + $0x18] sm:$0xff]  ;;  %v54_v60 = vld [vmem:[%s2138_s3 + $0x10] sm:$0xff] }
  0x15   :  { %235 = vmatprep.subr.mxu1 %v65_v38  ;;  %135 = vmatpush1.msra.mxu0 %v96_v39  ;;  %v85_v61 = vld [vmem:[%s2137_s4 + $0x8] sm:$0xff]  ;;  %v84_v63 = vld [vmem:[%s2137_s4] sm:$0xff]  ;;  %v361_v4 = vld [vmem:[%s2141_s5 + $0xf8] sm:$0xff] }
  0x16   :  { %236 = vmatpush1.msra.mxu1 %v64_v40  ;;  %136 = vmatprep.subr.mxu0 %v95_v41  ;;  %v53_v62 = vld [vmem:[%s2138_s3 + $0x8] sm:$0xff]  ;;  %v52_v0 = vld [vmem:[%s2138_s3] sm:$0xff]  ;;  %v345_v5 = vld [vmem:[%s2141_s5 + $0x78] sm:$0xff] }
  0x17   :  { %237 = vmatprep.subr.mxu1 %v63_v42  ;;  %137 = vmatpush1.msra.mxu0 %v94_v43  ;;  %v1612_v1 = vld [vmem:[%s2139_s1] sm:$0xff]  ;;  %v1632_v6 = vld [vmem:[%s2139_s1 + $0x8] sm:$0xff]  ;;  %v360_v8 = vld [vmem:[%s2141_s5 + $0xf0] sm:$0xff] }
  0x18   :  { %238 = vmatpush1.msra.mxu1 %v62_v44  ;;  %138 = vmatprep.subr.mxu0 %v93_v45  ;;  %v1617_v2 = vld [vmem:[%s2140_s0] sm:$0xff]  ;;  %v1637_v7 = vld [vmem:[%s2140_s0 + $0x8] sm:$0xff]  ;;  %v344_v9 = vld [vmem:[%s2141_s5 + $0x70] sm:$0xff] }
  0x19   :  { %239 = vmatprep.subr.mxu1 %v61_v46  ;;  %139 = vmatpush1.msra.mxu0 %v92_v47  ;;  %v1652_v10 = vld [vmem:[%s2139_s1 + $0x10] sm:$0xff]  ;;  %v359_v12 = vld [vmem:[%s2141_s5 + $0xe8] sm:$0xff]  ;;  %v1672_v14 = vld [vmem:[%s2139_s1 + $0x18] sm:$0xff] }
  0x1a   :  { %240 = vmatpush1.msra.mxu1 %v60_v48  ;;  %140 = vmatprep.subr.mxu0 %v91_v49  ;;  %v1657_v11 = vld [vmem:[%s2140_s0 + $0x10] sm:$0xff]  ;;  %v343_v13 = vld [vmem:[%s2141_s5 + $0x68] sm:$0xff]  ;;  %v1677_v15 = vld [vmem:[%s2140_s0 + $0x18] sm:$0xff] }
  0x1b   :  { %241 = vmatprep.subr.mxu1 %v59_v50  ;;  %141 = vmatpush1.msra.mxu0 %v90_v51  ;;  %v358_v16 = vld [vmem:[%s2141_s5 + $0xe0] sm:$0xff]  ;;  %v357_v20 = vld [vmem:[%s2141_s5 + $0xd8] sm:$0xff]  ;;  %v1712_v22 = vld [vmem:[%s2139_s1 + $0x28] sm:$0xff] }
  0x1c   :  { %242 = vmatpush1.msra.mxu1 %v58_v52  ;;  %142 = vmatprep.subr.mxu0 %v89_v53  ;;  %v342_v17 = vld [vmem:[%s2141_s5 + $0x60] sm:$0xff]  ;;  %v341_v21 = vld [vmem:[%s2141_s5 + $0x58] sm:$0xff]  ;;  %v1717_v23 = vld [vmem:[%s2140_s0 + $0x28] sm:$0xff] }
  0x1d   :  { %243 = vmatprep.subr.mxu1 %v57_v54  ;;  %143 = vmatpush1.msra.mxu0 %v88_v55  ;;  %v1692_v18 = vld [vmem:[%s2139_s1 + $0x20] sm:$0xff]  ;;  %v356_v24 = vld [vmem:[%s2141_s5 + $0xd0] sm:$0xff]  ;;  %v355_v26 = vld [vmem:[%s2141_s5 + $0xc8] sm:$0xff] }
  0x1e   :  { %244 = vmatpush1.msra.mxu1 %v56_v56  ;;  %144 = vmatprep.subr.mxu0 %v87_v57  ;;  %v1697_v19 = vld [vmem:[%s2140_s0 + $0x20] sm:$0xff]  ;;  %v340_v25 = vld [vmem:[%s2141_s5 + $0x50] sm:$0xff]  ;;  %v339_v27 = vld [vmem:[%s2141_s5 + $0x48] sm:$0xff] }
  0x1f   :  { %245 = vmatprep.subr.mxu1 %v55_v58  ;;  %145 = vmatpush1.msra.mxu0 %v86_v59  ;;  %v354_v28 = vld [vmem:[%s2141_s5 + $0xc0] sm:$0xff]  ;;  %v353_v30 = vld [vmem:[%s2141_s5 + $0xb8] sm:$0xff]  ;;  %v352_v32 = vld [vmem:[%s2141_s5 + $0xb0] sm:$0xff] }
  0x20   :  { %246 = vmatpush1.msra.mxu1 %v54_v60  ;;  %146 = vmatprep.subr.mxu0 %v85_v61  ;;  %v338_v29 = vld [vmem:[%s2141_s5 + $0x40] sm:$0xff]  ;;  %v337_v31 = vld [vmem:[%s2141_s5 + $0x38] sm:$0xff]  ;;  %v336_v33 = vld [vmem:[%s2141_s5 + $0x30] sm:$0xff] }
  0x21   :  { %247 = vmatprep.subr.mxu1 %v53_v62  ;;  %147 = vmatpush1.msra.mxu0 %v84_v63  ;;  %v351_v34 = vld [vmem:[%s2141_s5 + $0xa8] sm:$0xff]  ;;  %v350_v36 = vld [vmem:[%s2141_s5 + $0xa0] sm:$0xff]  ;;  %v349_v38 = vld [vmem:[%s2141_s5 + $0x98] sm:$0xff] }
  0x22   :  { %248 = vmatpush1.msra.mxu1 %v52_v0  ;;  %181 = vmatmul.mubr.f32.vlgmr.msra.gmra.mxu0 %v1612_v1  ;;  %v335_v35 = vld [vmem:[%s2141_s5 + $0x28] sm:$0xff]  ;;  %v334_v37 = vld [vmem:[%s2141_s5 + $0x20] sm:$0xff]  ;;  %v333_v39 = vld [vmem:[%s2141_s5 + $0x18] sm:$0xff] }
  0x23   :  { %282 = vmatmul.mubr.f32.vlgmr.msra.gmra.mxu1 %v1617_v2  ;;  %186 = vmatprep.mubr.f32.mxu0 %v1347_v3  ;;  %v348_v40 = vld [vmem:[%s2141_s5 + $0x90] sm:$0xff]  ;;  %v347_v42 = vld [vmem:[%s2141_s5 + $0x88] sm:$0xff]  ;;  %v346_v44 = vld [vmem:[%s2141_s5 + $0x80] sm:$0xff] }
  0x24   :  { %287 = vmatprep.mubr.f32.mxu1 %v1347_v3  ;;  %1236 = vmatprep.subr.mxu0 %v361_v4  ;;  %v332_v41 = vld [vmem:[%s2141_s5 + $0x10] sm:$0xff]  ;;  %v331_v43 = vld [vmem:[%s2141_s5 + $0x8] sm:$0xff]  ;;  %v330_v45 = vld [vmem:[%s2141_s5] sm:$0xff] }
  0x25   :  { %1237 = vmatpush3.msra.mxu0 %v345_v5 }
  0x26   :  { %187 = vmatmul.mubr.f32.gmra.mxu0 %v1632_v6  ;;  %1238 = vmatprep.subr.mxu0 %v360_v8 }
  0x27   :  { %288 = vmatmul.mubr.f32.gmra.mxu1 %v1637_v7  ;;  %192 = vmatprep.mubr.f32.mxu0 %v1347_v3 }
  0x28   :  { %293 = vmatprep.mubr.f32.mxu1 %v1347_v3  ;;  %1239 = vmatpush3.msra.mxu0 %v344_v9 }
  0x29   :  { %1240 = vmatprep.subr.mxu0 %v359_v12 }
  0x2a   :  { %193 = vmatmul.mubr.f32.gmra.mxu0 %v1652_v10 }
  0x2b   :  { %294 = vmatmul.mubr.f32.gmra.mxu1 %v1657_v11  ;;  %198 = vmatprep.mubr.f32.mxu0 %v1347_v3 }
  0x2c   :  { %299 = vmatprep.mubr.f32.mxu1 %v1347_v3  ;;  %1241 = vmatpush3.msra.mxu0 %v343_v13 }
  0x2d   :  { %1242 = vmatprep.subr.mxu0 %v358_v16 }
  0x2e   :  { %199 = vmatmul.mubr.f32.gmra.mxu0 %v1672_v14 }
  0x2f   :  { %300 = vmatmul.mubr.f32.gmra.mxu1 %v1677_v15  ;;  %204 = vmatprep.mubr.f32.mxu0 %v1347_v3 }
  0x30   :  { %305 = vmatprep.mubr.f32.mxu1 %v1347_v3  ;;  %1243 = vmatpush3.msra.mxu0 %v342_v17 }
  0x31   :  { %1244 = vmatprep.subr.mxu0 %v357_v20 }
  0x32   :  { %205 = vmatmul.mubr.f32.gmra.mxu0 %v1692_v18 }
  0x33   :  { %306 = vmatmul.mubr.f32.gmra.mxu1 %v1697_v19  ;;  %210 = vmatprep.mubr.f32.mxu0 %v1347_v3 }
  0x34   :  { %311 = vmatprep.mubr.f32.mxu1 %v1347_v3  ;;  %1245 = vmatpush3.msra.mxu0 %v341_v21 }
  0x35   :  { %1246 = vmatprep.subr.mxu0 %v356_v24 }
  0x36   :  { %211 = vmatmul.mubr.f32.gmra.mxu0 %v1712_v22 }
  0x37   :  { %312 = vmatmul.mubr.f32.gmra.mxu1 %v1717_v23  ;;  %1247 = vmatpush3.msra.mxu0 %v340_v25 }
  0x38   :  { %674 = vmatprep.mubr.f32.mxu1 %v1347_v3  ;;  %1248 = vmatprep.subr.mxu0 %v355_v26 }
  0x39   :  { %1249 = vmatpush3.msra.mxu0 %v339_v27 }
  0x3a   :  { %1250 = vmatprep.subr.mxu0 %v354_v28 }
  0x3b   :  { %1251 = vmatpush3.msra.mxu0 %v338_v29 }
  0x3c   :  { %1252 = vmatprep.subr.mxu0 %v353_v30 }
  0x3d   :  { %1253 = vmatpush3.msra.mxu0 %v337_v31 }
  0x3e   :  { %1254 = vmatprep.subr.mxu0 %v352_v32 }
  0x3f   :  { %1255 = vmatpush3.msra.mxu0 %v336_v33 }
  0x40   :  { %1256 = vmatprep.subr.mxu0 %v351_v34 }
  0x41   :  { %1257 = vmatpush3.msra.mxu0 %v335_v35 }
  0x42   :  { %1258 = vmatprep.subr.mxu0 %v350_v36 }
  0x43   :  { %1259 = vmatpush3.msra.mxu0 %v334_v37 }
  0x44   :  { %1260 = vmatprep.subr.mxu0 %v349_v38 }
  0x45   :  { %1261 = vmatpush3.msra.mxu0 %v333_v39 }
  0x46   :  { %1262 = vmatprep.subr.mxu0 %v348_v40 }
  0x47   :  { %1263 = vmatpush3.msra.mxu0 %v332_v41 }
  0x48   :  { %1264 = vmatprep.subr.mxu0 %v347_v42 }
  0x49   :  { %1265 = vmatpush3.msra.mxu0 %v331_v43  ;;  %v1348_v43 = vmov 0  }
  0x4a   :  { %1266 = vmatprep.subr.mxu0 %v346_v44  ;;  %1304 = vset.pattern.permute.xlu1 %v1348_v43  ;;  %v609_v44 = vld [vmem:[%s2142_s7 + $0xf8] sm:$0xff] }
  0x4b   :  { %1267 = vmatpush3.msra.mxu0 %v330_v45  ;;  %1303 = vset.pattern.permute.xlu0 %v1348_v43  ;;  %v608_v45 = vld [vmem:[%s2142_s7 + $0xf0] sm:$0xff]  ;;  %v601_v43 = vld [vmem:[%s2142_s7 + $0xb8] sm:$0xff] }
  0x4c   :  { %610 = vmatprep.subr.mxu1 %v609_v44  ;;  %v570_v44 = vld [vmem:[%s2143_s6 + $0xc0] sm:$0xff] }
  0x4d   :  { %611 = vmatpush1.msra.mxu1 %v608_v45  ;;  %v600_v45 = vld [vmem:[%s2142_s7 + $0xb0] sm:$0xff] }
  0xe2   :  { %v182_v46 = vpop.f32.mrf.mxu0 }
  0xe3   :  { %v283_v47 = vpop.f32.mrf.mxu1 }
  0xe4   :  { %v284_v48 = vadd.f32 %v283_v47, %v182_v46  ;;  %v184_v49 = vpop.f32.mrf.mxu0  ;;  %v577_v46 = vld [vmem:[%s2143_s6 + $0xf8] sm:$0xff]  ;;  %v607_v47 = vld [vmem:[%s2142_s7 + $0xe8] sm:$0xff] }
  0xe5   :  { %v285_v50 = vpop.f32.mrf.mxu1  ;;  %681 = vmatprep.subr.mxu0 %v577_v46  ;;  %612 = vmatprep.subr.mxu1 %v607_v47  ;;  %v569_v47 = vld [vmem:[%s2143_s6 + $0xb8] sm:$0xff] }
  0xe6   :  { %v286_v51 = vadd.f32 %v285_v50, %v184_v49  ;;  %v188_v52 = vpop.f32.mrf.mxu0  ;;  %v606_v49 = vld [vmem:[%s2142_s7 + $0xe0] sm:$0xff]  ;;  %v575_v50 = vld [vmem:[%s2143_s6 + $0xe8] sm:$0xff] }
  0xe7   :  { %v289_v53 = vpop.f32.mrf.mxu1  ;;  %613 = vmatpush1.msra.mxu1 %v606_v49  ;;  %v568_v49 = vld [vmem:[%s2143_s6 + $0xb0] sm:$0xff] }
  0xe8   :  { %1305 = vtanh.f32 %v286_v51  ;;  %v290_v54 = vadd.f32 %v289_v53, %v188_v52  ;;  %v190_v55 = vpop.f32.mrf.mxu0  ;;  %v605_v51 = vld [vmem:[%s2142_s7 + $0xd8] sm:$0xff]  ;;  %v574_v52 = vld [vmem:[%s2143_s6 + $0xe0] sm:$0xff]  ;;  %v604_v53 = vld [vmem:[%s2142_s7 + $0xd0] sm:$0xff] }
  0xe9   :  { %1307 = vtanh.f32 %v284_v48  ;;  %v291_v56 = vpop.f32.mrf.mxu1  ;;  %v576_v48 = vld [vmem:[%s2143_s6 + $0xf0] sm:$0xff]  ;;  %614 = vmatprep.subr.mxu1 %v605_v51 }
  0xea   :  { %v292_v57 = vadd.f32 %v291_v56, %v190_v55  ;;  %v194_v58 = vpop.f32.mrf.mxu0  ;;  %v603_v55 = vld [vmem:[%s2142_s7 + $0xc8] sm:$0xff]  ;;  %v572_v56 = vld [vmem:[%s2143_s6 + $0xd0] sm:$0xff]  ;;  %615 = vmatpush1.msra.mxu1 %v604_v53 }
  0xeb   :  { %v295_v59 = vpop.f32.mrf.mxu1  ;;  %616 = vmatprep.subr.mxu1 %v603_v55  ;;  %v567_v53 = vld [vmem:[%s2143_s6 + $0xa8] sm:$0xff]  ;;  %v597_v55 = vld [vmem:[%s2142_s7 + $0x98] sm:$0xff] }
  0xec   :  { %1309 = vtanh.f32 %v292_v57  ;;  %v296_v60 = vadd.f32 %v295_v59, %v194_v58  ;;  %v196_v61 = vpop.f32.mrf.mxu0 }
  0xed   :  { %1311 = vtanh.f32 %v290_v54  ;;  %v297_v62 = vpop.f32.mrf.mxu1  ;;  %v573_v54 = vld [vmem:[%s2143_s6 + $0xd8] sm:$0xff] }
  0xee   :  { %v298_v63 = vadd.f32 %v297_v62, %v196_v61  ;;  %v200_v0 = vpop.f32.mrf.mxu0 }
  0xef   :  { %v301_v4 = vpop.f32.mrf.mxu1 }
  0xf0   :  { %1313 = vtanh.f32 %v298_v63  ;;  %v302_v5 = vadd.f32 %v301_v4, %v200_v0  ;;  %v202_v8 = vpop.f32.mrf.mxu0 }
  0xf1   :  { %1315 = vtanh.f32 %v296_v60  ;;  %v303_v9 = vpop.f32.mrf.mxu1 }
  0xf2   :  { %v304_v12 = vadd.f32 %v303_v9, %v202_v8  ;;  %v206_v13 = vpop.f32.mrf.mxu0 }
  0xf3   :  { %v307_v16 = vpop.f32.mrf.mxu1 }
  0xf4   :  { %1317 = vtanh.f32 %v304_v12  ;;  %v308_v20 = vadd.f32 %v307_v16, %v206_v13  ;;  %v208_v21 = vpop.f32.mrf.mxu0 }
  0xf5   :  { %v1306_v17 = vpop.eup %1305  ;;  %1319 = vtanh.f32 %v302_v5  ;;  %v309_v24 = vpop.f32.mrf.mxu1 }
  0xf6   :  { %v1308_v25 = vpop.eup %1307  ;;  %v310_v26 = vadd.f32 %v309_v24, %v208_v21  ;;  %426 = vmatprep.mubr.f32.mxu0 %v1306_v17  ;;  %v212_v27 = vpop.f32.mrf.mxu0 }
  0xf7   :  { %v313_v28 = vpop.f32.mrf.mxu1  ;;  %427 = vmatmul.mubr.f32.vlgmr.msra.gmra.mxu0 %v1308_v25 }
  0xf8   :  { %1321 = vtanh.f32 %v310_v26  ;;  %v314_v30 = vadd.f32 %v313_v28, %v212_v27  ;;  %v214_v31 = vpop.f32.mrf.mxu0  ;;  %682 = vmatpush1.msra.mxu0 %v576_v48  ;;  %v599_v48 = vld [vmem:[%s2142_s7 + $0xa8] sm:$0xff] }
  0xf9   :  { %v1310_v29 = vpop.eup %1309  ;;  %1323 = vtanh.f32 %v308_v20  ;;  %v315_v32 = vpop.f32.mrf.mxu1  ;;  %683 = vmatprep.subr.mxu0 %v575_v50 }
  0xfa   :  { %v1312_v33 = vpop.eup %1311  ;;  %v316_v34 = vadd.f32 %v315_v32, %v214_v31  ;;  %431 = vmatprep.mubr.f32.mxu0 %v1310_v29  ;;  %684 = vmatpush1.msra.mxu0 %v574_v52  ;;  %v598_v52 = vld [vmem:[%s2142_s7 + $0xa0] sm:$0xff] }
  0xfb   :  { %432 = vmatmul.mubr.f32.gmra.mxu0 %v1312_v33  ;;  %685 = vmatprep.subr.mxu0 %v573_v54 }
  0xfc   :  { %1325 = vtanh.f32 %v316_v34  ;;  %686 = vmatpush1.msra.mxu0 %v572_v56  ;;  %v566_v56 = vld [vmem:[%s2143_s6 + $0xa0] sm:$0xff] }
  0xfd   :  { %v1314_v35 = vpop.eup %1313  ;;  %1327 = vtanh.f32 %v314_v30 }
  0xfe   :  { %v1316_v36 = vpop.eup %1315  ;;  %436 = vmatprep.mubr.f32.mxu0 %v1314_v35 }
  0xff   :  { %437 = vmatmul.mubr.f32.gmra.mxu0 %v1316_v36 }
 0x101   :  { %v1318_v37 = vpop.eup %1317 }
 0x102   :  { %v1320_v38 = vpop.eup %1319  ;;  %441 = vmatprep.mubr.f32.mxu0 %v1318_v37 }
 0x103   :  { %442 = vmatmul.mubr.f32.gmra.mxu0 %v1320_v38 }
 0x105   :  { %v1322_v39 = vpop.eup %1321 }
 0x106   :  { %v1324_v40 = vpop.eup %1323  ;;  %446 = vmatprep.mubr.f32.mxu0 %v1322_v39 }
 0x107   :  { %447 = vmatmul.mubr.f32.gmra.mxu0 %v1324_v40 }
 0x109   :  { %v1326_v41 = vpop.eup %1325 }
 0x10a   :  { %v1328_v42 = vpop.eup %1327  ;;  %451 = vmatprep.mubr.f32.mxu0 %v1326_v41  ;;  %v602_v41 = vld [vmem:[%s2142_s7 + $0xc0] sm:$0xff] }
 0x10b   :  { %452 = vmatmul.mubr.f32.gmra.mxu0 %v1328_v42  ;;  %v571_v42 = vld [vmem:[%s2143_s6 + $0xc8] sm:$0xff]  ;;  %617 = vmatpush1.msra.mxu1 %v602_v41  ;;  %v582_v41 = vld [vmem:[%s2142_s7 + $0x20] sm:$0xff] }
 0x10c   :  { %745 = vmatprep.mubr.f32.mxu0 %v1347_v3  ;;  %687 = vmatprep.subr.mxu0 %v571_v42  ;;  %v551_v42 = vld [vmem:[%s2143_s6 + $0x28] sm:$0xff] }
 0x10d   :  { %618 = vmatprep.subr.mxu1 %v601_v43  ;;  %688 = vmatpush1.msra.mxu0 %v570_v44  ;;  %v581_v43 = vld [vmem:[%s2142_s7 + $0x18] sm:$0xff]  ;;  %v550_v44 = vld [vmem:[%s2143_s6 + $0x20] sm:$0xff] }
 0x10e   :  { %619 = vmatpush1.msra.mxu1 %v600_v45  ;;  %689 = vmatprep.subr.mxu0 %v569_v47  ;;  %v580_v45 = vld [vmem:[%s2142_s7 + $0x10] sm:$0xff]  ;;  %v579_v47 = vld [vmem:[%s2142_s7 + $0x8] sm:$0xff] }
 0x10f   :  { %620 = vmatprep.subr.mxu1 %v599_v48  ;;  %690 = vmatpush1.msra.mxu0 %v568_v49  ;;  %v548_v48 = vld [vmem:[%s2143_s6 + $0x10] sm:$0xff]  ;;  %v578_v49 = vld [vmem:[%s2142_s7] sm:$0xff] }
 0x110   :  { %621 = vmatpush1.msra.mxu1 %v598_v52  ;;  %691 = vmatprep.subr.mxu0 %v567_v53  ;;  %v799_v52 = vld [vmem:[%s2144_s9 + $0xf8] sm:$0xff] }
 0x111   :  { %622 = vmatprep.subr.mxu1 %v597_v55  ;;  %692 = vmatpush1.msra.mxu0 %v566_v56 }
 0x1b7   :  { %v1268_v57 = vpop.f32.mrf.mxu0 }
 0x1b9   :  { %v1269_v58 = vpop.f32.mrf.mxu0 }
 0x1ba   :  { %v1270_v5 = vadd.f32 %v1269_v58, %v1268_v57  ;;  %v596_v57 = vld [vmem:[%s2142_s7 + $0x90] sm:$0xff]  ;;  %v565_v58 = vld [vmem:[%s2143_s6 + $0x98] sm:$0xff] }
 0x1bb   :  { %v1271_v59 = vpop.f32.mrf.mxu0  ;;  %623 = vmatpush1.msra.mxu1 %v596_v57  ;;  %693 = vmatprep.subr.mxu0 %v565_v58 }
 0x1bd   :  { %v1272_v60 = vpop.f32.mrf.mxu0 }
 0x1be   :  { %v1273_v0 = vadd.f32 %v1272_v60, %v1271_v59 }
 0x1bf   :  { %v1274_v61 = vpop.f32.mrf.mxu0 }
 0x1c0   :  { %v457_v12 = vmax.f32 %v1270_v5, %v1273_v0 }
 0x1c1   :  { %v1275_v62 = vpop.f32.mrf.mxu0 }
 0x1c2   :  { %v1276_v8 = vadd.f32 %v1275_v62, %v1274_v61  ;;  %v595_v61 = vld [vmem:[%s2142_s7 + $0x88] sm:$0xff]  ;;  %v564_v62 = vld [vmem:[%s2143_s6 + $0x90] sm:$0xff] }
 0x1c3   :  { %v1277_v63 = vpop.f32.mrf.mxu0  ;;  %624 = vmatprep.subr.mxu1 %v595_v61  ;;  %694 = vmatpush1.msra.mxu0 %v564_v62 }
 0x1c4   :  { %v458_v17 = vmax.f32 %v457_v12, %v1276_v8 }
 0x1c5   :  { %v1278_v4 = vpop.f32.mrf.mxu0 }
 0x1c6   :  { %v1279_v13 = vadd.f32 %v1278_v4, %v1277_v63  ;;  %v594_v63 = vld [vmem:[%s2142_s7 + $0x80] sm:$0xff] }
 0x1c7   :  { %v1280_v9 = vpop.f32.mrf.mxu0  ;;  %625 = vmatpush1.msra.mxu1 %v594_v63 }
 0x1c8   :  { %v459_v24 = vmax.f32 %v458_v17, %v1279_v13  ;;  %v561_v17 = vld [vmem:[%s2143_s6 + $0x78] sm:$0xff] }
 0x1c9   :  { %v1281_v16 = vpop.f32.mrf.mxu0 }
 0x1ca   :  { %v1282_v20 = vadd.f32 %v1281_v16, %v1280_v9  ;;  %v562_v9 = vld [vmem:[%s2143_s6 + $0x80] sm:$0xff]  ;;  %v592_v16 = vld [vmem:[%s2142_s7 + $0x70] sm:$0xff] }
 0x1cb   :  { %v1283_v21 = vpop.f32.mrf.mxu0 }
 0x1cc   :  { %v460_v26 = vmax.f32 %v459_v24, %v1282_v20 }
 0x1cd   :  { %v1284_v25 = vpop.f32.mrf.mxu0 }
 0x1ce   :  { %v1285_v27 = vadd.f32 %v1284_v25, %v1283_v21  ;;  %v560_v21 = vld [vmem:[%s2143_s6 + $0x70] sm:$0xff]  ;;  %v590_v25 = vld [vmem:[%s2142_s7 + $0x60] sm:$0xff] }
 0x1d0   :  { %v461_v28 = vmax.f32 %v460_v26, %v1285_v27  ;;  %v559_v26 = vld [vmem:[%s2143_s6 + $0x68] sm:$0xff] }
 0x1d2   :  { %v465_v29 = vsub.f32 %v1273_v0, %v461_v28  ;;  %v468_v30 = vsub.f32 %v1276_v8, %v461_v28  ;;  %v462_v31 = vsub.f32 %v1270_v5, %v461_v28  ;;  %v471_v33 = vsub.f32 %v1279_v13, %v461_v28  ;;  %v563_v0 = vld [vmem:[%s2143_s6 + $0x88] sm:$0xff]  ;;  %v593_v5 = vld [vmem:[%s2142_s7 + $0x78] sm:$0xff] }
 0x1d3   :  { %v474_v36 = vsub.f32 %v1282_v20, %v461_v28  ;;  %v477_v38 = vsub.f32 %v1285_v27, %v461_v28  ;;  %695 = vmatprep.subr.mxu0 %v563_v0  ;;  %626 = vmatprep.subr.mxu1 %v593_v5  ;;  %v591_v20 = vld [vmem:[%s2142_s7 + $0x68] sm:$0xff]  ;;  %v589_v27 = vld [vmem:[%s2142_s7 + $0x58] sm:$0xff]  ;;  %v558_v28 = vld [vmem:[%s2143_s6 + $0x60] sm:$0xff] }
 0x1d4   :  { %v466_v32 = vmul.f32 1.442695, %v465_v29  ;;  %v469_v34 = vmul.f32 1.442695, %v468_v30  ;;  %v463_v35 = vmul.f32 1.442695, %v462_v31  ;;  %696 = vmatpush1.msra.mxu0 %v562_v9  ;;  %627 = vmatpush1.msra.mxu1 %v592_v16 }
 0x1d5   :  { %v472_v37 = vmul.f32 1.442695, %v471_v33  ;;  %v475_v39 = vmul.f32 1.442695, %v474_v36  ;;  %v478_v40 = vmul.f32 1.442695, %v477_v38  ;;  %697 = vmatprep.subr.mxu0 %v561_v17  ;;  %628 = vmatprep.subr.mxu1 %v591_v20 }
 0x1d6   :  { %1329 = vpow2.f32 %v466_v32  ;;  %698 = vmatpush1.msra.mxu0 %v560_v21  ;;  %v588_v29 = vld [vmem:[%s2142_s7 + $0x50] sm:$0xff]  ;;  %v557_v30 = vld [vmem:[%s2143_s6 + $0x58] sm:$0xff]  ;;  %629 = vmatpush1.msra.mxu1 %v590_v25  ;;  %v587_v31 = vld [vmem:[%s2142_s7 + $0x48] sm:$0xff] }
 0x1d7   :  { %1331 = vpow2.f32 %v469_v34  ;;  %699 = vmatprep.subr.mxu0 %v559_v26  ;;  %v556_v32 = vld [vmem:[%s2143_s6 + $0x50] sm:$0xff]  ;;  %630 = vmatprep.subr.mxu1 %v589_v27  ;;  %v586_v33 = vld [vmem:[%s2142_s7 + $0x40] sm:$0xff]  ;;  %v555_v34 = vld [vmem:[%s2143_s6 + $0x48] sm:$0xff] }
 0x1d8   :  { %1333 = vpow2.f32 %v463_v35  ;;  %700 = vmatpush1.msra.mxu0 %v558_v28  ;;  %631 = vmatpush1.msra.mxu1 %v588_v29  ;;  %v585_v35 = vld [vmem:[%s2142_s7 + $0x38] sm:$0xff]  ;;  %v554_v36 = vld [vmem:[%s2143_s6 + $0x40] sm:$0xff]  ;;  %v794_v27 = vld [vmem:[%s2144_s9 + $0xd0] sm:$0xff] }
 0x1d9   :  { %1335 = vpow2.f32 %v472_v37  ;;  %701 = vmatprep.subr.mxu0 %v557_v30  ;;  %632 = vmatprep.subr.mxu1 %v587_v31  ;;  %v584_v37 = vld [vmem:[%s2142_s7 + $0x30] sm:$0xff]  ;;  %v553_v38 = vld [vmem:[%s2143_s6 + $0x38] sm:$0xff]  ;;  %v793_v28 = vld [vmem:[%s2144_s9 + $0xc8] sm:$0xff] }
 0x1da   :  { %1337 = vpow2.f32 %v475_v39  ;;  %702 = vmatpush1.msra.mxu0 %v556_v32  ;;  %633 = vmatpush1.msra.mxu1 %v586_v33  ;;  %v583_v39 = vld [vmem:[%s2142_s7 + $0x28] sm:$0xff]  ;;  %v792_v29 = vld [vmem:[%s2144_s9 + $0xc0] sm:$0xff]  ;;  %v791_v30 = vld [vmem:[%s2144_s9 + $0xb8] sm:$0xff] }
 0x1db   :  { %1339 = vpow2.f32 %v478_v40  ;;  %703 = vmatprep.subr.mxu0 %v555_v34  ;;  %v552_v40 = vld [vmem:[%s2143_s6 + $0x30] sm:$0xff]  ;;  %634 = vmatprep.subr.mxu1 %v585_v35  ;;  %v789_v32 = vld [vmem:[%s2144_s9 + $0xa8] sm:$0xff]  ;;  %v788_v33 = vld [vmem:[%s2144_s9 + $0xa0] sm:$0xff] }
 0x1dc   :  { %704 = vmatpush1.msra.mxu0 %v554_v36  ;;  %635 = vmatpush1.msra.mxu1 %v584_v37  ;;  %v790_v31 = vld [vmem:[%s2144_s9 + $0xb0] sm:$0xff]  ;;  %v787_v34 = vld [vmem:[%s2144_s9 + $0x98] sm:$0xff]  ;;  %v785_v36 = vld [vmem:[%s2144_s9 + $0x88] sm:$0xff] }
 0x1dd   :  { %705 = vmatprep.subr.mxu0 %v553_v38  ;;  %636 = vmatprep.subr.mxu1 %v583_v39  ;;  %v786_v35 = vld [vmem:[%s2144_s9 + $0x90] sm:$0xff]  ;;  %v784_v37 = vld [vmem:[%s2144_s9 + $0x80] sm:$0xff]  ;;  %v783_v38 = vld [vmem:[%s2144_s9 + $0x78] sm:$0xff] }
 0x1de   :  { %706 = vmatpush1.msra.mxu0 %v552_v40  ;;  %637 = vmatpush1.msra.mxu1 %v582_v41  ;;  %v782_v39 = vld [vmem:[%s2144_s9 + $0x70] sm:$0xff]  ;;  %v781_v40 = vld [vmem:[%s2144_s9 + $0x68] sm:$0xff]  ;;  %v780_v41 = vld [vmem:[%s2144_s9 + $0x60] sm:$0xff] }
 0x1df   :  { %707 = vmatprep.subr.mxu0 %v551_v42  ;;  %638 = vmatprep.subr.mxu1 %v581_v43  ;;  %v779_v42 = vld [vmem:[%s2144_s9 + $0x58] sm:$0xff]  ;;  %v778_v43 = vld [vmem:[%s2144_s9 + $0x50] sm:$0xff] }
 0x1e0   :  { %708 = vmatpush1.msra.mxu0 %v550_v44  ;;  %639 = vmatpush1.msra.mxu1 %v580_v45  ;;  %v777_v44 = vld [vmem:[%s2144_s9 + $0x48] sm:$0xff]  ;;  %v776_v45 = vld [vmem:[%s2144_s9 + $0x40] sm:$0xff] }
 0x1e1   :  { %640 = vmatprep.subr.mxu1 %v579_v47  ;;  %v774_v47 = vld [vmem:[%s2144_s9 + $0x30] sm:$0xff] }
 0x1e2   :  { %641 = vmatpush1.msra.mxu1 %v578_v49  ;;  %v772_v49 = vld [vmem:[%s2144_s9 + $0x20] sm:$0xff] }
 0x1e3   :  { %v1330_v46 = vpop.eup %1329  ;;  %825 = vmatprep.subr.mxu1 %v799_v52  ;;  %v769_v52 = vld [vmem:[%s2144_s9 + $0x8] sm:$0xff] }
 0x1e4   :  { %v1332_v50 = vpop.eup %1331 }
 0x1e5   :  { %v1334_v51 = vpop.eup %1333  ;;  %503 = vperm.xlu1 %1304, %v1332_v50  }
 0x1e6   :  { %487 = vperm.xlu0 %1303, %v1334_v51   ;;  %v480_v54 = vadd.f32 %v1334_v51, %v1330_v46  ;;  %v1336_v59 = vpop.eup %1335  ;;  %v546_v51 = vld [vmem:[%s2143_s6] sm:$0xff] }
 0x1e7   :  { %v1338_v8 = vpop.eup %1337 }
 0x1e8   :  { %v481_v60 = vadd.f32 %v1332_v50, %v480_v54  ;;  %v1340_v12 = vpop.eup %1339  ;;  %v547_v50 = vld [vmem:[%s2143_s6 + $0x8] sm:$0xff] }
 0x1e9   :  { %512 = vperm.xlu1 %1304, %v1336_v59  }
 0x1ea   :  { %v482_v4 = vadd.f32 %v1336_v59, %v481_v60  ;;  %494 = vperm.xlu0 %1303, %v1330_v46   ;;  %v549_v46 = vld [vmem:[%s2143_s6 + $0x18] sm:$0xff] }
 0x1eb   :  { %709 = vmatprep.subr.mxu0 %v549_v46  ;;  %v775_v46 = vld [vmem:[%s2144_s9 + $0x38] sm:$0xff] }
 0x1ec   :  { %v483_v13 = vadd.f32 %v1338_v8, %v482_v4  ;;  %710 = vmatpush1.msra.mxu0 %v548_v48  ;;  %v773_v48 = vld [vmem:[%s2144_s9 + $0x28] sm:$0xff] }
 0x1ed   :  { %530 = vperm.xlu1 %1304, %v1340_v12   ;;  %711 = vmatprep.subr.mxu0 %v547_v50  ;;  %v771_v50 = vld [vmem:[%s2144_s9 + $0x18] sm:$0xff] }
 0x1ee   :  { %521 = vperm.xlu0 %1303, %v1338_v8   ;;  %v484_v24 = vadd.f32 %v1340_v12, %v483_v13  ;;  %712 = vmatpush1.msra.mxu0 %v546_v51  ;;  %v770_v51 = vld [vmem:[%s2144_s9 + $0x10] sm:$0xff] }
 0x1f0   :  { %1341 = vrcp.f32 %v484_v24 }
 0x1fd   :  { %v1342_v53 = vpop.eup %1341 }
 0x1fe   :  { %541 = vperm.xlu0 %1303, %v1342_v53   ;;  %v768_v53 = vld [vmem:[%s2144_s9] sm:$0xff] }
 0x260   :  { %v504_v55 = vpop.permute.xlu1 %503 }
 0x261   :  { %v488_v54 = vpop.permute.xlu0 %487  ;;  %v506_v63 = vmul.f32 %v504_v55, %v1657_v11  ;;  %v508_v0 = vmul.f32 %v504_v55, %v1652_v10  ;;  %v800_v55 = vld [vmem:[%s2144_s9 + $0x100] sm:$0x1] }
 0x262   :  { %v490_v57 = vmul.f32 %v488_v54, %v1617_v2  ;;  %v491_v58 = vmul.f32 %v488_v54, %v1612_v1  ;;  %v801_v54 = vld [vmem:[%s2144_s9 + $0x108] sm:$0x1] }
 0x264   :  { %v513_v4 = vpop.permute.xlu1 %512 }
 0x265   :  { %v495_v56 = vpop.permute.xlu0 %494  ;;  %v515_v9 = vmul.f32 %v513_v4, %v1677_v15  ;;  %v517_v12 = vmul.f32 %v513_v4, %v1672_v14  ;;  %v798_v14 = vld [vmem:[%s2144_s9 + $0xf0] sm:$0xff] }
 0x266   :  { %v497_v59 = vmul.f32 %v495_v56, %v1637_v7  ;;  %v499_v60 = vmul.f32 %v495_v56, %v1632_v6  ;;  %v766_v56 = vld [vmem:[%s2145_s2] sm:$0xff] }
 0x268   :  { %v498_v61 = vadd.f32 %v497_v59, %v490_v57  ;;  %v500_v62 = vadd.f32 %v499_v60, %v491_v58  ;;  %v531_v16 = vpop.permute.xlu1 %530  ;;  %v754_v57 = vlaneseq  ;;  %v752_v60 = vld [vmem:[%s2146_s8] sm:$0x3] }
 0x269   :  { %v522_v2 = vpop.permute.xlu0 %521  ;;  %v533_v11 = vmul.f32 %v531_v16, %v1717_v23  ;;  %v535_v10 = vmul.f32 %v531_v16, %v1712_v22  ;;  %v796_v22 = vld [vmem:[%s2144_s9 + $0xe0] sm:$0xff]  ;;  %v795_v23 = vld [vmem:[%s2144_s9 + $0xd8] sm:$0xff] }
 0x26a   :  { %v507_v5 = vadd.f32 %v506_v63, %v498_v61  ;;  %v509_v8 = vadd.f32 %v508_v0, %v500_v62  ;;  %v524_v7 = vmul.f32 %v522_v2, %v1697_v19  ;;  %v526_v6 = vmul.f32 %v522_v2, %v1692_v18  ;;  %v767_v18 = vld [vmem:[%s2145_s2 + $0x8] sm:$0xff] }
 0x26b   :  { %v797_v19 = vld [vmem:[%s2144_s9 + $0xe8] sm:$0xff]  ;;  %v2101_v58 = vshrl.u32 %v754_v57, 7 }
 0x26c   :  { %v516_v13 = vadd.f32 %v515_v9, %v507_v5  ;;  %v518_v1 = vadd.f32 %v517_v12, %v509_v8 }
 0x26d   :  { %v756_v59 = vsub.s32 0, %v2101_v58  ;;  %v760_v61 = vsub.s32 1, %v2101_v58  ;;  %vm904_vm2 = vcmp.lt.s32.totalorder %v2101_v58, 2 }
 0x26e   :  { %v525_v17 = vadd.f32 %v524_v7, %v516_v13  ;;  %v527_v20 = vadd.f32 %v526_v6, %v518_v1  ;;  %v802_v1 = vld [vmem:[%s2148_s10] sm:$0x3] }
 0x26f   :  { %v757_v62 = vrot.slane %v752_v60, %v756_v59  ;;  %v761_v5 = vrot.slane %v752_v60, %v760_v61  ;;  %v807_v7 = vrot.slane %v802_v1, %v756_v59  ;;  %v811_v16 = vrot.slane %v802_v1, %v760_v61 }
 0x270   :  { %v534_v21 = vadd.f32 %v533_v11, %v525_v17  ;;  %v536_v24 = vadd.f32 %v535_v10, %v527_v20 }
 0x279   :  { %v542_v25 = vpop.permute.xlu0 %541 }
 0x27a   :  { %v544_v15 = vmul.f32 %v542_v25, %v534_v21  ;;  %v545_v26 = vmul.f32 %v542_v25, %v536_v24 }
 0x27c   :  { %675 = vmatmul.mubr.f32.vlgmr.msra.gmra.mxu1 %v545_v26  ;;  %746 = vmatmul.mubr.f32.vlgmr.msra.gmra.mxu0 %v544_v15 }
 0x27d   :  { %826 = vmatpush1.msra.mxu1 %v798_v14  ;;  %1232 = vmatprep.mubr.msk.f32.mxu1 %vm814_vm0, %v767_v18 }
 0x27e   :  { %827 = vmatprep.subr.mxu1 %v797_v19 }
 0x27f   :  { %828 = vmatpush1.msra.mxu1 %v796_v22 }
 0x280   :  { %829 = vmatprep.subr.mxu1 %v795_v23 }
 0x281   :  { %830 = vmatpush1.msra.mxu1 %v794_v27 }
 0x282   :  { %831 = vmatprep.subr.mxu1 %v793_v28 }
 0x283   :  { %832 = vmatpush1.msra.mxu1 %v792_v29  ;;  %v903_v29 = vand.u32 127, %v754_v57 }
 0x284   :  { %833 = vmatprep.subr.mxu1 %v791_v30 }
 0x285   :  { %834 = vmatpush1.msra.mxu1 %v790_v31  ;;  %vm905_vm3 = vcmp.lt.s32.totalorder %v903_v29, 2  ;;  %vm1071_vm9 = vcmp.eq.s32.totalorder %v2101_v58, %v903_v29 }
 0x286   :  { %835 = vmatprep.subr.mxu1 %v789_v32  ;;  %vm906_vm4 = vmand %vm904_vm2, %vm905_vm3 }
 0x287   :  { %836 = vmatpush1.msra.mxu1 %v788_v33 }
 0x288   :  { %837 = vmatprep.subr.mxu1 %v787_v34 }
 0x289   :  { %838 = vmatpush1.msra.mxu1 %v786_v35 }
 0x28a   :  { %839 = vmatprep.subr.mxu1 %v785_v36 }
 0x28b   :  { %840 = vmatpush1.msra.mxu1 %v784_v37 }
 0x28c   :  { %841 = vmatprep.subr.mxu1 %v783_v38  ;;  %v1233_v38 = vsel %vm1071_vm9, 1.0, %v1347_v3 }
 0x28d   :  { %842 = vmatpush1.msra.mxu1 %v782_v39 }
 0x28e   :  { %843 = vmatprep.subr.mxu1 %v781_v40 }
 0x28f   :  { %844 = vmatpush1.msra.mxu1 %v780_v41 }
 0x290   :  { %845 = vmatprep.subr.mxu1 %v779_v42 }
 0x291   :  { %846 = vmatpush1.msra.mxu1 %v778_v43 }
 0x292   :  { %847 = vmatprep.subr.mxu1 %v777_v44 }
 0x293   :  { %848 = vmatpush1.msra.mxu1 %v776_v45 }
 0x294   :  { %849 = vmatprep.subr.mxu1 %v775_v46 }
 0x295   :  { %850 = vmatpush1.msra.mxu1 %v774_v47 }
 0x296   :  { %851 = vmatprep.subr.mxu1 %v773_v48 }
 0x297   :  { %852 = vmatpush1.msra.mxu1 %v772_v49 }
 0x298   :  { %853 = vmatprep.subr.mxu1 %v771_v50 }
 0x299   :  { %854 = vmatpush1.msra.mxu1 %v770_v51 }
 0x29a   :  { %855 = vmatprep.subr.mxu1 %v769_v52 }
 0x29b   :  { %856 = vmatpush1.msra.mxu1 %v768_v53 }
 0x29c   :  { %1230 = vmatprep.subr.msk.mxu1 %vm818_vm1, %v801_v54 }
 0x29d   :  { %1231 = vmatpush2.msk.msra.mxu1 %vm818_vm1, %v800_v55 }
 0x29e   :  { %890 = vmatmul.mubr.f32.vlgmr.msra.gmra.mxu1 %v766_v56 }
 0x33c   :  { %v676_v63 = vpop.f32.mrf.mxu1  ;;  %v747_v0 = vpop.f32.mrf.mxu0 }
 0x33d   :  { %v748_v4 = vadd.f32 %v747_v0, %v676_v63 }
 0x33e   :  { %v678_v8 = vpop.f32.mrf.mxu1  ;;  %v749_v9 = vpop.f32.mrf.mxu0 }
 0x33f   :  { %v764_v12 = vadd.f32 %v757_v62, %v748_v4  ;;  %v750_v2 = vadd.f32 %v749_v9, %v678_v8 }
 0x341   :  { %896 = vst [vmem:[%s2147_s11] sm:$0xff] %v764_v12  ;;  %v765_v13 = vadd.f32 %v761_v5, %v750_v2  ;;  %v907_v20 = vmul.f32 %v764_v12, %v764_v12 }
 0x343   :  { %897 = vst [vmem:[%s2147_s11 + $0x8] sm:$0xff] %v765_v13  ;;  %v908_v6 = vmul.f32 %v765_v13, %v765_v13 }
 0x345   :  { %v911_v25 = vadd.f32 %v908_v6, %v907_v20 }
 0x35e   :  { %v891_v17 = vpop.f32.mrf.mxu1 }
 0x35f   :  { %v892_v11 = vadd.f32 %v891_v17, %v807_v7 }
 0x360   :  { %v893_v10 = vpop.f32.mrf.mxu1 }
 0x361   :  { %898 = vst [vmem:[%s2147_s11 + $0x10] sm:$0xff] %v892_v11  ;;  %v909_v21 = vmul.f32 %v892_v11, %v892_v11  ;;  %v894_v24 = vadd.f32 %v893_v10, %v811_v16 }
 0x363   :  { %899 = vst [vmem:[%s2147_s11 + $0x18] sm:$0xff] %v894_v24  ;;  %v910_v15 = vmul.f32 %v894_v24, %v894_v24  ;;  %v912_v26 = vadd.f32 %v911_v25, %v909_v21 }
 0x365   :  { %v913_v14 = vadd.f32 %v912_v26, %v910_v15 }
 0x367   :  { %914 = vadd.xlane.f32.xlu1 %v913_v14 }
 0x3f0   :  { %v915_v18 = vpop.xlane.xlu1 %914 }
 0x3f1   :  { %1343 = vrsqrt.f32 %v915_v18 }
 0x3fe   :  { %v1344_v19 = vpop.eup %1343 }
 0x3ff   :  { %v918_v22 = vmul.f32 %v1344_v19, %v765_v13  ;;  %v920_v23 = vmul.f32 %v1344_v19, %v894_v24  ;;  %v917_v27 = vmul.f32 %v1344_v19, %v764_v12  ;;  %v919_v28 = vmul.f32 %v1344_v19, %v892_v11 }
 0x401   :  { %951 = vmatprep.subr.mxu0 %v918_v22  ;;  %985 = vmatprep.mubr.f32.mxu0 %v918_v22 }
 0x402   :  { %1021 = vmatprep.subr.mxu1 %v920_v23  ;;  %1055 = vmatprep.mubr.f32.mxu1 %v920_v23 }
 0x403   :  { %952 = vmatpush1.xpose.msra.mxu0 %v917_v27  ;;  %1022 = vmatpush1.xpose.msra.mxu1 %v919_v28 }
 0x404   :  { %1290 = vmatprep.subr.mxu0 %v1347_v3  ;;  %1295 = vmatprep.subr.mxu1 %v1347_v3 }
 0x406   :  { %986 = vmatmul.mubr.f32.vlgmr.msra.gmra.mxu0 %v917_v27  ;;  %1056 = vmatmul.mubr.f32.vlgmr.msra.gmra.mxu1 %v919_v28 }
 0x407   :  { %1292 = vmatprep.mubr.msk.f32.mxu0 %vm1349_vm8, %v1347_v3  ;;  %1297 = vmatprep.mubr.msk.f32.mxu1 %vm1349_vm8, %v1347_v3 }
 0x4c6   :  { %v987_v30 = vpop.f32.mrf.mxu0  ;;  %v1057_v31 = vpop.f32.mrf.mxu1 }
 0x4c7   :  { %v1058_v32 = vadd.f32 %v1057_v31, %v987_v30 }
 0x4c8   :  { %v989_v33 = vpop.f32.mrf.mxu0  ;;  %v1059_v34 = vpop.f32.mrf.mxu1 }
 0x4c9   :  { %vm1061_vm5 = vcmp.gt.f32.partialorder %v1058_v32, 0.70710677 }
 0x4ca   :  { %vm1062_vm7 = vmand %vm1061_vm5, %vm906_vm4 }
 0x4cb   :  { %v1063_v35 = vsel %vm1062_vm7, %v1058_v32, 0.0 }
 0x4cc   :  { %v1065_v36 = vsel %vm1064_vm6, %v1063_v35, 0.0 }
 0x4cd   :  { %1066 = vadd.xlane.f32.xlu0 %v1065_v36 }
 0x556   :  { %v1067_v37 = vpop.xlane.xlu0 %1066 }
 0x557   :  { %1345 = vrsqrt.f32 %v1067_v37  ;;  %vm1068_vm10 = vcmp.gt.f32.partialorder %v1067_v37, 0.0 }
 0x564   :  { %v1346_v39 = vpop.eup %1345 }
 0x565   :  { %v1070_v40 = vsel %vm1068_vm10, %v1346_v39, 0.0 }
 0x566   :  { %v1074_v41 = vmul.f32 %v1233_v38, %v1070_v40 }
 0x568   :  { %1291 = vmatpush3.msra.mxu0 %v1074_v41 }
 0x569   :  { %1293 = vmatmul.mubr.msk.f32.vlgmr.msra.gmra.mxu0 %vm1064_vm6, %v1063_v35 }
 0x629   :  { %v1144_v42 = vpop.f32.mrf.mxu0 }
 0x62a   :  { %1296 = vmatpush3.msra.mxu1 %v1144_v42 }
 0x62b   :  { %v1294_v43 = vpop.f32.mrf.mxu0  ;;  %1298 = vmatmul.mubr.msk.f32.vlgmr.msra.gmra.mxu1 %vm1064_vm6, %v1074_v41 }
 0x6eb   :  { %v1217_v44 = vpop.f32.mrf.mxu1 }
 0x6ec   :  { %1221 = vst.msk [vmem:[%s2149_s12] sm:$0xff] %vm1064_vm6, %v1217_v44 }
 0x6ed   :  { %v1299_v45 = vpop.f32.mrf.mxu1 }

// kernel: cnn_lstm_attention_gat_forward.8
= control target key start
LH: loop header
LB: loop body
LE: loop exit
PB: predicated region body
PF: predicated region fallthrough
CT: control target
= control target key end

     0   :  { %v4225_v3 = vmov 0   ;;  %s4218_s1 = inlined_call_operand.vmem [shape: bf16[128,1024], index: 1, kind: input, shape index: {}]   ;;  %s4219_s3 = inlined_call_operand.vmem [shape: bf16[128,512], index: 3, kind: input, shape index: {}]   ;;  %s4220_s0 = inlined_call_operand.vmem [shape: f32[6,8,128], index: 0, kind: input, shape index: {}]   ;;  %s4221_s2 = inlined_call_operand.vmem [shape: f32[1,1024], index: 2, kind: input, shape index: {}]   ;;  %s4222_s5 = inlined_call_operand.vmem [shape: f32[6,8,128], index: 5, kind: output, shape index: {0}]   ;;  %s4223_s4 = inlined_call_operand.vmem [shape: bf16[128,512], index: 4, kind: input, shape index: {}]   ;;  %s4224_s6 = inlined_call_operand.vmem [shape: f32[6,8,128], index: 6, kind: output, shape index: {1}]  }
   0x1   :  { %v88_v0 = vld [vmem:[%s4218_s1 + $0x1c0] sm:$0xff]  ;;  %v89_v2 = vld [vmem:[%s4218_s1 + $0x1c8] sm:$0xff]  ;;  %490 = vmatprep.mubr.bf16.mxu0 %v4225_v3  ;;  %553 = vmatprep.mubr.bf16.mxu1 %v4225_v3  ;;  %v90_v62 = vld [vmem:[%s4218_s1 + $0x1d0] sm:$0xff] }
   0x2   :  { %v92_v1 = vld [vmem:[%s4218_s1 + $0x1e0] sm:$0xff]  ;;  %v93_v5 = vld [vmem:[%s4218_s1 + $0x1e8] sm:$0xff]  ;;  %v94_v63 = vld [vmem:[%s4218_s1 + $0x1f0] sm:$0xff] }
   0x3   :  { %v2511_v4 = vcombine.high %v88_v0, %v92_v1  ;;  %v2510_v6 = vcombine.low %v88_v0, %v92_v1  ;;  %v80_v7 = vld [vmem:[%s4218_s1 + $0x180] sm:$0xff]  ;;  %v2513_v9 = vcombine.high %v89_v2, %v93_v5  ;;  %v2512_v10 = vcombine.low %v89_v2, %v93_v5  ;;  %v81_v12 = vld [vmem:[%s4218_s1 + $0x188] sm:$0xff]  ;;  %v91_v1 = vld [vmem:[%s4218_s1 + $0x1d8] sm:$0xff] }
   0x4   :  { %v84_v8 = vld [vmem:[%s4218_s1 + $0x1a0] sm:$0xff]  ;;  %v85_v13 = vld [vmem:[%s4218_s1 + $0x1a8] sm:$0xff]  ;;  %v95_v2 = vld [vmem:[%s4218_s1 + $0x1f8] sm:$0xff] }
   0x5   :  { %v2503_v11 = vcombine.high %v80_v7, %v84_v8  ;;  %v72_v14 = vld [vmem:[%s4218_s1 + $0x140] sm:$0xff]  ;;  %458 = vmatprep.subr.bf16.mxu0 %v2511_v4  ;;  %v2505_v15 = vcombine.high %v81_v12, %v85_v13  ;;  %v73_v17 = vld [vmem:[%s4218_s1 + $0x148] sm:$0xff]  ;;  %521 = vmatprep.subr.bf16.mxu1 %v2513_v9  ;;  %v2502_v19 = vcombine.low %v80_v7, %v84_v8  ;;  %v82_v9 = vld [vmem:[%s4218_s1 + $0x190] sm:$0xff] }
   0x6   :  { %v76_v16 = vld [vmem:[%s4218_s1 + $0x160] sm:$0xff]  ;;  %v77_v18 = vld [vmem:[%s4218_s1 + $0x168] sm:$0xff]  ;;  %459 = vmatpush1.bf16.msra.mxu0 %v2510_v6  ;;  %522 = vmatpush1.bf16.msra.mxu1 %v2512_v10  ;;  %v2504_v20 = vcombine.low %v81_v12, %v85_v13  ;;  %v2515_v8 = vcombine.high %v90_v62, %v94_v63  ;;  %v2517_v10 = vcombine.high %v91_v1, %v95_v2  ;;  %v83_v12 = vld [vmem:[%s4218_s1 + $0x198] sm:$0xff] }
   0x7   :  { %460 = vmatprep.subr.bf16.mxu0 %v2503_v11  ;;  %v2495_v21 = vcombine.high %v72_v14, %v76_v16  ;;  %523 = vmatprep.subr.bf16.mxu1 %v2505_v15  ;;  %v2497_v22 = vcombine.high %v73_v17, %v77_v18  ;;  %v64_v23 = vld [vmem:[%s4218_s1 + $0x100] sm:$0xff]  ;;  %v65_v25 = vld [vmem:[%s4218_s1 + $0x108] sm:$0xff]  ;;  %v2494_v27 = vcombine.low %v72_v14, %v76_v16  ;;  %v86_v11 = vld [vmem:[%s4218_s1 + $0x1b0] sm:$0xff] }
   0x8   :  { %v68_v24 = vld [vmem:[%s4218_s1 + $0x120] sm:$0xff]  ;;  %v69_v26 = vld [vmem:[%s4218_s1 + $0x128] sm:$0xff]  ;;  %v2496_v28 = vcombine.low %v73_v17, %v77_v18  ;;  %v87_v14 = vld [vmem:[%s4218_s1 + $0x1b8] sm:$0xff]  ;;  %v2514_v15 = vcombine.low %v90_v62, %v94_v63  ;;  %v2516_v16 = vcombine.low %v91_v1, %v95_v2  ;;  %v2507_v17 = vcombine.high %v82_v9, %v86_v11 }
   0x9   :  { %v2487_v29 = vcombine.high %v64_v23, %v68_v24  ;;  %v2489_v30 = vcombine.high %v65_v25, %v69_v26  ;;  %v56_v31 = vld [vmem:[%s4218_s1 + $0xc0] sm:$0xff]  ;;  %v57_v33 = vld [vmem:[%s4218_s1 + $0xc8] sm:$0xff]  ;;  %v2486_v35 = vcombine.low %v64_v23, %v68_v24  ;;  %v2488_v36 = vcombine.low %v65_v25, %v69_v26  ;;  %v74_v18 = vld [vmem:[%s4218_s1 + $0x150] sm:$0xff] }
   0xa   :  { %461 = vmatpush1.bf16.msra.mxu0 %v2502_v19  ;;  %524 = vmatpush1.bf16.msra.mxu1 %v2504_v20  ;;  %v60_v32 = vld [vmem:[%s4218_s1 + $0xe0] sm:$0xff]  ;;  %v61_v34 = vld [vmem:[%s4218_s1 + $0xe8] sm:$0xff]  ;;  %v78_v19 = vld [vmem:[%s4218_s1 + $0x170] sm:$0xff]  ;;  %v2509_v20 = vcombine.high %v83_v12, %v87_v14  ;;  %v2506_v23 = vcombine.low %v82_v9, %v86_v11  ;;  %v2508_v26 = vcombine.low %v83_v12, %v87_v14 }
   0xb   :  { %462 = vmatprep.subr.bf16.mxu0 %v2495_v21  ;;  %525 = vmatprep.subr.bf16.mxu1 %v2497_v22  ;;  %v2479_v37 = vcombine.high %v56_v31, %v60_v32  ;;  %v2481_v38 = vcombine.high %v57_v33, %v61_v34  ;;  %v48_v39 = vld [vmem:[%s4218_s1 + $0x80] sm:$0xff]  ;;  %v49_v41 = vld [vmem:[%s4218_s1 + $0x88] sm:$0xff]  ;;  %v2478_v43 = vcombine.low %v56_v31, %v60_v32  ;;  %v75_v21 = vld [vmem:[%s4218_s1 + $0x158] sm:$0xff] }
   0xc   :  { %v52_v40 = vld [vmem:[%s4218_s1 + $0xa0] sm:$0xff]  ;;  %v53_v42 = vld [vmem:[%s4218_s1 + $0xa8] sm:$0xff]  ;;  %v2480_v44 = vcombine.low %v57_v33, %v61_v34  ;;  %v79_v22 = vld [vmem:[%s4218_s1 + $0x178] sm:$0xff]  ;;  %v2498_v34 = vcombine.low %v74_v18, %v78_v19 }
   0xd   :  { %v2471_v45 = vcombine.high %v48_v39, %v52_v40  ;;  %v2473_v46 = vcombine.high %v49_v41, %v53_v42  ;;  %v40_v47 = vld [vmem:[%s4218_s1 + $0x40] sm:$0xff]  ;;  %v41_v49 = vld [vmem:[%s4218_s1 + $0x48] sm:$0xff]  ;;  %v2470_v51 = vcombine.low %v48_v39, %v52_v40  ;;  %v2472_v52 = vcombine.low %v49_v41, %v53_v42  ;;  %v25_v24 = vld [vmem:[%s4220_s0 + $0x10] sm:$0xff] }
   0xe   :  { %463 = vmatpush1.bf16.msra.mxu0 %v2494_v27  ;;  %526 = vmatpush1.bf16.msra.mxu1 %v2496_v28  ;;  %v44_v48 = vld [vmem:[%s4218_s1 + $0x60] sm:$0xff]  ;;  %v45_v50 = vld [vmem:[%s4218_s1 + $0x68] sm:$0xff]  ;;  %v26_v25 = vld [vmem:[%s4220_s0 + $0x18] sm:$0xff]  ;;  %v2499_v27 = vcombine.high %v74_v18, %v78_v19 }
   0xf   :  { %464 = vmatprep.subr.bf16.mxu0 %v2487_v29  ;;  %527 = vmatprep.subr.bf16.mxu1 %v2489_v30  ;;  %v2463_v53 = vcombine.high %v40_v47, %v44_v48  ;;  %v2465_v54 = vcombine.high %v41_v49, %v45_v50  ;;  %v32_v55 = vld [vmem:[%s4218_s1] sm:$0xff]  ;;  %v33_v57 = vld [vmem:[%s4218_s1 + $0x8] sm:$0xff]  ;;  %v2462_v59 = vcombine.low %v40_v47, %v44_v48  ;;  %v66_v28 = vld [vmem:[%s4218_s1 + $0x110] sm:$0xff] }
  0x10   :  { %v36_v56 = vld [vmem:[%s4218_s1 + $0x20] sm:$0xff]  ;;  %v37_v58 = vld [vmem:[%s4218_s1 + $0x28] sm:$0xff]  ;;  %v2464_v60 = vcombine.low %v41_v49, %v45_v50  ;;  %v2501_v29 = vcombine.high %v75_v21, %v79_v22  ;;  %v70_v30 = vld [vmem:[%s4218_s1 + $0x130] sm:$0xff]  ;;  %v3113_v32 = vpack.c.bf16 %v26_v25, %v25_v24 }
  0x11   :  { %v2455_v61 = vcombine.high %v32_v55, %v36_v56  ;;  %v2457_v0 = vcombine.high %v33_v57, %v37_v58  ;;  %v2454_v4 = vcombine.low %v32_v55, %v36_v56  ;;  %v23_v5 = vld [vmem:[%s4220_s0] sm:$0xff]  ;;  %v24_v6 = vld [vmem:[%s4220_s0 + $0x8] sm:$0xff]  ;;  %v2456_v7 = vcombine.low %v33_v57, %v37_v58  ;;  %v67_v31 = vld [vmem:[%s4218_s1 + $0x118] sm:$0xff] }
  0x12   :  { %465 = vmatpush1.bf16.msra.mxu0 %v2486_v35  ;;  %528 = vmatpush1.bf16.msra.mxu1 %v2488_v36  ;;  %v3078_v13 = vpack.c.bf16 %v24_v6, %v23_v5  ;;  %v71_v33 = vld [vmem:[%s4218_s1 + $0x138] sm:$0xff]  ;;  %v2500_v35 = vcombine.low %v75_v21, %v79_v22  ;;  %v2491_v36 = vcombine.high %v66_v28, %v70_v30  ;;  %v50_v48 = vld [vmem:[%s4218_s1 + $0x90] sm:$0xff] }
  0x13   :  { %466 = vmatprep.subr.bf16.mxu0 %v2479_v37  ;;  %529 = vmatprep.subr.bf16.mxu1 %v2481_v38  ;;  %v58_v37 = vld [vmem:[%s4218_s1 + $0xd0] sm:$0xff]  ;;  %v2493_v39 = vcombine.high %v67_v31, %v71_v33  ;;  %v59_v40 = vld [vmem:[%s4218_s1 + $0xd8] sm:$0xff]  ;;  %v2490_v42 = vcombine.low %v66_v28, %v70_v30 }
  0x14   :  { %v62_v38 = vld [vmem:[%s4218_s1 + $0xf0] sm:$0xff]  ;;  %v63_v41 = vld [vmem:[%s4218_s1 + $0xf8] sm:$0xff] }
  0x15   :  { %v2485_v47 = vcombine.high %v59_v40, %v63_v41  ;;  %v54_v49 = vld [vmem:[%s4218_s1 + $0xb0] sm:$0xff]  ;;  %v39_v5 = vld [vmem:[%s4218_s1 + $0x38] sm:$0xff] }
  0x16   :  { %467 = vmatpush1.bf16.msra.mxu0 %v2478_v43  ;;  %530 = vmatpush1.bf16.msra.mxu1 %v2480_v44  ;;  %v27_v43 = vld [vmem:[%s4220_s0 + $0x20] sm:$0xff]  ;;  %v28_v44 = vld [vmem:[%s4220_s0 + $0x28] sm:$0xff]  ;;  %v2475_v55 = vcombine.high %v50_v48, %v54_v49  ;;  %v42_v57 = vld [vmem:[%s4218_s1 + $0x50] sm:$0xff] }
  0x17   :  { %468 = vmatprep.subr.bf16.mxu0 %v2471_v45  ;;  %531 = vmatprep.subr.bf16.mxu1 %v2473_v46  ;;  %v2492_v45 = vcombine.low %v67_v31, %v71_v33  ;;  %v2483_v46 = vcombine.high %v58_v37, %v62_v38  ;;  %v3146_v50 = vpack.c.bf16 %v28_v44, %v27_v43  ;;  %v46_v58 = vld [vmem:[%s4218_s1 + $0x70] sm:$0xff]  ;;  %v3191_v14 = vld [vmem:[%s4219_s3 + $0xec] ss:$16 sps:$4 sm:$0xff]   ;;  %v3306_v31 = vld [vmem:[%s4219_s3 + $0x68] ss:$16 sps:$4 sm:$0xff]   ;;  %v98_v44 = vlaneseq }
  0x18   :  { %v2467_v63 = vcombine.high %v42_v57, %v46_v58  ;;  %v34_v1 = vld [vmem:[%s4218_s1 + $0x10] sm:$0xff]  ;;  %v2466_v6 = vcombine.low %v42_v57, %v46_v58  ;;  %v3213_v18 = vld [vmem:[%s4219_s3 + $0xcc] ss:$16 sps:$4 sm:$0xff]   ;;  %v3382_v43 = vld [vmem:[%s4219_s3 + $0x8] ss:$16 sps:$4 sm:$0xff]  }
  0x19   :  { %v38_v2 = vld [vmem:[%s4218_s1 + $0x30] sm:$0xff]  ;;  %v3239_v21 = vld [vmem:[%s4219_s3 + $0xac] ss:$16 sps:$4 sm:$0xff]  }
  0x1a   :  { %469 = vmatpush1.bf16.msra.mxu0 %v2470_v51  ;;  %532 = vmatpush1.bf16.msra.mxu1 %v2472_v52  ;;  %v51_v51 = vld [vmem:[%s4218_s1 + $0x98] sm:$0xff]  ;;  %v3186_v12 = vld [vmem:[%s4219_s3 + $0xe4] ss:$16 sps:$4 sm:$0xff]   ;;  %v3221_v19 = vld [vmem:[%s4219_s3 + $0xc0] ss:$16 sps:$4 sm:$0xff]  }
  0x1b   :  { %470 = vmatprep.subr.bf16.mxu0 %v2463_v53  ;;  %533 = vmatprep.subr.bf16.mxu1 %v2465_v54  ;;  %v55_v52 = vld [vmem:[%s4218_s1 + $0xb8] sm:$0xff]  ;;  %v2482_v53 = vcombine.low %v58_v37, %v62_v38  ;;  %v2484_v54 = vcombine.low %v59_v40, %v63_v41  ;;  %v3247_v22 = vld [vmem:[%s4219_s3 + $0xa0] ss:$16 sps:$4 sm:$0xff]   ;;  %v3259_v24 = vld [vmem:[%s4219_s3 + $0x84] ss:$16 sps:$4 sm:$0xff]  }
  0x1c   :  { %v2477_v56 = vcombine.high %v51_v51, %v55_v52  ;;  %v2476_v62 = vcombine.low %v51_v51, %v55_v52  ;;  %v3265_v25 = vld [vmem:[%s4219_s3 + $0x8c] ss:$16 sps:$4 sm:$0xff]   ;;  %v3285_v28 = vld [vmem:[%s4219_s3 + $0x64] ss:$16 sps:$4 sm:$0xff]   ;;  %v3299_v30 = vld [vmem:[%s4219_s3 + $0x60] ss:$16 sps:$4 sm:$0xff]  }
  0x1d   :  { %v3317_v33 = vld [vmem:[%s4219_s3 + $0x4c] ss:$16 sps:$4 sm:$0xff]   ;;  %v3351_v38 = vld [vmem:[%s4219_s3 + $0x20] ss:$16 sps:$4 sm:$0xff]   ;;  %v3363_v40 = vld [vmem:[%s4219_s3 + $0x4] ss:$16 sps:$4 sm:$0xff]  }
  0x1e   :  { %471 = vmatpush1.bf16.msra.mxu0 %v2462_v59  ;;  %534 = vmatpush1.bf16.msra.mxu1 %v2464_v60  ;;  %v43_v59 = vld [vmem:[%s4218_s1 + $0x58] sm:$0xff] }
  0x1f   :  { %472 = vmatprep.subr.bf16.mxu0 %v2455_v61  ;;  %535 = vmatprep.subr.bf16.mxu1 %v2457_v0  ;;  %v47_v60 = vld [vmem:[%s4218_s1 + $0x78] sm:$0xff]  ;;  %v2474_v61 = vcombine.low %v50_v48, %v54_v49  ;;  %v96_v48 = vld [vmem:[%s4221_s2] sm:$0xff] }
  0x20   :  { %v2469_v0 = vcombine.high %v43_v59, %v47_v60  ;;  %v3343_v37 = vld [vmem:[%s4219_s3 + $0x2c] ss:$16 sps:$4 sm:$0xff]  }
  0x21   :  { %v3369_v41 = vld [vmem:[%s4219_s3 + $0xc] ss:$16 sps:$4 sm:$0xff]  }
  0x22   :  { %473 = vmatpush1.bf16.msra.mxu0 %v2454_v4  ;;  %536 = vmatpush1.bf16.msra.mxu1 %v2456_v7  ;;  %v35_v4 = vld [vmem:[%s4218_s1 + $0x18] sm:$0xff]  ;;  %v2468_v7 = vcombine.low %v43_v59, %v47_v60 }
  0x23   :  { %584 = vmatprep.subr.bf16.mxu0 %v2515_v8  ;;  %647 = vmatprep.subr.bf16.mxu1 %v2517_v10  ;;  %v2459_v8 = vcombine.high %v34_v1, %v38_v2  ;;  %v2461_v9 = vcombine.high %v35_v4, %v39_v5  ;;  %v2458_v10 = vcombine.low %v34_v1, %v38_v2 }
  0x24   :  { %v2460_v11 = vcombine.low %v35_v4, %v39_v5 }
  0x25   :  { %491 = vmatmul.mubr.bf16.vlgmr.msra.gmra.mxu0 %v3078_v13  ;;  %554 = vmatmul.mubr.bf16.vlgmr.msra.gmra.mxu1 %v3078_v13 }
  0x26   :  { %585 = vmatpush1.bf16.msra.mxu0 %v2514_v15  ;;  %648 = vmatpush1.bf16.msra.mxu1 %v2516_v16  ;;  %v3196_v15 = vld [vmem:[%s4219_s3 + $0xe0] ss:$16 sps:$4 sm:$0xff]   ;;  %v3202_v16 = vld [vmem:[%s4219_s3 + $0xe8] ss:$16 sps:$4 sm:$0xff]  }
  0x27   :  { %586 = vmatprep.subr.bf16.mxu0 %v2507_v17  ;;  %649 = vmatprep.subr.bf16.mxu1 %v2509_v20  ;;  %v3207_v17 = vld [vmem:[%s4219_s3 + $0xc4] ss:$16 sps:$4 sm:$0xff]   ;;  %v3228_v20 = vld [vmem:[%s4219_s3 + $0xc8] ss:$16 sps:$4 sm:$0xff]  }
  0x28   :  { %500 = vmatprep.mubr.bf16.mxu0 %v4225_v3  ;;  %563 = vmatprep.mubr.bf16.mxu1 %v4225_v3 }
  0x2a   :  { %587 = vmatpush1.bf16.msra.mxu0 %v2506_v23  ;;  %650 = vmatpush1.bf16.msra.mxu1 %v2508_v26  ;;  %v3254_v23 = vld [vmem:[%s4219_s3 + $0xa8] ss:$16 sps:$4 sm:$0xff]   ;;  %v3272_v26 = vld [vmem:[%s4219_s3 + $0x80] ss:$16 sps:$4 sm:$0xff]  }
  0x2b   :  { %588 = vmatprep.subr.bf16.mxu0 %v2499_v27  ;;  %651 = vmatprep.subr.bf16.mxu1 %v2501_v29  ;;  %v3280_v27 = vld [vmem:[%s4219_s3 + $0x88] ss:$16 sps:$4 sm:$0xff]   ;;  %v3291_v29 = vld [vmem:[%s4219_s3 + $0x6c] ss:$16 sps:$4 sm:$0xff]  }
  0x2d   :  { %501 = vmatmul.mubr.bf16.gmra.mxu0 %v3113_v32  ;;  %564 = vmatmul.mubr.bf16.gmra.mxu1 %v3113_v32 }
  0x2e   :  { %589 = vmatpush1.bf16.msra.mxu0 %v2498_v34  ;;  %652 = vmatpush1.bf16.msra.mxu1 %v2500_v35  ;;  %v3324_v34 = vld [vmem:[%s4219_s3 + $0x40] ss:$16 sps:$4 sm:$0xff]   ;;  %v3332_v35 = vld [vmem:[%s4219_s3 + $0x48] ss:$16 sps:$4 sm:$0xff]  }
  0x2f   :  { %590 = vmatprep.subr.bf16.mxu0 %v2491_v36  ;;  %653 = vmatprep.subr.bf16.mxu1 %v2493_v39  ;;  %v3337_v36 = vld [vmem:[%s4219_s3 + $0x24] ss:$16 sps:$4 sm:$0xff]   ;;  %v3358_v39 = vld [vmem:[%s4219_s3 + $0x28] ss:$16 sps:$4 sm:$0xff]  }
  0x30   :  { %510 = vmatprep.mubr.bf16.mxu0 %v4225_v3  ;;  %573 = vmatprep.mubr.bf16.mxu1 %v4225_v3 }
  0x32   :  { %591 = vmatpush1.bf16.msra.mxu0 %v2490_v42  ;;  %654 = vmatpush1.bf16.msra.mxu1 %v2492_v45  ;;  %v3375_v42 = vld [vmem:[%s4219_s3] ss:$16 sps:$4 sm:$0xff]   ;;  %v3425_v45 = vshrl.u32 %v98_v44, 7 }
  0x33   :  { %592 = vmatprep.subr.bf16.mxu0 %v2483_v46  ;;  %655 = vmatprep.subr.bf16.mxu1 %v2485_v47 }
  0x34   :  { %v108_v46 = vsub.s32 2, %v3425_v45  ;;  %v100_v47 = vsub.s32 0, %v3425_v45  ;;  %v104_v51 = vsub.s32 1, %v3425_v45 }
  0x35   :  { %511 = vmatmul.mubr.bf16.gmra.mxu0 %v3146_v50  ;;  %574 = vmatmul.mubr.bf16.gmra.mxu1 %v3146_v50 }
  0x36   :  { %593 = vmatpush1.bf16.msra.mxu0 %v2482_v53  ;;  %656 = vmatpush1.bf16.msra.mxu1 %v2484_v54  ;;  %v3440_v54 = vrot.slane %v96_v48, %v108_v46  ;;  %v3448_v59 = vrot.slane %v96_v48, %v104_v51 }
  0x37   :  { %594 = vmatprep.subr.bf16.mxu0 %v2475_v55  ;;  %657 = vmatprep.subr.bf16.mxu1 %v2477_v56  ;;  %v3442_v55 = vrot.slane %v96_v48, %v100_v47 }
  0x38   :  { %616 = vmatprep.mubr.bf16.mxu0 %v4225_v3  ;;  %679 = vmatprep.mubr.bf16.mxu1 %v4225_v3 }
  0x3a   :  { %595 = vmatpush1.bf16.msra.mxu0 %v2474_v61  ;;  %658 = vmatpush1.bf16.msra.mxu1 %v2476_v62 }
  0x3b   :  { %596 = vmatprep.subr.bf16.mxu0 %v2467_v63  ;;  %659 = vmatprep.subr.bf16.mxu1 %v2469_v0 }
  0x3e   :  { %597 = vmatpush1.bf16.msra.mxu0 %v2466_v6  ;;  %660 = vmatpush1.bf16.msra.mxu1 %v2468_v7 }
  0x3f   :  { %598 = vmatprep.subr.bf16.mxu0 %v2459_v8  ;;  %661 = vmatprep.subr.bf16.mxu1 %v2461_v9 }
  0x42   :  { %599 = vmatpush1.bf16.msra.mxu0 %v2458_v10  ;;  %662 = vmatpush1.bf16.msra.mxu1 %v2460_v11 }
  0x43   :  { %934 = vmatprep.subr.bf16.mxu0 %v3186_v12  ;;  %975 = vmatprep.subr.bf16.mxu1 %v3191_v14 }
  0x45   :  { %617 = vmatmul.mubr.bf16.vlgmr.msra.gmra.mxu0 %v3078_v13  ;;  %680 = vmatmul.mubr.bf16.vlgmr.msra.gmra.mxu1 %v3078_v13  ;;  %v3233_v13 = vld [vmem:[%s4219_s3 + $0xa4] ss:$16 sps:$4 sm:$0xff]  }
  0x46   :  { %935 = vmatpush1.bf16.msra.mxu0 %v3196_v15  ;;  %976 = vmatpush1.bf16.msra.mxu1 %v3202_v16 }
  0x47   :  { %936 = vmatprep.subr.bf16.mxu0 %v3207_v17  ;;  %977 = vmatprep.subr.bf16.mxu1 %v3213_v18 }
  0x48   :  { %626 = vmatprep.mubr.bf16.mxu0 %v4225_v3  ;;  %689 = vmatprep.mubr.bf16.mxu1 %v4225_v3 }
  0x4a   :  { %937 = vmatpush1.bf16.msra.mxu0 %v3221_v19  ;;  %978 = vmatpush1.bf16.msra.mxu1 %v3228_v20 }
  0x4b   :  { %938 = vmatprep.subr.bf16.mxu0 %v3233_v13  ;;  %979 = vmatprep.subr.bf16.mxu1 %v3239_v21 }
  0x4d   :  { %627 = vmatmul.mubr.bf16.gmra.mxu0 %v3113_v32  ;;  %690 = vmatmul.mubr.bf16.gmra.mxu1 %v3113_v32  ;;  %v3311_v32 = vld [vmem:[%s4219_s3 + $0x44] ss:$16 sps:$4 sm:$0xff]  }
  0x4e   :  { %939 = vmatpush1.bf16.msra.mxu0 %v3247_v22  ;;  %980 = vmatpush1.bf16.msra.mxu1 %v3254_v23 }
  0x4f   :  { %940 = vmatprep.subr.bf16.mxu0 %v3259_v24  ;;  %981 = vmatprep.subr.bf16.mxu1 %v3265_v25 }
  0x50   :  { %636 = vmatprep.mubr.bf16.mxu0 %v4225_v3  ;;  %699 = vmatprep.mubr.bf16.mxu1 %v4225_v3 }
  0x52   :  { %941 = vmatpush1.bf16.msra.mxu0 %v3272_v26  ;;  %982 = vmatpush1.bf16.msra.mxu1 %v3280_v27 }
  0x53   :  { %942 = vmatprep.subr.bf16.mxu0 %v3285_v28  ;;  %983 = vmatprep.subr.bf16.mxu1 %v3291_v29 }
  0x55   :  { %637 = vmatmul.mubr.bf16.gmra.mxu0 %v3146_v50  ;;  %700 = vmatmul.mubr.bf16.gmra.mxu1 %v3146_v50  ;;  %v112_v50 = vsub.s32 3, %v3425_v45 }
  0x56   :  { %943 = vmatpush1.bf16.msra.mxu0 %v3299_v30  ;;  %984 = vmatpush1.bf16.msra.mxu1 %v3306_v31 }
  0x57   :  { %944 = vmatprep.subr.bf16.mxu0 %v3311_v32  ;;  %985 = vmatprep.subr.bf16.mxu1 %v3317_v33  ;;  %v3446_v58 = vrot.slane %v96_v48, %v112_v50 }
  0x58   :  { %966 = vmatprep.mubr.bf16.mxu0 %v4225_v3  ;;  %1007 = vmatprep.mubr.bf16.mxu1 %v4225_v3 }
  0x5a   :  { %945 = vmatpush1.bf16.msra.mxu0 %v3324_v34  ;;  %986 = vmatpush1.bf16.msra.mxu1 %v3332_v35 }
  0x5b   :  { %946 = vmatprep.subr.bf16.mxu0 %v3337_v36  ;;  %987 = vmatprep.subr.bf16.mxu1 %v3343_v37 }
  0x5e   :  { %947 = vmatpush1.bf16.msra.mxu0 %v3351_v38  ;;  %988 = vmatpush1.bf16.msra.mxu1 %v3358_v39 }
  0x5f   :  { %948 = vmatprep.subr.bf16.mxu0 %v3363_v40  ;;  %989 = vmatprep.subr.bf16.mxu1 %v3369_v41 }
  0x62   :  { %949 = vmatpush1.bf16.msra.mxu0 %v3375_v42  ;;  %990 = vmatpush1.bf16.msra.mxu1 %v3382_v43 }
  0x63   :  { %1046 = vmatprep.subr.bf16.mxu0 %v3186_v12  ;;  %1087 = vmatprep.subr.bf16.mxu1 %v3191_v14 }
  0x65   :  { %967 = vmatmul.mubr.bf16.vlgmr.msra.gmra.mxu0 %v4225_v3  ;;  %1008 = vmatmul.mubr.bf16.vlgmr.msra.gmra.mxu1 %v4225_v3 }
  0x66   :  { %1047 = vmatpush1.bf16.msra.mxu0 %v3196_v15  ;;  %1088 = vmatpush1.bf16.msra.mxu1 %v3202_v16 }
  0x67   :  { %1048 = vmatprep.subr.bf16.mxu0 %v3207_v17  ;;  %1089 = vmatprep.subr.bf16.mxu1 %v3213_v18 }
  0x68   :  { %1078 = vmatprep.mubr.bf16.mxu0 %v4225_v3  ;;  %1119 = vmatprep.mubr.bf16.mxu1 %v4225_v3 }
  0x6a   :  { %1049 = vmatpush1.bf16.msra.mxu0 %v3221_v19  ;;  %1090 = vmatpush1.bf16.msra.mxu1 %v3228_v20 }
  0x6b   :  { %1050 = vmatprep.subr.bf16.mxu0 %v3233_v13  ;;  %1091 = vmatprep.subr.bf16.mxu1 %v3239_v21 }
  0x6e   :  { %1051 = vmatpush1.bf16.msra.mxu0 %v3247_v22  ;;  %1092 = vmatpush1.bf16.msra.mxu1 %v3254_v23 }
  0x6f   :  { %1052 = vmatprep.subr.bf16.mxu0 %v3259_v24  ;;  %1093 = vmatprep.subr.bf16.mxu1 %v3265_v25 }
  0x72   :  { %1053 = vmatpush1.bf16.msra.mxu0 %v3272_v26  ;;  %1094 = vmatpush1.bf16.msra.mxu1 %v3280_v27 }
  0x73   :  { %1054 = vmatprep.subr.bf16.mxu0 %v3285_v28  ;;  %1095 = vmatprep.subr.bf16.mxu1 %v3291_v29 }
  0x76   :  { %1055 = vmatpush1.bf16.msra.mxu0 %v3299_v30  ;;  %1096 = vmatpush1.bf16.msra.mxu1 %v3306_v31 }
  0x77   :  { %1056 = vmatprep.subr.bf16.mxu0 %v3311_v32  ;;  %1097 = vmatprep.subr.bf16.mxu1 %v3317_v33 }
  0x7a   :  { %1057 = vmatpush1.bf16.msra.mxu0 %v3324_v34  ;;  %1098 = vmatpush1.bf16.msra.mxu1 %v3332_v35 }
  0x7b   :  { %1058 = vmatprep.subr.bf16.mxu0 %v3337_v36  ;;  %1099 = vmatprep.subr.bf16.mxu1 %v3343_v37 }
  0x7e   :  { %1059 = vmatpush1.bf16.msra.mxu0 %v3351_v38  ;;  %1100 = vmatpush1.bf16.msra.mxu1 %v3358_v39 }
  0x7f   :  { %1060 = vmatprep.subr.bf16.mxu0 %v3363_v40  ;;  %1101 = vmatprep.subr.bf16.mxu1 %v3369_v41 }
  0x82   :  { %1061 = vmatpush1.bf16.msra.mxu0 %v3375_v42  ;;  %1102 = vmatpush1.bf16.msra.mxu1 %v3382_v43 }
  0x83   :  { %1159 = vmatprep.subr.bf16.mxu0 %v3186_v12  ;;  %1200 = vmatprep.subr.bf16.mxu1 %v3191_v14 }
  0xe5   :  { %v3432_v49 = vpop.f32.mrf.mxu0  ;;  %v3436_v52 = vpop.f32.mrf.mxu1 }
  0xe7   :  { %v3438_v53 = vpop.f32.mrf.mxu0  ;;  %v3444_v56 = vpop.f32.mrf.mxu1 }
  0xe9   :  { %v496_v57 = vpop.f32.mrf.mxu0  ;;  %v559_v61 = vpop.f32.mrf.mxu1 }
  0xea   :  { %v3451_v60 = vadd.f32 %v496_v57, %v3442_v55  ;;  %v3454_v63 = vadd.f32 %v559_v61, %v3440_v54 }
  0xeb   :  { %v498_v62 = vpop.f32.mrf.mxu0  ;;  %v561_v1 = vpop.f32.mrf.mxu1 }
  0xec   :  { %v3457_v0 = vadd.f32 %v498_v62, %v3448_v59  ;;  %v3460_v4 = vadd.f32 %v561_v1, %v3446_v58 }
  0xed   :  { %v502_v2 = vpop.f32.mrf.mxu0  ;;  %v565_v6 = vpop.f32.mrf.mxu1 }
  0xee   :  { %v3463_v5 = vadd.f32 %v502_v2, %v3442_v55  ;;  %v3466_v8 = vadd.f32 %v565_v6, %v3440_v54 }
  0xef   :  { %v504_v7 = vpop.f32.mrf.mxu0  ;;  %v567_v10 = vpop.f32.mrf.mxu1 }
  0xf0   :  { %v3469_v9 = vadd.f32 %v504_v7, %v3448_v59  ;;  %v3472_v44 = vadd.f32 %v567_v10, %v3446_v58 }
  0xf1   :  { %v506_v11 = vpop.f32.mrf.mxu0  ;;  %v569_v47 = vpop.f32.mrf.mxu1 }
  0xf2   :  { %v3475_v46 = vadd.f32 %v506_v11, %v3442_v55  ;;  %v3478_v51 = vadd.f32 %v569_v47, %v3440_v54 }
  0xf3   :  { %v508_v50 = vpop.f32.mrf.mxu0  ;;  %v571_v61 = vpop.f32.mrf.mxu1 }
  0xf4   :  { %4230 = vst [vmem:[#allocation2_spill] sm:$0xff] %v3475_v46  ;;  %4231 = vst [vmem:[#allocation3_spill] sm:$0xff] %v3478_v51  ;;  %v3481_v57 = vadd.f32 %v508_v50, %v3448_v59  ;;  %v3484_v1 = vadd.f32 %v571_v61, %v3446_v58 }
  0xf5   :  { %v512_v62 = vpop.f32.mrf.mxu0  ;;  %v575_v6 = vpop.f32.mrf.mxu1 }
  0xf6   :  { %4232 = vst [vmem:[#allocation4_spill] sm:$0xff] %v3481_v57  ;;  %4233 = vst [vmem:[#allocation5_spill] sm:$0xff] %v3484_v1  ;;  %v3487_v2 = vadd.f32 %v512_v62, %v3442_v55  ;;  %v3490_v10 = vadd.f32 %v575_v6, %v3440_v54 }
  0xf7   :  { %v514_v7 = vpop.f32.mrf.mxu0  ;;  %v577_v47 = vpop.f32.mrf.mxu1 }
  0xf8   :  { %4234 = vst [vmem:[#allocation6_spill] sm:$0xff] %v3487_v2  ;;  %4235 = vst [vmem:[#allocation7_spill] sm:$0xff] %v3490_v10  ;;  %v3493_v11 = vadd.f32 %v514_v7, %v3448_v59  ;;  %v3496_v50 = vadd.f32 %v577_v47, %v3446_v58  ;;  %v116_v10 = vsub.s32 4, %v3425_v45  ;;  %v124_v47 = vsub.s32 6, %v3425_v45 }
  0xf9   :  { %v516_v3 = vpop.f32.mrf.mxu0  ;;  %v579_v61 = vpop.f32.mrf.mxu1 }
  0xfa   :  { %4236 = vst [vmem:[#allocation8_spill] sm:$0xff] %v3493_v11  ;;  %4237 = vst [vmem:[#allocation9_spill] sm:$0xff] %v3496_v50  ;;  %v3499_v51 = vadd.f32 %v516_v3, %v3442_v55  ;;  %v3502_v62 = vadd.f32 %v579_v61, %v3440_v54  ;;  %v120_v50 = vsub.s32 5, %v3425_v45  ;;  %v128_v3 = vsub.s32 7, %v3425_v45 }
  0xfb   :  { %v518_v1 = vpop.f32.mrf.mxu0  ;;  %v581_v6 = vpop.f32.mrf.mxu1  ;;  %v3516_v11 = vrot.slane %v96_v48, %v124_v47 }
  0xfc   :  { %4238 = vst [vmem:[#allocation10_spill] sm:$0xff] %v3499_v51  ;;  %4239 = vst [vmem:[#allocation11_spill] sm:$0xff] %v3502_v62  ;;  %v3505_v2 = vadd.f32 %v518_v1, %v3448_v59  ;;  %v3508_v7 = vadd.f32 %v581_v6, %v3446_v58  ;;  %v3514_v51 = vrot.slane %v96_v48, %v116_v10 }
  0xfd   :  { %4242 = vst [vmem:[#allocation14_spill] sm:$0xff] %v3516_v11  ;;  %v3518_v61 = vrot.slane %v96_v48, %v120_v50  ;;  %v3520_v62 = vrot.slane %v96_v48, %v128_v3 }
  0xfe   :  { %4240 = vst [vmem:[#allocation12_spill] sm:$0xff] %v3505_v2  ;;  %4241 = vst [vmem:[#allocation13_spill] sm:$0xff] %v3508_v7 }
  0xff   :  { %4243 = vst [vmem:[#allocation15_spill] sm:$0xff] %v3518_v61  ;;  %4244 = vst [vmem:[#allocation16_spill] sm:$0xff] %v3520_v62 }
 0x105   :  { %v618_v1 = vpop.f32.mrf.mxu0  ;;  %v681_v7 = vpop.f32.mrf.mxu1 }
 0x106   :  { %v3523_v6 = vadd.f32 %v618_v1, %v3514_v51  ;;  %v3526_v57 = vadd.f32 %v681_v7, %v3516_v11 }
 0x107   :  { %v620_v2 = vpop.f32.mrf.mxu0  ;;  %v683_v45 = vpop.f32.mrf.mxu1 }
 0x108   :  { %4245 = vst [vmem:[#allocation17_spill] sm:$0xff] %v3523_v6  ;;  %4246 = vst [vmem:[#allocation18_spill] sm:$0xff] %v3526_v57  ;;  %v3529_v46 = vadd.f32 %v620_v2, %v3518_v61  ;;  %v3532_v47 = vadd.f32 %v683_v45, %v3520_v62 }
 0x109   :  { %v622_v10 = vpop.f32.mrf.mxu0  ;;  %v685_v48 = vpop.f32.mrf.mxu1 }
 0x10a   :  { %4247 = vst [vmem:[#allocation19_spill] sm:$0xff] %v3529_v46  ;;  %4248 = vst [vmem:[#allocation20_spill] sm:$0xff] %v3532_v47  ;;  %v3535_v50 = vadd.f32 %v622_v10, %v3514_v51  ;;  %v3538_v1 = vadd.f32 %v685_v48, %v3516_v11 }
 0x10b   :  { %v624_v3 = vpop.f32.mrf.mxu0  ;;  %v687_v7 = vpop.f32.mrf.mxu1 }
 0x10c   :  { %4249 = vst [vmem:[#allocation21_spill] sm:$0xff] %v3535_v50  ;;  %4250 = vst [vmem:[#allocation22_spill] sm:$0xff] %v3538_v1  ;;  %v3541_v6 = vadd.f32 %v624_v3, %v3518_v61  ;;  %v3544_v2 = vadd.f32 %v687_v7, %v3520_v62 }
 0x10d   :  { %v628_v57 = vpop.f32.mrf.mxu0  ;;  %v691_v45 = vpop.f32.mrf.mxu1 }
 0x10e   :  { %4251 = vst [vmem:[#allocation23_spill] sm:$0xff] %v3541_v6  ;;  %4252 = vst [vmem:[#allocation24_spill] sm:$0xff] %v3544_v2  ;;  %v3547_v46 = vadd.f32 %v628_v57, %v3514_v51  ;;  %v3550_v10 = vadd.f32 %v691_v45, %v3516_v11 }
 0x10f   :  { %v630_v47 = vpop.f32.mrf.mxu0  ;;  %v693_v48 = vpop.f32.mrf.mxu1 }
 0x110   :  { %4253 = vst [vmem:[#allocation25_spill] sm:$0xff] %v3547_v46  ;;  %4254 = vst [vmem:[#allocation26_spill] sm:$0xff] %v3550_v10  ;;  %v3553_v50 = vadd.f32 %v630_v47, %v3518_v61  ;;  %v3556_v3 = vadd.f32 %v693_v48, %v3520_v62 }
 0x111   :  { %v632_v1 = vpop.f32.mrf.mxu0  ;;  %v695_v7 = vpop.f32.mrf.mxu1 }
 0x112   :  { %4255 = vst [vmem:[#allocation27_spill] sm:$0xff] %v3553_v50  ;;  %4256 = vst [vmem:[#allocation28_spill] sm:$0xff] %v3556_v3  ;;  %v3559_v6 = vadd.f32 %v632_v1, %v3514_v51  ;;  %v3562_v57 = vadd.f32 %v695_v7, %v3516_v11 }
 0x113   :  { %v634_v2 = vpop.f32.mrf.mxu0  ;;  %v697_v45 = vpop.f32.mrf.mxu1 }
 0x114   :  { %4257 = vst [vmem:[#allocation29_spill] sm:$0xff] %v3559_v6  ;;  %4258 = vst [vmem:[#allocation30_spill] sm:$0xff] %v3562_v57  ;;  %v3565_v46 = vadd.f32 %v634_v2, %v3518_v61  ;;  %v3568_v47 = vadd.f32 %v697_v45, %v3520_v62 }
 0x115   :  { %v638_v10 = vpop.f32.mrf.mxu0  ;;  %v701_v48 = vpop.f32.mrf.mxu1 }
 0x116   :  { %4259 = vst [vmem:[#allocation31_spill] sm:$0xff] %v3565_v46  ;;  %4260 = vst [vmem:[#allocation32_spill] sm:$0xff] %v3568_v47  ;;  %v3571_v50 = vadd.f32 %v638_v10, %v3514_v51  ;;  %v3574_v1 = vadd.f32 %v701_v48, %v3516_v11  ;;  %v493_v47 = vadd.f32 %v3432_v49, %v3442_v55 }
 0x117   :  { %v640_v3 = vpop.f32.mrf.mxu0  ;;  %v703_v7 = vpop.f32.mrf.mxu1  ;;  %v558_v49 = vadd.f32 %v3444_v56, %v3446_v58 }
 0x118   :  { %4261 = vst [vmem:[#allocation33_spill] sm:$0xff] %v3571_v50  ;;  %4262 = vst [vmem:[#allocation34_spill] sm:$0xff] %v3574_v1  ;;  %v3577_v6 = vadd.f32 %v640_v3, %v3518_v61  ;;  %v3580_v2 = vadd.f32 %v703_v7, %v3520_v62  ;;  %v495_v3 = vadd.f32 %v3438_v53, %v3448_v59 }
 0x119   :  { %v3582_v57 = vpop.f32.mrf.mxu1  ;;  %v3584_v46 = vpop.f32.mrf.mxu0  ;;  %v556_v53 = vadd.f32 %v3436_v52, %v3440_v54 }
 0x11a   :  { %4263 = vst [vmem:[#allocation35_spill] sm:$0xff] %v3577_v6  ;;  %4264 = vst [vmem:[#allocation36_spill] sm:$0xff] %v3580_v2 }
 0x11b   :  { %4265 = vst [vmem:[#allocation37_spill] sm:$0xff] %v3582_v57  ;;  %v3586_v45 = vpop.f32.mrf.mxu1  ;;  %v3588_v10 = vpop.f32.mrf.mxu0 }
 0x11c   :  { %4266 = vst [vmem:[#allocation38_spill] sm:$0xff] %v3586_v45  ;;  %4267 = vst [vmem:[#allocation39_spill] sm:$0xff] %v3588_v10 }
 0x125   :  { %v968_v48 = vpop.f32.mrf.mxu0  ;;  %v1009_v6 = vpop.f32.mrf.mxu1 }
 0x126   :  { %v1016_v1 = vadd.f32 %v968_v48, %v493_v47  ;;  %v1018_v48 = vadd.f32 %v1009_v6, %v556_v53 }
 0x127   :  { %v970_v50 = vpop.f32.mrf.mxu0  ;;  %v1011_v11 = vpop.f32.mrf.mxu1 }
 0x128   :  { %v2550_v7 = vmul.f32 -1.442695, %v1016_v1  ;;  %v1017_v2 = vadd.f32 %v970_v50, %v495_v3  ;;  %v1019_v55 = vadd.f32 %v1011_v11, %v558_v49 }
 0x129   :  { %v972_v57 = vpop.f32.mrf.mxu0  ;;  %v1013_v61 = vpop.f32.mrf.mxu1 }
 0x12a   :  { %2725 = vpow2.f32 %v2550_v7  ;;  %v2551_v62 = vmul.f32 -1.442695, %v1017_v2  ;;  %v2552_v59 = vmul.f32 -1.442695, %v1019_v55  ;;  %v4268_v7 = vmov 0  }
 0x12b   :  { %v973_v45 = vpop.f32.mrf.mxu0  ;;  %v1014_v10 = vpop.f32.mrf.mxu1 }
 0x12c   :  { %2727 = vpow2.f32 %v2551_v62 }
 0x12d   :  { %2729 = vpow2.f32 %v2552_v59 }
 0x137   :  { %v2726_v47 = vpop.eup %2725 }
 0x138   :  { %v1023_v1 = vadd.f32 1.0, %v2726_v47 }
 0x139   :  { %v2728_v50 = vpop.eup %2727 }
 0x13a   :  { %2731 = vrcp.f32 %v1023_v1  ;;  %v1029_v57 = vadd.f32 1.0, %v2728_v50  ;;  %v2730_v61 = vpop.eup %2729 }
 0x13b   :  { %2733 = vtanh.f32 %v1018_v48  ;;  %v1036_v10 = vadd.f32 1.0, %v2730_v61 }
 0x13c   :  { %2735 = vrcp.f32 %v1029_v57 }
 0x13d   :  { %2737 = vrcp.f32 %v1036_v10 }
 0x147   :  { %v2732_v62 = vpop.eup %2731 }
 0x148   :  { %v2734_v2 = vpop.eup %2733 }
 0x149   :  { %v2736_v45 = vpop.eup %2735  ;;  %v1040_v58 = vmul.f32 %v2734_v2, %v2732_v62 }
 0x14a   :  { %v1039_v56 = vmul.f32 0.0, %v2736_v45  ;;  %v2738_v52 = vpop.eup %2737 }
 0x14c   :  { %v3598_v11 = vadd.f32 %v1040_v58, %v1039_v56 }
 0x14e   :  { %2739 = vtanh.f32 %v3598_v11 }
 0x15b   :  { %v2740_v54 = vpop.eup %2739 }
 0x15c   :  { %v1043_v6 = vmul.f32 %v2740_v54, %v2738_v52 }
 0x15e   :  { %1044 = vst [vmem:[%s4222_s5] sm:$0xff] %v1043_v6  ;;  %v1045_v3 = vpack.c.bf16 %v1043_v6, %v1043_v6 }
 0x160   :  { %1079 = vmatmul.mubr.bf16.vlgmr.msra.gmra.mxu0 %v1045_v3  ;;  %1120 = vmatmul.mubr.bf16.vlgmr.msra.gmra.mxu1 %v1045_v3 }
 0x161   :  { %1160 = vmatpush1.bf16.msra.mxu0 %v3196_v15  ;;  %1201 = vmatpush1.bf16.msra.mxu1 %v3202_v16 }
 0x162   :  { %1161 = vmatprep.subr.bf16.mxu0 %v3207_v17  ;;  %1202 = vmatprep.subr.bf16.mxu1 %v3213_v18 }
 0x163   :  { %1191 = vmatprep.mubr.bf16.mxu0 %v4268_v7  ;;  %1232 = vmatprep.mubr.bf16.mxu1 %v4268_v7 }
 0x165   :  { %1162 = vmatpush1.bf16.msra.mxu0 %v3221_v19  ;;  %1203 = vmatpush1.bf16.msra.mxu1 %v3228_v20 }
 0x166   :  { %1163 = vmatprep.subr.bf16.mxu0 %v3233_v13  ;;  %1204 = vmatprep.subr.bf16.mxu1 %v3239_v21 }
 0x169   :  { %1164 = vmatpush1.bf16.msra.mxu0 %v3247_v22  ;;  %1205 = vmatpush1.bf16.msra.mxu1 %v3254_v23 }
 0x16a   :  { %1165 = vmatprep.subr.bf16.mxu0 %v3259_v24  ;;  %1206 = vmatprep.subr.bf16.mxu1 %v3265_v25 }
 0x16d   :  { %1166 = vmatpush1.bf16.msra.mxu0 %v3272_v26  ;;  %1207 = vmatpush1.bf16.msra.mxu1 %v3280_v27 }
 0x16e   :  { %1167 = vmatprep.subr.bf16.mxu0 %v3285_v28  ;;  %1208 = vmatprep.subr.bf16.mxu1 %v3291_v29 }
 0x171   :  { %1168 = vmatpush1.bf16.msra.mxu0 %v3299_v30  ;;  %1209 = vmatpush1.bf16.msra.mxu1 %v3306_v31 }
 0x172   :  { %1169 = vmatprep.subr.bf16.mxu0 %v3311_v32  ;;  %1210 = vmatprep.subr.bf16.mxu1 %v3317_v33 }
 0x175   :  { %1170 = vmatpush1.bf16.msra.mxu0 %v3324_v34  ;;  %1211 = vmatpush1.bf16.msra.mxu1 %v3332_v35 }
 0x176   :  { %1171 = vmatprep.subr.bf16.mxu0 %v3337_v36  ;;  %1212 = vmatprep.subr.bf16.mxu1 %v3343_v37 }
 0x179   :  { %1172 = vmatpush1.bf16.msra.mxu0 %v3351_v38  ;;  %1213 = vmatpush1.bf16.msra.mxu1 %v3358_v39 }
 0x17a   :  { %1173 = vmatprep.subr.bf16.mxu0 %v3363_v40  ;;  %1214 = vmatprep.subr.bf16.mxu1 %v3369_v41 }
 0x17d   :  { %1174 = vmatpush1.bf16.msra.mxu0 %v3375_v42  ;;  %1215 = vmatpush1.bf16.msra.mxu1 %v3382_v43 }
 0x17e   :  { %1272 = vmatprep.subr.bf16.mxu0 %v3186_v12  ;;  %1313 = vmatprep.subr.bf16.mxu1 %v3191_v14 }
 0x220   :  { %v1080_v49 = vpop.f32.mrf.mxu0  ;;  %v1121_v55 = vpop.f32.mrf.mxu1 }
 0x221   :  { %v1128_v53 = vadd.f32 %v1080_v49, %v3451_v60  ;;  %v1130_v10 = vadd.f32 %v1121_v55, %v3454_v63 }
 0x222   :  { %v1082_v59 = vpop.f32.mrf.mxu0  ;;  %v1123_v47 = vpop.f32.mrf.mxu1 }
 0x223   :  { %v2553_v48 = vmul.f32 -1.442695, %v1128_v53  ;;  %v1129_v1 = vadd.f32 %v1082_v59, %v3457_v0  ;;  %v1131_v45 = vadd.f32 %v1123_v47, %v3460_v4 }
 0x224   :  { %v1084_v50 = vpop.f32.mrf.mxu0  ;;  %v1125_v57 = vpop.f32.mrf.mxu1 }
 0x225   :  { %2741 = vpow2.f32 %v2553_v48  ;;  %v2554_v61 = vmul.f32 -1.442695, %v1129_v1  ;;  %v2555_v56 = vmul.f32 -1.442695, %v1131_v45 }
 0x226   :  { %v1085_v62 = vpop.f32.mrf.mxu0  ;;  %v1126_v2 = vpop.f32.mrf.mxu1 }
 0x227   :  { %2743 = vpow2.f32 %v2554_v61 }
 0x228   :  { %2745 = vtanh.f32 %v1130_v10 }
 0x229   :  { %2747 = vpow2.f32 %v2555_v56 }
 0x232   :  { %v2742_v58 = vpop.eup %2741 }
 0x233   :  { %v1135_v52 = vadd.f32 1.0, %v2742_v58 }
 0x234   :  { %v2744_v60 = vpop.eup %2743 }
 0x235   :  { %2749 = vrcp.f32 %v1135_v52  ;;  %v1141_v54 = vadd.f32 1.0, %v2744_v60  ;;  %v2746_v0 = vpop.eup %2745 }
 0x236   :  { %v2748_v6 = vpop.eup %2747 }
 0x237   :  { %2751 = vrcp.f32 %v1141_v54  ;;  %v1148_v59 = vadd.f32 1.0, %v2748_v6 }
 0x239   :  { %2753 = vrcp.f32 %v1148_v59 }
 0x242   :  { %v2750_v3 = vpop.eup %2749 }
 0x243   :  { %v1152_v49 = vmul.f32 %v2750_v3, %v2746_v0 }
 0x244   :  { %v2752_v53 = vpop.eup %2751 }
 0x245   :  { %v1151_v48 = vmul.f32 %v2752_v53, %v3598_v11 }
 0x246   :  { %v2754_v63 = vpop.eup %2753 }
 0x247   :  { %v3643_v4 = vadd.f32 %v1152_v49, %v1151_v48 }
 0x249   :  { %2755 = vtanh.f32 %v3643_v4 }
 0x256   :  { %v2756_v55 = vpop.eup %2755 }
 0x257   :  { %v1155_v47 = vmul.f32 %v2756_v55, %v2754_v63 }
 0x259   :  { %2556 = vst [vmem:[%s4222_s5 + $0x8] sm:$0xff] %v1155_v47  ;;  %v1158_v1 = vpack.c.bf16 %v1155_v47, %v1155_v47 }
 0x25b   :  { %1192 = vmatmul.mubr.bf16.vlgmr.msra.gmra.mxu0 %v1158_v1  ;;  %1233 = vmatmul.mubr.bf16.vlgmr.msra.gmra.mxu1 %v1158_v1 }
 0x25c   :  { %1273 = vmatpush1.bf16.msra.mxu0 %v3196_v15  ;;  %1314 = vmatpush1.bf16.msra.mxu1 %v3202_v16 }
 0x25d   :  { %1274 = vmatprep.subr.bf16.mxu0 %v3207_v17  ;;  %1315 = vmatprep.subr.bf16.mxu1 %v3213_v18 }
 0x25e   :  { %1304 = vmatprep.mubr.bf16.mxu0 %v4268_v7  ;;  %1345 = vmatprep.mubr.bf16.mxu1 %v4268_v7 }
 0x260   :  { %1275 = vmatpush1.bf16.msra.mxu0 %v3221_v19  ;;  %1316 = vmatpush1.bf16.msra.mxu1 %v3228_v20 }
 0x261   :  { %1276 = vmatprep.subr.bf16.mxu0 %v3233_v13  ;;  %1317 = vmatprep.subr.bf16.mxu1 %v3239_v21 }
 0x264   :  { %1277 = vmatpush1.bf16.msra.mxu0 %v3247_v22  ;;  %1318 = vmatpush1.bf16.msra.mxu1 %v3254_v23 }
 0x265   :  { %1278 = vmatprep.subr.bf16.mxu0 %v3259_v24  ;;  %1319 = vmatprep.subr.bf16.mxu1 %v3265_v25 }
 0x268   :  { %1279 = vmatpush1.bf16.msra.mxu0 %v3272_v26  ;;  %1320 = vmatpush1.bf16.msra.mxu1 %v3280_v27 }
 0x269   :  { %1280 = vmatprep.subr.bf16.mxu0 %v3285_v28  ;;  %1321 = vmatprep.subr.bf16.mxu1 %v3291_v29 }
 0x26c   :  { %1281 = vmatpush1.bf16.msra.mxu0 %v3299_v30  ;;  %1322 = vmatpush1.bf16.msra.mxu1 %v3306_v31 }
 0x26d   :  { %1282 = vmatprep.subr.bf16.mxu0 %v3311_v32  ;;  %1323 = vmatprep.subr.bf16.mxu1 %v3317_v33 }
 0x270   :  { %1283 = vmatpush1.bf16.msra.mxu0 %v3324_v34  ;;  %1324 = vmatpush1.bf16.msra.mxu1 %v3332_v35 }
 0x271   :  { %1284 = vmatprep.subr.bf16.mxu0 %v3337_v36  ;;  %1325 = vmatprep.subr.bf16.mxu1 %v3343_v37 }
 0x274   :  { %1285 = vmatpush1.bf16.msra.mxu0 %v3351_v38  ;;  %1326 = vmatpush1.bf16.msra.mxu1 %v3358_v39 }
 0x275   :  { %1286 = vmatprep.subr.bf16.mxu0 %v3363_v40  ;;  %1327 = vmatprep.subr.bf16.mxu1 %v3369_v41 }
 0x278   :  { %1287 = vmatpush1.bf16.msra.mxu0 %v3375_v42  ;;  %1328 = vmatpush1.bf16.msra.mxu1 %v3382_v43 }
 0x279   :  { %1385 = vmatprep.subr.bf16.mxu0 %v3186_v12  ;;  %1426 = vmatprep.subr.bf16.mxu1 %v3191_v14 }
 0x31b   :  { %v1193_v11 = vpop.f32.mrf.mxu0  ;;  %v1234_v50 = vpop.f32.mrf.mxu1 }
 0x31c   :  { %v1241_v57 = vadd.f32 %v1193_v11, %v3463_v5  ;;  %v1243_v0 = vadd.f32 %v1234_v50, %v3466_v8 }
 0x31d   :  { %v1195_v61 = vpop.f32.mrf.mxu0  ;;  %v1236_v62 = vpop.f32.mrf.mxu1 }
 0x31e   :  { %v2557_v2 = vmul.f32 -1.442695, %v1241_v57  ;;  %v1242_v45 = vadd.f32 %v1195_v61, %v3469_v9  ;;  %v1244_v54 = vadd.f32 %v1236_v62, %v3472_v44  ;;  %v4269_v62 = vld [vmem:[#allocation2_spill] sm:$0xff] }
 0x31f   :  { %v1197_v10 = vpop.f32.mrf.mxu0  ;;  %v1238_v56 = vpop.f32.mrf.mxu1 }
 0x320   :  { %2757 = vpow2.f32 %v2557_v2  ;;  %v2558_v58 = vmul.f32 -1.442695, %v1242_v45  ;;  %v2559_v6 = vmul.f32 -1.442695, %v1244_v54 }
 0x321   :  { %v1198_v52 = vpop.f32.mrf.mxu0  ;;  %v1239_v60 = vpop.f32.mrf.mxu1 }
 0x322   :  { %2759 = vpow2.f32 %v2558_v58  ;;  %v4270_v58 = vld [vmem:[#allocation4_spill] sm:$0xff] }
 0x323   :  { %2761 = vtanh.f32 %v1243_v0 }
 0x324   :  { %2763 = vpow2.f32 %v2559_v6 }
 0x32d   :  { %v2758_v3 = vpop.eup %2757 }
 0x32e   :  { %v1248_v49 = vadd.f32 1.0, %v2758_v3 }
 0x32f   :  { %v2760_v5 = vpop.eup %2759 }
 0x330   :  { %2765 = vrcp.f32 %v1248_v49  ;;  %v1254_v53 = vadd.f32 1.0, %v2760_v5  ;;  %v2762_v9 = vpop.eup %2761  ;;  %v4271_v49 = vld [vmem:[#allocation5_spill] sm:$0xff]  ;;  %v4272_v5 = vld [vmem:[#allocation3_spill] sm:$0xff] }
 0x331   :  { %v2764_v59 = vpop.eup %2763 }
 0x332   :  { %2767 = vrcp.f32 %v1254_v53  ;;  %v1261_v47 = vadd.f32 1.0, %v2764_v59 }
 0x334   :  { %2769 = vrcp.f32 %v1261_v47 }
 0x33d   :  { %v2766_v48 = vpop.eup %2765 }
 0x33e   :  { %v1265_v63 = vmul.f32 %v2766_v48, %v2762_v9 }
 0x33f   :  { %v2768_v55 = vpop.eup %2767 }
 0x340   :  { %v1264_v1 = vmul.f32 %v2768_v55, %v3643_v4 }
 0x341   :  { %v2770_v8 = vpop.eup %2769 }
 0x342   :  { %v3688_v44 = vadd.f32 %v1265_v63, %v1264_v1 }
 0x344   :  { %2771 = vtanh.f32 %v3688_v44 }
 0x351   :  { %v2772_v11 = vpop.eup %2771 }
 0x352   :  { %v1268_v50 = vmul.f32 %v2772_v11, %v2770_v8 }
 0x354   :  { %2560 = vst [vmem:[%s4222_s5 + $0x10] sm:$0xff] %v1268_v50  ;;  %v1271_v57 = vpack.c.bf16 %v1268_v50, %v1268_v50 }
 0x356   :  { %1305 = vmatmul.mubr.bf16.vlgmr.msra.gmra.mxu0 %v1271_v57  ;;  %1346 = vmatmul.mubr.bf16.vlgmr.msra.gmra.mxu1 %v1271_v57 }
 0x357   :  { %1386 = vmatpush1.bf16.msra.mxu0 %v3196_v15  ;;  %1427 = vmatpush1.bf16.msra.mxu1 %v3202_v16 }
 0x358   :  { %1387 = vmatprep.subr.bf16.mxu0 %v3207_v17  ;;  %1428 = vmatprep.subr.bf16.mxu1 %v3213_v18 }
 0x359   :  { %1417 = vmatprep.mubr.bf16.mxu0 %v4268_v7  ;;  %1458 = vmatprep.mubr.bf16.mxu1 %v4268_v7 }
 0x35b   :  { %1388 = vmatpush1.bf16.msra.mxu0 %v3221_v19  ;;  %1429 = vmatpush1.bf16.msra.mxu1 %v3228_v20 }
 0x35c   :  { %1389 = vmatprep.subr.bf16.mxu0 %v3233_v13  ;;  %1430 = vmatprep.subr.bf16.mxu1 %v3239_v21 }
 0x35f   :  { %1390 = vmatpush1.bf16.msra.mxu0 %v3247_v22  ;;  %1431 = vmatpush1.bf16.msra.mxu1 %v3254_v23 }
 0x360   :  { %1391 = vmatprep.subr.bf16.mxu0 %v3259_v24  ;;  %1432 = vmatprep.subr.bf16.mxu1 %v3265_v25 }
 0x363   :  { %1392 = vmatpush1.bf16.msra.mxu0 %v3272_v26  ;;  %1433 = vmatpush1.bf16.msra.mxu1 %v3280_v27 }
 0x364   :  { %1393 = vmatprep.subr.bf16.mxu0 %v3285_v28  ;;  %1434 = vmatprep.subr.bf16.mxu1 %v3291_v29 }
 0x367   :  { %1394 = vmatpush1.bf16.msra.mxu0 %v3299_v30  ;;  %1435 = vmatpush1.bf16.msra.mxu1 %v3306_v31 }
 0x368   :  { %1395 = vmatprep.subr.bf16.mxu0 %v3311_v32  ;;  %1436 = vmatprep.subr.bf16.mxu1 %v3317_v33 }
 0x36b   :  { %1396 = vmatpush1.bf16.msra.mxu0 %v3324_v34  ;;  %1437 = vmatpush1.bf16.msra.mxu1 %v3332_v35 }
 0x36c   :  { %1397 = vmatprep.subr.bf16.mxu0 %v3337_v36  ;;  %1438 = vmatprep.subr.bf16.mxu1 %v3343_v37 }
 0x36f   :  { %1398 = vmatpush1.bf16.msra.mxu0 %v3351_v38  ;;  %1439 = vmatpush1.bf16.msra.mxu1 %v3358_v39 }
 0x370   :  { %1399 = vmatprep.subr.bf16.mxu0 %v3363_v40  ;;  %1440 = vmatprep.subr.bf16.mxu1 %v3369_v41 }
 0x373   :  { %1400 = vmatpush1.bf16.msra.mxu0 %v3375_v42  ;;  %1441 = vmatpush1.bf16.msra.mxu1 %v3382_v43 }
 0x374   :  { %1498 = vmatprep.subr.bf16.mxu0 %v3186_v12  ;;  %1539 = vmatprep.subr.bf16.mxu1 %v3191_v14 }
 0x416   :  { %v1306_v4 = vpop.f32.mrf.mxu0  ;;  %v1347_v61 = vpop.f32.mrf.mxu1 }
 0x417   :  { %v1354_v2 = vadd.f32 %v1306_v4, %v4269_v62  ;;  %v1356_v14 = vadd.f32 %v1347_v61, %v4272_v5  ;;  %v3824_v5 = vld [vmem:[%s4223_s4 + $0xc8] ss:$16 sps:$4 sm:$0xff]  }
 0x418   :  { %v1308_v45 = vpop.f32.mrf.mxu0  ;;  %v1349_v10 = vpop.f32.mrf.mxu1 }
 0x419   :  { %v2561_v56 = vmul.f32 -1.442695, %v1354_v2  ;;  %v1355_v52 = vadd.f32 %v1308_v45, %v4270_v58  ;;  %v1357_v12 = vadd.f32 %v1349_v10, %v4271_v49  ;;  %v3812_v49 = vld [vmem:[%s4223_s4 + $0xcc] ss:$16 sps:$4 sm:$0xff]  }
 0x41a   :  { %v1310_v60 = vpop.f32.mrf.mxu0  ;;  %v1351_v54 = vpop.f32.mrf.mxu1 }
 0x41b   :  { %2773 = vpow2.f32 %v2561_v56  ;;  %v2562_v0 = vmul.f32 -1.442695, %v1355_v52  ;;  %v2563_v53 = vmul.f32 -1.442695, %v1357_v12  ;;  %v3794_v54 = vld [vmem:[%s4223_s4 + $0xe0] ss:$16 sps:$4 sm:$0xff]  }
 0x41c   :  { %v1311_v6 = vpop.f32.mrf.mxu0  ;;  %v1352_v3 = vpop.f32.mrf.mxu1  ;;  %v3819_v12 = vld [vmem:[%s4223_s4 + $0xc0] ss:$16 sps:$4 sm:$0xff]  }
 0x41d   :  { %2775 = vpow2.f32 %v2562_v0  ;;  %v3799_v0 = vld [vmem:[%s4223_s4 + $0xe8] ss:$16 sps:$4 sm:$0xff]   ;;  %v3807_v3 = vld [vmem:[%s4223_s4 + $0xc4] ss:$16 sps:$4 sm:$0xff]  }
 0x41e   :  { %2777 = vtanh.f32 %v1356_v14  ;;  %v3831_v14 = vld [vmem:[%s4223_s4 + $0xa4] ss:$16 sps:$4 sm:$0xff]  }
 0x41f   :  { %2779 = vpow2.f32 %v2563_v53  ;;  %v3836_v53 = vld [vmem:[%s4223_s4 + $0xac] ss:$16 sps:$4 sm:$0xff]  }
 0x428   :  { %v2774_v9 = vpop.eup %2773 }
 0x429   :  { %v1361_v59 = vadd.f32 1.0, %v2774_v9  ;;  %v3845_v9 = vld [vmem:[%s4223_s4 + $0xa0] ss:$16 sps:$4 sm:$0xff]  }
 0x42a   :  { %v2776_v48 = vpop.eup %2775 }
 0x42b   :  { %2781 = vrcp.f32 %v1361_v59  ;;  %v1367_v63 = vadd.f32 1.0, %v2776_v48  ;;  %v2778_v55 = vpop.eup %2777  ;;  %v3850_v59 = vld [vmem:[%s4223_s4 + $0xa8] ss:$16 sps:$4 sm:$0xff]   ;;  %v3857_v48 = vld [vmem:[%s4223_s4 + $0x84] ss:$16 sps:$4 sm:$0xff]  }
 0x42c   :  { %v2780_v47 = vpop.eup %2779 }
 0x42d   :  { %2783 = vrcp.f32 %v1367_v63  ;;  %v1374_v50 = vadd.f32 1.0, %v2780_v47  ;;  %v3862_v63 = vld [vmem:[%s4223_s4 + $0x8c] ss:$16 sps:$4 sm:$0xff]   ;;  %v3874_v47 = vld [vmem:[%s4223_s4 + $0x88] ss:$16 sps:$4 sm:$0xff]  }
 0x42f   :  { %2785 = vrcp.f32 %v1374_v50  ;;  %v3898_v50 = vld [vmem:[%s4223_s4 + $0x68] ss:$16 sps:$4 sm:$0xff]  }
 0x438   :  { %v2782_v1 = vpop.eup %2781 }
 0x439   :  { %v1378_v8 = vmul.f32 %v2782_v1, %v2778_v55  ;;  %v3869_v55 = vld [vmem:[%s4223_s4 + $0x80] ss:$16 sps:$4 sm:$0xff]   ;;  %v3881_v1 = vld [vmem:[%s4223_s4 + $0x64] ss:$16 sps:$4 sm:$0xff]  }
 0x43a   :  { %v2784_v11 = vpop.eup %2783 }
 0x43b   :  { %v1377_v57 = vmul.f32 %v2784_v11, %v3688_v44  ;;  %v3893_v11 = vld [vmem:[%s4223_s4 + $0x60] ss:$16 sps:$4 sm:$0xff]  }
 0x43c   :  { %v2786_v61 = vpop.eup %2785 }
 0x43d   :  { %v3733_v4 = vadd.f32 %v1378_v8, %v1377_v57  ;;  %v3886_v8 = vld [vmem:[%s4223_s4 + $0x6c] ss:$16 sps:$4 sm:$0xff]   ;;  %v3905_v57 = vld [vmem:[%s4223_s4 + $0x44] ss:$16 sps:$4 sm:$0xff]  }
 0x43f   :  { %2787 = vtanh.f32 %v3733_v4 }
 0x44c   :  { %v2788_v62 = vpop.eup %2787 }
 0x44d   :  { %v1381_v2 = vmul.f32 %v2788_v62, %v2786_v61  ;;  %v3917_v61 = vld [vmem:[%s4223_s4 + $0x40] ss:$16 sps:$4 sm:$0xff]   ;;  %v3922_v62 = vld [vmem:[%s4223_s4 + $0x48] ss:$16 sps:$4 sm:$0xff]  }
 0x44f   :  { %2564 = vst [vmem:[%s4222_s5 + $0x18] sm:$0xff] %v1381_v2  ;;  %v1384_v45 = vpack.c.bf16 %v1381_v2, %v1381_v2  ;;  %v3929_v2 = vld [vmem:[%s4223_s4 + $0x24] ss:$16 sps:$4 sm:$0xff]  }
 0x451   :  { %1418 = vmatmul.mubr.bf16.vlgmr.msra.gmra.mxu0 %v1384_v45  ;;  %1459 = vmatmul.mubr.bf16.vlgmr.msra.gmra.mxu1 %v1384_v45  ;;  %v3934_v45 = vld [vmem:[%s4223_s4 + $0x2c] ss:$16 sps:$4 sm:$0xff]  }
 0x452   :  { %1499 = vmatpush1.bf16.msra.mxu0 %v3196_v15  ;;  %1540 = vmatpush1.bf16.msra.mxu1 %v3202_v16  ;;  %v3774_v15 = vld [vmem:[%s4223_s4 + $0xe4] ss:$16 sps:$4 sm:$0xff]   ;;  %v3779_v16 = vld [vmem:[%s4223_s4 + $0xec] ss:$16 sps:$4 sm:$0xff]  }
 0x453   :  { %1500 = vmatprep.subr.bf16.mxu0 %v3207_v17  ;;  %1541 = vmatprep.subr.bf16.mxu1 %v3213_v18 }
 0x454   :  { %1530 = vmatprep.mubr.bf16.mxu0 %v4268_v7  ;;  %1571 = vmatprep.mubr.bf16.mxu1 %v4268_v7 }
 0x456   :  { %1501 = vmatpush1.bf16.msra.mxu0 %v3221_v19  ;;  %1542 = vmatpush1.bf16.msra.mxu1 %v3228_v20  ;;  %v4273_v19 = vld [vmem:[#allocation6_spill] sm:$0xff] }
 0x457   :  { %1502 = vmatprep.subr.bf16.mxu0 %v3233_v13  ;;  %1543 = vmatprep.subr.bf16.mxu1 %v3239_v21 }
 0x45a   :  { %1503 = vmatpush1.bf16.msra.mxu0 %v3247_v22  ;;  %1544 = vmatpush1.bf16.msra.mxu1 %v3254_v23  ;;  %v4274_v23 = vld [vmem:[#allocation8_spill] sm:$0xff] }
 0x45b   :  { %1504 = vmatprep.subr.bf16.mxu0 %v3259_v24  ;;  %1545 = vmatprep.subr.bf16.mxu1 %v3265_v25 }
 0x45e   :  { %1505 = vmatpush1.bf16.msra.mxu0 %v3272_v26  ;;  %1546 = vmatpush1.bf16.msra.mxu1 %v3280_v27 }
 0x45f   :  { %1506 = vmatprep.subr.bf16.mxu0 %v3285_v28  ;;  %1547 = vmatprep.subr.bf16.mxu1 %v3291_v29 }
 0x462   :  { %1507 = vmatpush1.bf16.msra.mxu0 %v3299_v30  ;;  %1548 = vmatpush1.bf16.msra.mxu1 %v3306_v31  ;;  %v4275_v30 = vld [vmem:[#allocation9_spill] sm:$0xff] }
 0x463   :  { %1508 = vmatprep.subr.bf16.mxu0 %v3311_v32  ;;  %1549 = vmatprep.subr.bf16.mxu1 %v3317_v33  ;;  %v4276_v32 = vld [vmem:[#allocation7_spill] sm:$0xff] }
 0x466   :  { %1509 = vmatpush1.bf16.msra.mxu0 %v3324_v34  ;;  %1550 = vmatpush1.bf16.msra.mxu1 %v3332_v35 }
 0x467   :  { %1510 = vmatprep.subr.bf16.mxu0 %v3337_v36  ;;  %1551 = vmatprep.subr.bf16.mxu1 %v3343_v37 }
 0x46a   :  { %1511 = vmatpush1.bf16.msra.mxu0 %v3351_v38  ;;  %1552 = vmatpush1.bf16.msra.mxu1 %v3358_v39 }
 0x46b   :  { %1512 = vmatprep.subr.bf16.mxu0 %v3363_v40  ;;  %1553 = vmatprep.subr.bf16.mxu1 %v3369_v41 }
 0x46e   :  { %1513 = vmatpush1.bf16.msra.mxu0 %v3375_v42  ;;  %1554 = vmatpush1.bf16.msra.mxu1 %v3382_v43 }
 0x46f   :  { %1770 = vmatprep.subr.bf16.mxu0 %v3774_v15  ;;  %1811 = vmatprep.subr.bf16.mxu1 %v3779_v16 }
 0x511   :  { %v1419_v17 = vpop.f32.mrf.mxu0  ;;  %v1460_v18 = vpop.f32.mrf.mxu1 }
 0x512   :  { %v1467_v20 = vadd.f32 %v1419_v17, %v4273_v19  ;;  %v1469_v33 = vadd.f32 %v1460_v18, %v4276_v32  ;;  %v3941_v17 = vld [vmem:[%s4223_s4 + $0x20] ss:$16 sps:$4 sm:$0xff]   ;;  %v3946_v18 = vld [vmem:[%s4223_s4 + $0x28] ss:$16 sps:$4 sm:$0xff]   ;;  %v3953_v19 = vld [vmem:[%s4223_s4 + $0x4] ss:$16 sps:$4 sm:$0xff]  }
 0x513   :  { %v1421_v13 = vpop.f32.mrf.mxu0  ;;  %v1462_v21 = vpop.f32.mrf.mxu1 }
 0x514   :  { %v2565_v22 = vmul.f32 -1.442695, %v1467_v20  ;;  %v1468_v24 = vadd.f32 %v1421_v13, %v4274_v23  ;;  %v1470_v31 = vadd.f32 %v1462_v21, %v4275_v30  ;;  %v3958_v20 = vld [vmem:[%s4223_s4 + $0xc] ss:$16 sps:$4 sm:$0xff]   ;;  %v3965_v13 = vld [vmem:[%s4223_s4] ss:$16 sps:$4 sm:$0xff]  }
 0x515   :  { %v1423_v25 = vpop.f32.mrf.mxu0  ;;  %v1464_v26 = vpop.f32.mrf.mxu1  ;;  %v3970_v21 = vld [vmem:[%s4223_s4 + $0x8] ss:$16 sps:$4 sm:$0xff]  }
 0x516   :  { %2789 = vpow2.f32 %v2565_v22  ;;  %v2566_v27 = vmul.f32 -1.442695, %v1468_v24  ;;  %v2567_v34 = vmul.f32 -1.442695, %v1470_v31  ;;  %v4277_v24 = vld [vmem:[#allocation10_spill] sm:$0xff] }
 0x517   :  { %v1424_v28 = vpop.f32.mrf.mxu0  ;;  %v1465_v29 = vpop.f32.mrf.mxu1 }
 0x518   :  { %2791 = vpow2.f32 %v2566_v27  ;;  %v4278_v29 = vld [vmem:[#allocation12_spill] sm:$0xff] }
 0x519   :  { %2793 = vtanh.f32 %v1469_v33 }
 0x51a   :  { %2795 = vpow2.f32 %v2567_v34 }
 0x523   :  { %v2790_v35 = vpop.eup %2789 }
 0x524   :  { %v1474_v36 = vadd.f32 1.0, %v2790_v35 }
 0x525   :  { %v2792_v37 = vpop.eup %2791 }
 0x526   :  { %2797 = vrcp.f32 %v1474_v36  ;;  %v1480_v38 = vadd.f32 1.0, %v2792_v37  ;;  %v2794_v39 = vpop.eup %2793  ;;  %v4279_v36 = vld [vmem:[#allocation13_spill] sm:$0xff] }
 0x527   :  { %v2796_v40 = vpop.eup %2795 }
 0x528   :  { %2799 = vrcp.f32 %v1480_v38  ;;  %v1487_v44 = vadd.f32 1.0, %v2796_v40  ;;  %v4280_v38 = vld [vmem:[#allocation11_spill] sm:$0xff] }
 0x52a   :  { %2801 = vrcp.f32 %v1487_v44 }
 0x533   :  { %v2798_v41 = vpop.eup %2797 }
 0x534   :  { %v1491_v42 = vmul.f32 %v2798_v41, %v2794_v39 }
 0x535   :  { %v2800_v43 = vpop.eup %2799 }
 0x536   :  { %v1490_v10 = vmul.f32 %v2800_v43, %v3733_v4  ;;  %v3910_v4 = vld [vmem:[%s4223_s4 + $0x4c] ss:$16 sps:$4 sm:$0xff]  }
 0x537   :  { %v2802_v58 = vpop.eup %2801 }
 0x538   :  { %v3788_v56 = vadd.f32 %v1491_v42, %v1490_v10  ;;  %v643_v10 = vadd.f32 %v3584_v46, %v3514_v51 }
 0x53a   :  { %2803 = vtanh.f32 %v3788_v56 }
 0x547   :  { %v2804_v52 = vpop.eup %2803 }
 0x548   :  { %v1494_v60 = vmul.f32 %v2804_v52, %v2802_v58 }
 0x54a   :  { %2568 = vst [vmem:[%s4222_s5 + $0x20] sm:$0xff] %v1494_v60  ;;  %v1497_v6 = vpack.c.bf16 %v1494_v60, %v1494_v60 }
 0x54c   :  { %1531 = vmatmul.mubr.bf16.vlgmr.msra.gmra.mxu0 %v1497_v6  ;;  %1572 = vmatmul.mubr.bf16.vlgmr.msra.gmra.mxu1 %v1497_v6 }
 0x54d   :  { %1771 = vmatpush1.bf16.msra.mxu0 %v3794_v54  ;;  %1812 = vmatpush1.bf16.msra.mxu1 %v3799_v0 }
 0x54e   :  { %1772 = vmatprep.subr.bf16.mxu0 %v3807_v3  ;;  %1813 = vmatprep.subr.bf16.mxu1 %v3812_v49 }
 0x54f   :  { %1802 = vmatprep.mubr.bf16.mxu0 %v4268_v7  ;;  %1843 = vmatprep.mubr.bf16.mxu1 %v4268_v7 }
 0x551   :  { %1773 = vmatpush1.bf16.msra.mxu0 %v3819_v12  ;;  %1814 = vmatpush1.bf16.msra.mxu1 %v3824_v5 }
 0x552   :  { %1774 = vmatprep.subr.bf16.mxu0 %v3831_v14  ;;  %1815 = vmatprep.subr.bf16.mxu1 %v3836_v53 }
 0x555   :  { %1775 = vmatpush1.bf16.msra.mxu0 %v3845_v9  ;;  %1816 = vmatpush1.bf16.msra.mxu1 %v3850_v59 }
 0x556   :  { %1776 = vmatprep.subr.bf16.mxu0 %v3857_v48  ;;  %1817 = vmatprep.subr.bf16.mxu1 %v3862_v63 }
 0x559   :  { %1777 = vmatpush1.bf16.msra.mxu0 %v3869_v55  ;;  %1818 = vmatpush1.bf16.msra.mxu1 %v3874_v47 }
 0x55a   :  { %1778 = vmatprep.subr.bf16.mxu0 %v3881_v1  ;;  %1819 = vmatprep.subr.bf16.mxu1 %v3886_v8 }
 0x55d   :  { %1779 = vmatpush1.bf16.msra.mxu0 %v3893_v11  ;;  %1820 = vmatpush1.bf16.msra.mxu1 %v3898_v50 }
 0x55e   :  { %1780 = vmatprep.subr.bf16.mxu0 %v3905_v57  ;;  %1821 = vmatprep.subr.bf16.mxu1 %v3910_v4 }
 0x561   :  { %1781 = vmatpush1.bf16.msra.mxu0 %v3917_v61  ;;  %1822 = vmatpush1.bf16.msra.mxu1 %v3922_v62 }
 0x562   :  { %1782 = vmatprep.subr.bf16.mxu0 %v3929_v2  ;;  %1823 = vmatprep.subr.bf16.mxu1 %v3934_v45 }
 0x565   :  { %1783 = vmatpush1.bf16.msra.mxu0 %v3941_v17  ;;  %1824 = vmatpush1.bf16.msra.mxu1 %v3946_v18 }
 0x566   :  { %1784 = vmatprep.subr.bf16.mxu0 %v3953_v19  ;;  %1825 = vmatprep.subr.bf16.mxu1 %v3958_v20 }
 0x569   :  { %1785 = vmatpush1.bf16.msra.mxu0 %v3965_v13  ;;  %1826 = vmatpush1.bf16.msra.mxu1 %v3970_v21 }
 0x56a   :  { %1883 = vmatprep.subr.bf16.mxu0 %v3774_v15  ;;  %1924 = vmatprep.subr.bf16.mxu1 %v3779_v16 }
 0x56c   :  { %1803 = vmatmul.mubr.bf16.vlgmr.msra.gmra.mxu0 %v4268_v7  ;;  %1844 = vmatmul.mubr.bf16.vlgmr.msra.gmra.mxu1 %v4268_v7 }
 0x56d   :  { %1884 = vmatpush1.bf16.msra.mxu0 %v3794_v54  ;;  %1925 = vmatpush1.bf16.msra.mxu1 %v3799_v0 }
 0x56e   :  { %1885 = vmatprep.subr.bf16.mxu0 %v3807_v3  ;;  %1926 = vmatprep.subr.bf16.mxu1 %v3812_v49 }
 0x56f   :  { %1915 = vmatprep.mubr.bf16.mxu0 %v4268_v7  ;;  %1956 = vmatprep.mubr.bf16.mxu1 %v4268_v7 }
 0x571   :  { %1886 = vmatpush1.bf16.msra.mxu0 %v3819_v12  ;;  %1927 = vmatpush1.bf16.msra.mxu1 %v3824_v5 }
 0x572   :  { %1887 = vmatprep.subr.bf16.mxu0 %v3831_v14  ;;  %1928 = vmatprep.subr.bf16.mxu1 %v3836_v53 }
 0x575   :  { %1888 = vmatpush1.bf16.msra.mxu0 %v3845_v9  ;;  %1929 = vmatpush1.bf16.msra.mxu1 %v3850_v59 }
 0x576   :  { %1889 = vmatprep.subr.bf16.mxu0 %v3857_v48  ;;  %1930 = vmatprep.subr.bf16.mxu1 %v3862_v63 }
 0x579   :  { %1890 = vmatpush1.bf16.msra.mxu0 %v3869_v55  ;;  %1931 = vmatpush1.bf16.msra.mxu1 %v3874_v47 }
 0x57a   :  { %1891 = vmatprep.subr.bf16.mxu0 %v3881_v1  ;;  %1932 = vmatprep.subr.bf16.mxu1 %v3886_v8 }
 0x57d   :  { %1892 = vmatpush1.bf16.msra.mxu0 %v3893_v11  ;;  %1933 = vmatpush1.bf16.msra.mxu1 %v3898_v50 }
 0x57e   :  { %1893 = vmatprep.subr.bf16.mxu0 %v3905_v57  ;;  %1934 = vmatprep.subr.bf16.mxu1 %v3910_v4 }
 0x581   :  { %1894 = vmatpush1.bf16.msra.mxu0 %v3917_v61  ;;  %1935 = vmatpush1.bf16.msra.mxu1 %v3922_v62 }
 0x582   :  { %1895 = vmatprep.subr.bf16.mxu0 %v3929_v2  ;;  %1936 = vmatprep.subr.bf16.mxu1 %v3934_v45 }
 0x585   :  { %1896 = vmatpush1.bf16.msra.mxu0 %v3941_v17  ;;  %1937 = vmatpush1.bf16.msra.mxu1 %v3946_v18 }
 0x586   :  { %1897 = vmatprep.subr.bf16.mxu0 %v3953_v19  ;;  %1938 = vmatprep.subr.bf16.mxu1 %v3958_v20 }
 0x589   :  { %1898 = vmatpush1.bf16.msra.mxu0 %v3965_v13  ;;  %1939 = vmatpush1.bf16.msra.mxu1 %v3970_v21 }
 0x58a   :  { %1996 = vmatprep.subr.bf16.mxu0 %v3774_v15  ;;  %2037 = vmatprep.subr.bf16.mxu1 %v3779_v16 }
 0x60c   :  { %v1532_v22 = vpop.f32.mrf.mxu0  ;;  %v1573_v23 = vpop.f32.mrf.mxu1 }
 0x60d   :  { %v1580_v25 = vadd.f32 %v1532_v22, %v4277_v24  ;;  %v1582_v39 = vadd.f32 %v1573_v23, %v4280_v38  ;;  %v4281_v22 = vld [vmem:[#allocation15_spill] sm:$0xff] }
 0x60e   :  { %v1534_v26 = vpop.f32.mrf.mxu0  ;;  %v1575_v27 = vpop.f32.mrf.mxu1  ;;  %v4282_v24 = vld [vmem:[#allocation39_spill] sm:$0xff] }
 0x60f   :  { %v2569_v28 = vmul.f32 -1.442695, %v1580_v25  ;;  %v1581_v30 = vadd.f32 %v1534_v26, %v4278_v29  ;;  %v1583_v37 = vadd.f32 %v1575_v27, %v4279_v36  ;;  %v645_v25 = vadd.f32 %v4282_v24, %v4281_v22 }
 0x610   :  { %v1536_v31 = vpop.f32.mrf.mxu0  ;;  %v1577_v32 = vpop.f32.mrf.mxu1 }
 0x611   :  { %2805 = vpow2.f32 %v2569_v28  ;;  %v2570_v33 = vmul.f32 -1.442695, %v1581_v30  ;;  %v2571_v40 = vmul.f32 -1.442695, %v1583_v37 }
 0x612   :  { %v1537_v34 = vpop.f32.mrf.mxu0  ;;  %v1578_v35 = vpop.f32.mrf.mxu1 }
 0x613   :  { %2807 = vpow2.f32 %v2570_v33 }
 0x614   :  { %2809 = vtanh.f32 %v1582_v39  ;;  %v4283_v39 = vld [vmem:[#allocation16_spill] sm:$0xff] }
 0x615   :  { %2811 = vpow2.f32 %v2571_v40  ;;  %v4284_v40 = vld [vmem:[#allocation38_spill] sm:$0xff] }
 0x61e   :  { %v2806_v41 = vpop.eup %2805 }
 0x61f   :  { %v1587_v42 = vadd.f32 1.0, %v2806_v41  ;;  %v708_v41 = vadd.f32 %v4284_v40, %v4283_v39 }
 0x620   :  { %v2808_v43 = vpop.eup %2807 }
 0x621   :  { %2813 = vrcp.f32 %v1587_v42  ;;  %v1593_v44 = vadd.f32 1.0, %v2808_v43  ;;  %v2810_v58 = vpop.eup %2809  ;;  %v4285_v43 = vld [vmem:[#allocation14_spill] sm:$0xff] }
 0x622   :  { %v2812_v6 = vpop.eup %2811 }
 0x623   :  { %2815 = vrcp.f32 %v1593_v44  ;;  %v1600_v33 = vadd.f32 1.0, %v2812_v6  ;;  %v4286_v44 = vld [vmem:[#allocation37_spill] sm:$0xff] }
 0x62c   :  { %v1804_v52 = vpop.f32.mrf.mxu0  ;;  %v1845_v60 = vpop.f32.mrf.mxu1 }
 0x62d   :  { %v1852_v23 = vadd.f32 %v1804_v52, %v643_v10  ;;  %v706_v10 = vadd.f32 %v4286_v44, %v4285_v43  ;;  %v4288_v43 = vld [vmem:[#allocation35_spill] sm:$0xff] }
 0x62e   :  { %v2814_v26 = vpop.eup %2813  ;;  %v1806_v27 = vpop.f32.mrf.mxu0 }
 0x62f   :  { %v1847_v28 = vpop.f32.mrf.mxu1  ;;  %v1604_v29 = vmul.f32 %v2814_v26, %v2810_v58  ;;  %v2605_v30 = vmul.f32 -1.442695, %v1852_v23  ;;  %v1853_v31 = vadd.f32 %v1806_v27, %v645_v25  ;;  %v1854_v58 = vadd.f32 %v1845_v60, %v706_v10 }
 0x630   :  { %v2816_v32 = vpop.eup %2815  ;;  %v1808_v34 = vpop.f32.mrf.mxu0  ;;  %v1855_v42 = vadd.f32 %v1847_v28, %v708_v41 }
 0x631   :  { %v1849_v35 = vpop.f32.mrf.mxu1  ;;  %v1603_v46 = vmul.f32 %v2816_v32, %v3788_v56  ;;  %2817 = vpow2.f32 %v2605_v30  ;;  %v2606_v51 = vmul.f32 -1.442695, %v1853_v31 }
 0x632   :  { %v1809_v36 = vpop.f32.mrf.mxu0  ;;  %v2607_v52 = vmul.f32 -1.442695, %v1855_v42 }
 0x633   :  { %v1850_v37 = vpop.f32.mrf.mxu1  ;;  %v1605_v38 = vadd.f32 %v1604_v29, %v1603_v46  ;;  %2819 = vpow2.f32 %v2606_v51 }
 0x634   :  { %2821 = vrcp.f32 %v1600_v33 }
 0x635   :  { %2823 = vtanh.f32 %v1605_v38  ;;  %v4287_v38 = vld [vmem:[#allocation33_spill] sm:$0xff] }
 0x636   :  { %2825 = vtanh.f32 %v1854_v58 }
 0x637   :  { %2827 = vpow2.f32 %v2607_v52 }
 0x63e   :  { %v2818_v6 = vpop.eup %2817 }
 0x63f   :  { %v1859_v22 = vadd.f32 1.0, %v2818_v6 }
 0x640   :  { %v2820_v56 = vpop.eup %2819 }
 0x641   :  { %v2822_v24 = vpop.eup %2821  ;;  %2829 = vrcp.f32 %v1859_v22  ;;  %v1865_v25 = vadd.f32 1.0, %v2820_v56  ;;  %v4289_v56 = vld [vmem:[#allocation36_spill] sm:$0xff] }
 0x642   :  { %v2824_v23 = vpop.eup %2823 }
 0x643   :  { %v1607_v26 = vmul.f32 %v2824_v23, %v2822_v24  ;;  %2831 = vrcp.f32 %v1865_v25  ;;  %v2826_v27 = vpop.eup %2825  ;;  %v4290_v25 = vld [vmem:[#allocation34_spill] sm:$0xff] }
 0x644   :  { %v2828_v28 = vpop.eup %2827 }
 0x645   :  { %2572 = vst [vmem:[%s4222_s5 + $0x28] sm:$0xff] %v1607_v26  ;;  %v1872_v31 = vadd.f32 1.0, %v2828_v28 }
 0x647   :  { %2833 = vrcp.f32 %v1872_v31 }
 0x64e   :  { %v2830_v29 = vpop.eup %2829 }
 0x64f   :  { %v1876_v60 = vmul.f32 %v2830_v29, %v2826_v27 }
 0x650   :  { %v2832_v30 = vpop.eup %2831 }
 0x651   :  { %v1875_v32 = vmul.f32 0.0, %v2832_v30 }
 0x653   :  { %v4030_v33 = vadd.f32 %v1876_v60, %v1875_v32 }
 0x654   :  { %v2834_v34 = vpop.eup %2833 }
 0x655   :  { %2835 = vtanh.f32 %v4030_v33 }
 0x662   :  { %v2836_v35 = vpop.eup %2835 }
 0x663   :  { %v1879_v46 = vmul.f32 %v2836_v35, %v2834_v34 }
 0x665   :  { %2608 = vst [vmem:[%s4224_s6 + $0x28] sm:$0xff] %v1879_v46  ;;  %v1882_v51 = vpack.c.bf16 %v1879_v46, %v1879_v46 }
 0x667   :  { %1916 = vmatmul.mubr.bf16.vlgmr.msra.gmra.mxu0 %v1882_v51  ;;  %1957 = vmatmul.mubr.bf16.vlgmr.msra.gmra.mxu1 %v1882_v51 }
 0x668   :  { %1997 = vmatpush1.bf16.msra.mxu0 %v3794_v54  ;;  %2038 = vmatpush1.bf16.msra.mxu1 %v3799_v0 }
 0x669   :  { %1998 = vmatprep.subr.bf16.mxu0 %v3807_v3  ;;  %2039 = vmatprep.subr.bf16.mxu1 %v3812_v49 }
 0x66a   :  { %2028 = vmatprep.mubr.bf16.mxu0 %v4268_v7  ;;  %2069 = vmatprep.mubr.bf16.mxu1 %v4268_v7 }
 0x66c   :  { %1999 = vmatpush1.bf16.msra.mxu0 %v3819_v12  ;;  %2040 = vmatpush1.bf16.msra.mxu1 %v3824_v5 }
 0x66d   :  { %2000 = vmatprep.subr.bf16.mxu0 %v3831_v14  ;;  %2041 = vmatprep.subr.bf16.mxu1 %v3836_v53 }
 0x670   :  { %2001 = vmatpush1.bf16.msra.mxu0 %v3845_v9  ;;  %2042 = vmatpush1.bf16.msra.mxu1 %v3850_v59 }
 0x671   :  { %2002 = vmatprep.subr.bf16.mxu0 %v3857_v48  ;;  %2043 = vmatprep.subr.bf16.mxu1 %v3862_v63 }
 0x674   :  { %2003 = vmatpush1.bf16.msra.mxu0 %v3869_v55  ;;  %2044 = vmatpush1.bf16.msra.mxu1 %v3874_v47 }
 0x675   :  { %2004 = vmatprep.subr.bf16.mxu0 %v3881_v1  ;;  %2045 = vmatprep.subr.bf16.mxu1 %v3886_v8 }
 0x678   :  { %2005 = vmatpush1.bf16.msra.mxu0 %v3893_v11  ;;  %2046 = vmatpush1.bf16.msra.mxu1 %v3898_v50 }
 0x679   :  { %2006 = vmatprep.subr.bf16.mxu0 %v3905_v57  ;;  %2047 = vmatprep.subr.bf16.mxu1 %v3910_v4 }
 0x67c   :  { %2007 = vmatpush1.bf16.msra.mxu0 %v3917_v61  ;;  %2048 = vmatpush1.bf16.msra.mxu1 %v3922_v62 }
 0x67d   :  { %2008 = vmatprep.subr.bf16.mxu0 %v3929_v2  ;;  %2049 = vmatprep.subr.bf16.mxu1 %v3934_v45 }
 0x680   :  { %2009 = vmatpush1.bf16.msra.mxu0 %v3941_v17  ;;  %2050 = vmatpush1.bf16.msra.mxu1 %v3946_v18 }
 0x681   :  { %2010 = vmatprep.subr.bf16.mxu0 %v3953_v19  ;;  %2051 = vmatprep.subr.bf16.mxu1 %v3958_v20 }
 0x684   :  { %2011 = vmatpush1.bf16.msra.mxu0 %v3965_v13  ;;  %2052 = vmatpush1.bf16.msra.mxu1 %v3970_v21 }
 0x685   :  { %2109 = vmatprep.subr.bf16.mxu0 %v3774_v15  ;;  %2150 = vmatprep.subr.bf16.mxu1 %v3779_v16 }
 0x727   :  { %v1917_v36 = vpop.f32.mrf.mxu0  ;;  %v1958_v37 = vpop.f32.mrf.mxu1 }
 0x728   :  { %v1965_v39 = vadd.f32 %v1917_v36, %v4287_v38  ;;  %v1967_v23 = vadd.f32 %v1958_v37, %v4290_v25 }
 0x729   :  { %v1919_v40 = vpop.f32.mrf.mxu0  ;;  %v1960_v41 = vpop.f32.mrf.mxu1 }
 0x72a   :  { %v2609_v42 = vmul.f32 -1.442695, %v1965_v39  ;;  %v1966_v44 = vadd.f32 %v1919_v40, %v4288_v43  ;;  %v1968_v24 = vadd.f32 %v1960_v41, %v4289_v56 }
 0x72b   :  { %v1921_v10 = vpop.f32.mrf.mxu0  ;;  %v1962_v58 = vpop.f32.mrf.mxu1 }
 0x72c   :  { %2837 = vpow2.f32 %v2609_v42  ;;  %v2610_v52 = vmul.f32 -1.442695, %v1966_v44  ;;  %v2611_v26 = vmul.f32 -1.442695, %v1968_v24  ;;  %v4291_v42 = vld [vmem:[#allocation29_spill] sm:$0xff] }
 0x72d   :  { %v1922_v6 = vpop.f32.mrf.mxu0  ;;  %v1963_v22 = vpop.f32.mrf.mxu1 }
 0x72e   :  { %2839 = vpow2.f32 %v2610_v52  ;;  %v4292_v52 = vld [vmem:[#allocation31_spill] sm:$0xff] }
 0x72f   :  { %2841 = vtanh.f32 %v1967_v23 }
 0x730   :  { %2843 = vpow2.f32 %v2611_v26  ;;  %v4293_v26 = vld [vmem:[#allocation32_spill] sm:$0xff] }
 0x739   :  { %v2838_v27 = vpop.eup %2837 }
 0x73a   :  { %v1972_v28 = vadd.f32 1.0, %v2838_v27 }
 0x73b   :  { %v2840_v29 = vpop.eup %2839 }
 0x73c   :  { %2845 = vrcp.f32 %v1972_v28  ;;  %v1978_v60 = vadd.f32 1.0, %v2840_v29  ;;  %v2842_v30 = vpop.eup %2841  ;;  %v4294_v28 = vld [vmem:[#allocation30_spill] sm:$0xff] }
 0x73d   :  { %v2844_v31 = vpop.eup %2843 }
 0x73e   :  { %2847 = vrcp.f32 %v1978_v60  ;;  %v1985_v46 = vadd.f32 1.0, %v2844_v31 }
 0x740   :  { %2849 = vrcp.f32 %v1985_v46 }
 0x749   :  { %v2846_v32 = vpop.eup %2845 }
 0x74a   :  { %v1989_v34 = vmul.f32 %v2846_v32, %v2842_v30 }
 0x74b   :  { %v2848_v35 = vpop.eup %2847 }
 0x74c   :  { %v1988_v51 = vmul.f32 %v2848_v35, %v4030_v33 }
 0x74d   :  { %v2850_v37 = vpop.eup %2849 }
 0x74e   :  { %v4075_v36 = vadd.f32 %v1989_v34, %v1988_v51 }
 0x750   :  { %2851 = vtanh.f32 %v4075_v36 }
 0x75d   :  { %v2852_v38 = vpop.eup %2851 }
 0x75e   :  { %v1992_v39 = vmul.f32 %v2852_v38, %v2850_v37 }
 0x760   :  { %2612 = vst [vmem:[%s4224_s6 + $0x20] sm:$0xff] %v1992_v39  ;;  %v1995_v40 = vpack.c.bf16 %v1992_v39, %v1992_v39 }
 0x762   :  { %2029 = vmatmul.mubr.bf16.vlgmr.msra.gmra.mxu0 %v1995_v40  ;;  %2070 = vmatmul.mubr.bf16.vlgmr.msra.gmra.mxu1 %v1995_v40 }
 0x763   :  { %2110 = vmatpush1.bf16.msra.mxu0 %v3794_v54  ;;  %2151 = vmatpush1.bf16.msra.mxu1 %v3799_v0 }
 0x764   :  { %2111 = vmatprep.subr.bf16.mxu0 %v3807_v3  ;;  %2152 = vmatprep.subr.bf16.mxu1 %v3812_v49 }
 0x765   :  { %2141 = vmatprep.mubr.bf16.mxu0 %v4268_v7  ;;  %2182 = vmatprep.mubr.bf16.mxu1 %v4268_v7 }
 0x767   :  { %2112 = vmatpush1.bf16.msra.mxu0 %v3819_v12  ;;  %2153 = vmatpush1.bf16.msra.mxu1 %v3824_v5 }
 0x768   :  { %2113 = vmatprep.subr.bf16.mxu0 %v3831_v14  ;;  %2154 = vmatprep.subr.bf16.mxu1 %v3836_v53 }
 0x76b   :  { %2114 = vmatpush1.bf16.msra.mxu0 %v3845_v9  ;;  %2155 = vmatpush1.bf16.msra.mxu1 %v3850_v59 }
 0x76c   :  { %2115 = vmatprep.subr.bf16.mxu0 %v3857_v48  ;;  %2156 = vmatprep.subr.bf16.mxu1 %v3862_v63 }
 0x76f   :  { %2116 = vmatpush1.bf16.msra.mxu0 %v3869_v55  ;;  %2157 = vmatpush1.bf16.msra.mxu1 %v3874_v47 }
 0x770   :  { %2117 = vmatprep.subr.bf16.mxu0 %v3881_v1  ;;  %2158 = vmatprep.subr.bf16.mxu1 %v3886_v8 }
 0x773   :  { %2118 = vmatpush1.bf16.msra.mxu0 %v3893_v11  ;;  %2159 = vmatpush1.bf16.msra.mxu1 %v3898_v50 }
 0x774   :  { %2119 = vmatprep.subr.bf16.mxu0 %v3905_v57  ;;  %2160 = vmatprep.subr.bf16.mxu1 %v3910_v4 }
 0x777   :  { %2120 = vmatpush1.bf16.msra.mxu0 %v3917_v61  ;;  %2161 = vmatpush1.bf16.msra.mxu1 %v3922_v62 }
 0x778   :  { %2121 = vmatprep.subr.bf16.mxu0 %v3929_v2  ;;  %2162 = vmatprep.subr.bf16.mxu1 %v3934_v45 }
 0x77b   :  { %2122 = vmatpush1.bf16.msra.mxu0 %v3941_v17  ;;  %2163 = vmatpush1.bf16.msra.mxu1 %v3946_v18 }
 0x77c   :  { %2123 = vmatprep.subr.bf16.mxu0 %v3953_v19  ;;  %2164 = vmatprep.subr.bf16.mxu1 %v3958_v20 }
 0x77f   :  { %2124 = vmatpush1.bf16.msra.mxu0 %v3965_v13  ;;  %2165 = vmatpush1.bf16.msra.mxu1 %v3970_v21 }
 0x780   :  { %2222 = vmatprep.subr.bf16.mxu0 %v3774_v15  ;;  %2263 = vmatprep.subr.bf16.mxu1 %v3779_v16 }
 0x822   :  { %v2030_v33 = vpop.f32.mrf.mxu0  ;;  %v2071_v41 = vpop.f32.mrf.mxu1 }
 0x823   :  { %v2078_v43 = vadd.f32 %v2030_v33, %v4291_v42  ;;  %v2080_v29 = vadd.f32 %v2071_v41, %v4294_v28 }
 0x824   :  { %v2032_v44 = vpop.f32.mrf.mxu0  ;;  %v2073_v10 = vpop.f32.mrf.mxu1 }
 0x825   :  { %v2613_v58 = vmul.f32 -1.442695, %v2078_v43  ;;  %v2079_v6 = vadd.f32 %v2032_v44, %v4292_v52  ;;  %v2081_v27 = vadd.f32 %v2073_v10, %v4293_v26 }
 0x826   :  { %v2034_v22 = vpop.f32.mrf.mxu0  ;;  %v2075_v56 = vpop.f32.mrf.mxu1 }
 0x827   :  { %2853 = vpow2.f32 %v2613_v58  ;;  %v2614_v24 = vmul.f32 -1.442695, %v2079_v6  ;;  %v2615_v60 = vmul.f32 -1.442695, %v2081_v27  ;;  %v4295_v58 = vld [vmem:[#allocation25_spill] sm:$0xff] }
 0x828   :  { %v2035_v25 = vpop.f32.mrf.mxu0  ;;  %v2076_v23 = vpop.f32.mrf.mxu1 }
 0x829   :  { %2855 = vpow2.f32 %v2614_v24  ;;  %v4296_v24 = vld [vmem:[#allocation27_spill] sm:$0xff] }
 0x82a   :  { %2857 = vtanh.f32 %v2080_v29 }
 0x82b   :  { %2859 = vpow2.f32 %v2615_v60  ;;  %v4297_v60 = vld [vmem:[#allocation28_spill] sm:$0xff] }
 0x834   :  { %v2854_v30 = vpop.eup %2853 }
 0x835   :  { %v2085_v31 = vadd.f32 1.0, %v2854_v30  ;;  %v4298_v30 = vld [vmem:[#allocation26_spill] sm:$0xff] }
 0x836   :  { %v2856_v32 = vpop.eup %2855 }
 0x837   :  { %2861 = vrcp.f32 %v2085_v31  ;;  %v2091_v34 = vadd.f32 1.0, %v2856_v32  ;;  %v2858_v35 = vpop.eup %2857 }
 0x838   :  { %v2860_v46 = vpop.eup %2859 }
 0x839   :  { %2863 = vrcp.f32 %v2091_v34  ;;  %v2098_v39 = vadd.f32 1.0, %v2860_v46 }
 0x83b   :  { %2865 = vrcp.f32 %v2098_v39 }
 0x844   :  { %v2862_v51 = vpop.eup %2861 }
 0x845   :  { %v2102_v37 = vmul.f32 %v2862_v51, %v2858_v35 }
 0x846   :  { %v2864_v38 = vpop.eup %2863 }
 0x847   :  { %v2101_v40 = vmul.f32 %v2864_v38, %v4075_v36 }
 0x848   :  { %v2866_v41 = vpop.eup %2865 }
 0x849   :  { %v4120_v33 = vadd.f32 %v2102_v37, %v2101_v40 }
 0x84b   :  { %2867 = vtanh.f32 %v4120_v33 }
 0x858   :  { %v2868_v42 = vpop.eup %2867 }
 0x859   :  { %v2105_v43 = vmul.f32 %v2868_v42, %v2866_v41 }
 0x85b   :  { %2616 = vst [vmem:[%s4224_s6 + $0x18] sm:$0xff] %v2105_v43  ;;  %v2108_v44 = vpack.c.bf16 %v2105_v43, %v2105_v43 }
 0x85d   :  { %2142 = vmatmul.mubr.bf16.vlgmr.msra.gmra.mxu0 %v2108_v44  ;;  %2183 = vmatmul.mubr.bf16.vlgmr.msra.gmra.mxu1 %v2108_v44 }
 0x85e   :  { %2223 = vmatpush1.bf16.msra.mxu0 %v3794_v54  ;;  %2264 = vmatpush1.bf16.msra.mxu1 %v3799_v0 }
 0x85f   :  { %2224 = vmatprep.subr.bf16.mxu0 %v3807_v3  ;;  %2265 = vmatprep.subr.bf16.mxu1 %v3812_v49 }
 0x860   :  { %2254 = vmatprep.mubr.bf16.mxu0 %v4268_v7  ;;  %2295 = vmatprep.mubr.bf16.mxu1 %v4268_v7 }
 0x862   :  { %2225 = vmatpush1.bf16.msra.mxu0 %v3819_v12  ;;  %2266 = vmatpush1.bf16.msra.mxu1 %v3824_v5 }
 0x863   :  { %2226 = vmatprep.subr.bf16.mxu0 %v3831_v14  ;;  %2267 = vmatprep.subr.bf16.mxu1 %v3836_v53 }
 0x866   :  { %2227 = vmatpush1.bf16.msra.mxu0 %v3845_v9  ;;  %2268 = vmatpush1.bf16.msra.mxu1 %v3850_v59 }
 0x867   :  { %2228 = vmatprep.subr.bf16.mxu0 %v3857_v48  ;;  %2269 = vmatprep.subr.bf16.mxu1 %v3862_v63 }
 0x86a   :  { %2229 = vmatpush1.bf16.msra.mxu0 %v3869_v55  ;;  %2270 = vmatpush1.bf16.msra.mxu1 %v3874_v47 }
 0x86b   :  { %2230 = vmatprep.subr.bf16.mxu0 %v3881_v1  ;;  %2271 = vmatprep.subr.bf16.mxu1 %v3886_v8 }
 0x86e   :  { %2231 = vmatpush1.bf16.msra.mxu0 %v3893_v11  ;;  %2272 = vmatpush1.bf16.msra.mxu1 %v3898_v50 }
 0x86f   :  { %2232 = vmatprep.subr.bf16.mxu0 %v3905_v57  ;;  %2273 = vmatprep.subr.bf16.mxu1 %v3910_v4 }
 0x872   :  { %2233 = vmatpush1.bf16.msra.mxu0 %v3917_v61  ;;  %2274 = vmatpush1.bf16.msra.mxu1 %v3922_v62 }
 0x873   :  { %2234 = vmatprep.subr.bf16.mxu0 %v3929_v2  ;;  %2275 = vmatprep.subr.bf16.mxu1 %v3934_v45 }
 0x876   :  { %2235 = vmatpush1.bf16.msra.mxu0 %v3941_v17  ;;  %2276 = vmatpush1.bf16.msra.mxu1 %v3946_v18 }
 0x877   :  { %2236 = vmatprep.subr.bf16.mxu0 %v3953_v19  ;;  %2277 = vmatprep.subr.bf16.mxu1 %v3958_v20 }
 0x87a   :  { %2237 = vmatpush1.bf16.msra.mxu0 %v3965_v13  ;;  %2278 = vmatpush1.bf16.msra.mxu1 %v3970_v21 }
 0x87b   :  { %2335 = vmatprep.subr.bf16.mxu0 %v3774_v15  ;;  %2376 = vmatprep.subr.bf16.mxu1 %v3779_v16 }
 0x91d   :  { %v2143_v36 = vpop.f32.mrf.mxu0  ;;  %v2184_v10 = vpop.f32.mrf.mxu1 }
 0x91e   :  { %v2191_v52 = vadd.f32 %v2143_v36, %v4295_v58  ;;  %v2193_v16 = vadd.f32 %v2184_v10, %v4298_v30 }
 0x91f   :  { %v2145_v6 = vpop.f32.mrf.mxu0  ;;  %v2186_v22 = vpop.f32.mrf.mxu1 }
 0x920   :  { %v2617_v56 = vmul.f32 -1.442695, %v2191_v52  ;;  %v2192_v25 = vadd.f32 %v2145_v6, %v4296_v24  ;;  %v2194_v15 = vadd.f32 %v2186_v22, %v4297_v60 }
 0x921   :  { %v2147_v23 = vpop.f32.mrf.mxu0  ;;  %v2188_v26 = vpop.f32.mrf.mxu1 }
 0x922   :  { %2869 = vpow2.f32 %v2617_v56  ;;  %v2618_v27 = vmul.f32 -1.442695, %v2192_v25  ;;  %v2619_v31 = vmul.f32 -1.442695, %v2194_v15  ;;  %v4303_v25 = vld [vmem:[#allocation17_spill] sm:$0xff] }
 0x923   :  { %v2148_v28 = vpop.f32.mrf.mxu0  ;;  %v2189_v29 = vpop.f32.mrf.mxu1 }
 0x924   :  { %2871 = vpow2.f32 %v2618_v27  ;;  %v4304_v29 = vld [vmem:[#allocation19_spill] sm:$0xff] }
 0x925   :  { %2873 = vtanh.f32 %v2193_v16 }
 0x926   :  { %2875 = vpow2.f32 %v2619_v31 }
 0x92f   :  { %v2870_v32 = vpop.eup %2869 }
 0x930   :  { %v2198_v34 = vadd.f32 1.0, %v2870_v32 }
 0x931   :  { %v2872_v35 = vpop.eup %2871 }
 0x932   :  { %2877 = vrcp.f32 %v2198_v34  ;;  %v2204_v46 = vadd.f32 1.0, %v2872_v35  ;;  %v2874_v51 = vpop.eup %2873  ;;  %v4305_v34 = vld [vmem:[#allocation20_spill] sm:$0xff] }
 0x933   :  { %v2876_v37 = vpop.eup %2875 }
 0x934   :  { %2879 = vrcp.f32 %v2204_v46  ;;  %v2211_v41 = vadd.f32 1.0, %v2876_v37  ;;  %v4306_v46 = vld [vmem:[#allocation18_spill] sm:$0xff] }
 0x936   :  { %2881 = vrcp.f32 %v2211_v41 }
 0x93f   :  { %v2878_v38 = vpop.eup %2877 }
 0x940   :  { %v2215_v39 = vmul.f32 %v2878_v38, %v2874_v51 }
 0x941   :  { %v2880_v40 = vpop.eup %2879 }
 0x942   :  { %v2214_v42 = vmul.f32 %v2880_v40, %v4120_v33 }
 0x943   :  { %v2882_v44 = vpop.eup %2881 }
 0x944   :  { %v4165_v43 = vadd.f32 %v2215_v39, %v2214_v42 }
 0x946   :  { %2883 = vtanh.f32 %v4165_v43 }
 0x953   :  { %v2884_v36 = vpop.eup %2883 }
 0x954   :  { %v2218_v10 = vmul.f32 %v2884_v36, %v2882_v44 }
 0x956   :  { %2620 = vst [vmem:[%s4224_s6 + $0x10] sm:$0xff] %v2218_v10  ;;  %v2221_v58 = vpack.c.bf16 %v2218_v10, %v2218_v10 }
 0x958   :  { %2255 = vmatmul.mubr.bf16.vlgmr.msra.gmra.mxu0 %v2221_v58  ;;  %2296 = vmatmul.mubr.bf16.vlgmr.msra.gmra.mxu1 %v2221_v58 }
 0x959   :  { %2336 = vmatpush1.bf16.msra.mxu0 %v3794_v54  ;;  %2377 = vmatpush1.bf16.msra.mxu1 %v3799_v0  ;;  %v4299_v0 = vld [vmem:[#allocation21_spill] sm:$0xff] }
 0x95a   :  { %2337 = vmatprep.subr.bf16.mxu0 %v3807_v3  ;;  %2378 = vmatprep.subr.bf16.mxu1 %v3812_v49 }
 0x95b   :  { %2367 = vmatprep.mubr.bf16.mxu0 %v4268_v7  ;;  %2408 = vmatprep.mubr.bf16.mxu1 %v4268_v7 }
 0x95d   :  { %2338 = vmatpush1.bf16.msra.mxu0 %v3819_v12  ;;  %2379 = vmatpush1.bf16.msra.mxu1 %v3824_v5 }
 0x95e   :  { %2339 = vmatprep.subr.bf16.mxu0 %v3831_v14  ;;  %2380 = vmatprep.subr.bf16.mxu1 %v3836_v53  ;;  %v4300_v14 = vld [vmem:[#allocation23_spill] sm:$0xff] }
 0x961   :  { %2340 = vmatpush1.bf16.msra.mxu0 %v3845_v9  ;;  %2381 = vmatpush1.bf16.msra.mxu1 %v3850_v59 }
 0x962   :  { %2341 = vmatprep.subr.bf16.mxu0 %v3857_v48  ;;  %2382 = vmatprep.subr.bf16.mxu1 %v3862_v63 }
 0x965   :  { %2342 = vmatpush1.bf16.msra.mxu0 %v3869_v55  ;;  %2383 = vmatpush1.bf16.msra.mxu1 %v3874_v47  ;;  %v4301_v47 = vld [vmem:[#allocation24_spill] sm:$0xff] }
 0x966   :  { %2343 = vmatprep.subr.bf16.mxu0 %v3881_v1  ;;  %2384 = vmatprep.subr.bf16.mxu1 %v3886_v8  ;;  %v4302_v8 = vld [vmem:[#allocation22_spill] sm:$0xff] }
 0x969   :  { %2344 = vmatpush1.bf16.msra.mxu0 %v3893_v11  ;;  %2385 = vmatpush1.bf16.msra.mxu1 %v3898_v50 }
 0x96a   :  { %2345 = vmatprep.subr.bf16.mxu0 %v3905_v57  ;;  %2386 = vmatprep.subr.bf16.mxu1 %v3910_v4 }
 0x96d   :  { %2346 = vmatpush1.bf16.msra.mxu0 %v3917_v61  ;;  %2387 = vmatpush1.bf16.msra.mxu1 %v3922_v62 }
 0x96e   :  { %2347 = vmatprep.subr.bf16.mxu0 %v3929_v2  ;;  %2388 = vmatprep.subr.bf16.mxu1 %v3934_v45 }
 0x971   :  { %2348 = vmatpush1.bf16.msra.mxu0 %v3941_v17  ;;  %2389 = vmatpush1.bf16.msra.mxu1 %v3946_v18 }
 0x972   :  { %2349 = vmatprep.subr.bf16.mxu0 %v3953_v19  ;;  %2390 = vmatprep.subr.bf16.mxu1 %v3958_v20 }
 0x975   :  { %2350 = vmatpush1.bf16.msra.mxu0 %v3965_v13  ;;  %2391 = vmatpush1.bf16.msra.mxu1 %v3970_v21 }
 0xa18   :  { %v2256_v7 = vpop.f32.mrf.mxu0  ;;  %v2297_v54 = vpop.f32.mrf.mxu1 }
 0xa19   :  { %v2304_v3 = vadd.f32 %v2256_v7, %v4299_v0  ;;  %v2306_v11 = vadd.f32 %v2297_v54, %v4302_v8 }
 0xa1a   :  { %v2258_v49 = vpop.f32.mrf.mxu0  ;;  %v2299_v12 = vpop.f32.mrf.mxu1 }
 0xa1b   :  { %v2621_v5 = vmul.f32 -1.442695, %v2304_v3  ;;  %v2305_v53 = vadd.f32 %v2258_v49, %v4300_v14  ;;  %v2307_v1 = vadd.f32 %v2299_v12, %v4301_v47 }
 0xa1c   :  { %v2260_v9 = vpop.f32.mrf.mxu0  ;;  %v2301_v59 = vpop.f32.mrf.mxu1 }
 0xa1d   :  { %2885 = vpow2.f32 %v2621_v5  ;;  %v2622_v48 = vmul.f32 -1.442695, %v2305_v53  ;;  %v2623_v50 = vmul.f32 -1.442695, %v2307_v1 }
 0xa1e   :  { %v2261_v63 = vpop.f32.mrf.mxu0  ;;  %v2302_v55 = vpop.f32.mrf.mxu1 }
 0xa1f   :  { %2887 = vpow2.f32 %v2622_v48 }
 0xa20   :  { %2889 = vtanh.f32 %v2306_v11 }
 0xa21   :  { %2891 = vpow2.f32 %v2623_v50 }
 0xa2a   :  { %v2886_v57 = vpop.eup %2885 }
 0xa2b   :  { %v2311_v4 = vadd.f32 1.0, %v2886_v57 }
 0xa2c   :  { %v2888_v61 = vpop.eup %2887 }
 0xa2d   :  { %2893 = vrcp.f32 %v2311_v4  ;;  %v2317_v62 = vadd.f32 1.0, %v2888_v61  ;;  %v2890_v2 = vpop.eup %2889 }
 0xa2e   :  { %v2892_v45 = vpop.eup %2891 }
 0xa2f   :  { %2895 = vrcp.f32 %v2317_v62  ;;  %v2324_v20 = vadd.f32 1.0, %v2892_v45 }
 0xa31   :  { %2897 = vrcp.f32 %v2324_v20 }
 0xa3a   :  { %v2894_v17 = vpop.eup %2893 }
 0xa3b   :  { %v2328_v18 = vmul.f32 %v2894_v17, %v2890_v2 }
 0xa3c   :  { %v2896_v19 = vpop.eup %2895 }
 0xa3d   :  { %v2327_v13 = vmul.f32 %v2896_v19, %v4165_v43 }
 0xa3e   :  { %v2898_v33 = vpop.eup %2897 }
 0xa3f   :  { %v2329_v21 = vadd.f32 %v2328_v18, %v2327_v13 }
 0xa41   :  { %2899 = vtanh.f32 %v2329_v21 }
 0xa4e   :  { %v2900_v52 = vpop.eup %2899 }
 0xa4f   :  { %v2331_v6 = vmul.f32 %v2900_v52, %v2898_v33 }
 0xa51   :  { %2624 = vst [vmem:[%s4224_s6 + $0x8] sm:$0xff] %v2331_v6  ;;  %v2334_v22 = vpack.c.bf16 %v2331_v6, %v2331_v6 }
 0xa53   :  { %2368 = vmatmul.mubr.bf16.vlgmr.msra.gmra.mxu0 %v2334_v22  ;;  %2409 = vmatmul.mubr.bf16.vlgmr.msra.gmra.mxu1 %v2334_v22 }
 0xb13   :  { %v2369_v56 = vpop.f32.mrf.mxu0  ;;  %v2410_v24 = vpop.f32.mrf.mxu1 }
 0xb14   :  { %v2417_v23 = vadd.f32 %v2369_v56, %v4303_v25  ;;  %v2419_v51 = vadd.f32 %v2410_v24, %v4306_v46 }
 0xb15   :  { %v2371_v26 = vpop.f32.mrf.mxu0  ;;  %v2412_v27 = vpop.f32.mrf.mxu1 }
 0xb16   :  { %v2625_v28 = vmul.f32 -1.442695, %v2417_v23  ;;  %v2418_v60 = vadd.f32 %v2371_v26, %v4304_v29  ;;  %v2420_v35 = vadd.f32 %v2412_v27, %v4305_v34 }
 0xb17   :  { %v2373_v15 = vpop.f32.mrf.mxu0  ;;  %v2414_v30 = vpop.f32.mrf.mxu1 }
 0xb18   :  { %2901 = vpow2.f32 %v2625_v28  ;;  %v2626_v16 = vmul.f32 -1.442695, %v2418_v60  ;;  %v2627_v37 = vmul.f32 -1.442695, %v2420_v35 }
 0xb19   :  { %v2374_v31 = vpop.f32.mrf.mxu0  ;;  %v2415_v32 = vpop.f32.mrf.mxu1 }
 0xb1a   :  { %2903 = vpow2.f32 %v2626_v16 }
 0xb1b   :  { %2905 = vtanh.f32 %v2419_v51 }
 0xb1c   :  { %2907 = vpow2.f32 %v2627_v37 }
 0xb25   :  { %v2902_v38 = vpop.eup %2901 }
 0xb26   :  { %v2424_v39 = vadd.f32 1.0, %v2902_v38 }
 0xb27   :  { %v2904_v40 = vpop.eup %2903 }
 0xb28   :  { %2909 = vrcp.f32 %v2424_v39  ;;  %v2430_v41 = vadd.f32 1.0, %v2904_v40  ;;  %v2906_v42 = vpop.eup %2905 }
 0xb29   :  { %v2908_v43 = vpop.eup %2907 }
 0xb2a   :  { %2911 = vrcp.f32 %v2430_v41  ;;  %v2437_v58 = vadd.f32 1.0, %v2908_v43 }
 0xb2c   :  { %2913 = vrcp.f32 %v2437_v58 }
 0xb35   :  { %v2910_v44 = vpop.eup %2909 }
 0xb36   :  { %v2441_v36 = vmul.f32 %v2910_v44, %v2906_v42 }
 0xb37   :  { %v2912_v10 = vpop.eup %2911 }
 0xb38   :  { %v2440_v7 = vmul.f32 %v2912_v10, %v2329_v21 }
 0xb39   :  { %v2914_v0 = vpop.eup %2913 }
 0xb3a   :  { %v2442_v54 = vadd.f32 %v2441_v36, %v2440_v7 }
 0xb3c   :  { %2915 = vtanh.f32 %v2442_v54 }
 0xb49   :  { %v2916_v3 = vpop.eup %2915 }
 0xb4a   :  { %v2444_v49 = vmul.f32 %v2916_v3, %v2914_v0 }
 0xb4c   :  { %2445 = vst [vmem:[%s4224_s6] sm:$0xff] %v2444_v49 }

</bundles_post_ra>
